<compile_context>
chip_gen: v7x
topology: tpu7x:2x2x1
jax: 0.10.0
libtpu: 0.0.40
codegen_flags: <defaults>
</compile_context>

<pallas_src>
import math

import jax
import jax.numpy as jnp
from jax.experimental import pallas as pl
from jax.experimental.pallas import tpu as pltpu


# ----------------------- in-kernel math helpers -----------------------

def _erf(x):
    # float32 rational erf approximation (Eigen/XLA style); elementwise-only
    # ops so it is guaranteed to lower in Mosaic. abs error << 1e-5 on [-4, 4].
    # TODO(synk): switch to a native erf lowering if/when Mosaic exposes one.
    x = jnp.clip(x, -4.0, 4.0)
    x2 = x * x
    a = jnp.float32(-2.72614225801306e-10)
    a = a * x2 + jnp.float32(2.77068142495902e-08)
    a = a * x2 + jnp.float32(-2.10102402082508e-06)
    a = a * x2 + jnp.float32(-5.69250639462346e-05)
    a = a * x2 + jnp.float32(-7.34990630326855e-04)
    a = a * x2 + jnp.float32(-2.95459980854025e-03)
    a = a * x2 + jnp.float32(-1.60960333262415e-02)
    a = a * x
    b = jnp.float32(-1.45660718464996e-05)
    b = b * x2 + jnp.float32(-2.13374055278905e-04)
    b = b * x2 + jnp.float32(-1.68282697438203e-03)
    b = b * x2 + jnp.float32(-7.37332916720468e-03)
    b = b * x2 + jnp.float32(-1.42647390514189e-02)
    # Divide moved off the VALU: EUP approximate reciprocal (own bundle slot)
    # + one Newton step restores ~f32 precision, keeping erf at ~1e-5 abs err.
    r = pl.reciprocal(b, approx=True)
    r = r * (jnp.float32(2.0) - b * r)
    return a * r


def _gelu(x):
    # exact (erf-based) GELU, matching torch.nn.GELU() default
    return 0.5 * x * (1.0 + _erf(x * jnp.float32(0.7071067811865476)))


def _layernorm(x, gamma, beta, eps=1e-5):
    # torch.nn.LayerNorm over last dim (biased variance, eps=1e-5).
    # E[x] and E[x^2] are independent reductions over the same loaded x, and
    # the affine is applied as one fused (x - mu) * (gamma * rstd) + beta.
    mu = jnp.mean(x, axis=-1, keepdims=True)
    ms = jnp.mean(x * x, axis=-1, keepdims=True)
    rstd = jax.lax.rsqrt(ms - mu * mu + eps)
    return (x - mu) * (gamma * rstd) + beta


def _mm(a, w):
    # activation @ weight: cast the activation to the weight dtype (f32 by
    # default, bf16 when mxu_dtype=bf16 on v6e/v7x), accumulate in f32.
    return jnp.dot(a.astype(w.dtype), w, preferred_element_type=jnp.float32)


def _mm_wl(w, a):
    # weight @ activation (token mixing), same dtype policy as _mm.
    return jnp.dot(w, a.astype(w.dtype), preferred_element_type=jnp.float32)


# ----------------------------- fused Pallas kernel -----------------------------

def _mixer_fused_kernel(p_ref, wp_ref,
                        w1_ref, b1_ref, w2_ref, b2_ref,
                        gt_ref, bt_ref, gc_ref, bc_ref,
                        w3_ref, b3_ref, w4_ref, b4_ref,
                        g_ref, b_ref, wfc_ref, bfc_ref,
                        o_ref):
    depth = w1_ref.shape[0]
    T = w2_ref.shape[1]            # num_tokens
    bb = p_ref.shape[1] // T       # images handled by this grid step

    # ---- patch embedding: one matmul over all bb*T token rows ----
    x = _mm(p_ref[0], wp_ref[...])                               # [bb*T, H] f32

    # ---- mixer layers (static unroll; dropout p=0.0 is identity, omitted) ----
    for d in range(depth):
        # token mixing: per-image dense 2-D matmuls on contiguous row slices
        # (linear in bb -- replaces the O(bb^2) kron block-diagonal weights).
        y = _layernorm(x, gt_ref[d], bt_ref[d])                  # [bb*T, H]
        w1 = w1_ref[d]; b1 = b1_ref[d]                           # [J,T], [J,1]
        w2 = w2_ref[d]; b2 = b2_ref[d]                           # [T,J], [T,1]
        mixed = []
        for b in range(bb):
            y_b = y[b * T:(b + 1) * T, :]                        # [T, H]
            u_b = _gelu(_mm_wl(w1, y_b) + b1)                    # [J, H]
            mixed.append(_gelu(_mm_wl(w2, u_b) + b2))            # [T, H]
        x = x + jnp.concatenate(mixed, axis=0)                   # [bb*T, H]

        # channel mixing: fully batched over all bb*T rows (the big matmuls)
        z = _layernorm(x, gc_ref[d], bc_ref[d])
        c = _gelu(_mm(z, w3_ref[d]) + b3_ref[d])                 # [bb*T, M]
        x = x + _gelu(_mm(c, w4_ref[d]) + b4_ref[d])             # [bb*T, H]

    # ---- head: LN -> per-image token mean (sublane reduce) -> fc (128-lane) ----
    y = _layernorm(x, g_ref[...], b_ref[...])
    pooled = jnp.concatenate(
        [jnp.mean(y[b * T:(b + 1) * T, :], axis=0, keepdims=True)
         for b in range(bb)], axis=0)                            # [bb, H]
    o_ref[0] = _mm(pooled, wfc_ref[...]) + bfc_ref[...]          # [bb, Cpad]


# ------------------------------ spec helpers ------------------------------

def _weight_spec(shape):
    # Full-array block with a constant index map: the weight is DMA'd once and
    # revisited every grid step, so single buffering (Buffered(1)) is enough --
    # default double-buffering would just double the resident weight VMEM.
    rank = len(shape)
    index_map = lambda i, _r=rank: (0,) * _r
    try:
        return pl.BlockSpec(tuple(shape), index_map,
                            pipeline_mode=pl.Buffered(1))
    except TypeError:  # older JAX without pipeline_mode: fall back gracefully
        return pl.BlockSpec(tuple(shape), index_map)


def _nbytes(a):
    return math.prod(a.shape) * jnp.dtype(a.dtype).itemsize


# ------------------------------ model glue ------------------------------

def _extract_patches(data, patch_size, image_size):
    # [B, 1, 28, 28] -> [B, T, P*P], row-major over the patch grid
    # (matches Conv2d(stride=P) output flatten(2).transpose(1, 2) token order)
    B = data.shape[0]
    G = image_size // patch_size
    return (data[:, 0]
            .reshape(B, G, patch_size, G, patch_size)
            .transpose(0, 1, 3, 2, 4)
            .reshape(B, G * G, patch_size * patch_size))


def mlp_mixer_forward(data, params, *, num_batch_blocks=1, mxu_dtype=jnp.float32):
    """Full MLP-Mixer forward in a single fused pallas_call.

    num_batch_blocks: 1 on v5e/v6e (single TensorCore -> extra grid steps are
      pure serial overhead); 2 on v7x to split the batch across its two
      TensorCores ("parallel" grid axis), which also halves the per-core
      resident activation slab.
    mxu_dtype: jnp.float32 (default) or jnp.bfloat16 on v6e/v7x for MXU peak
      (f32 accumulation; LayerNorm/GELU/biases stay f32). Re-validate the 1e-3
      tolerance before enabling bf16.
    """
    psz, img = params["patch_size"], params["image_size"]
    B = data.shape[0]
    H = params["w_patch"].shape[1]
    T = (img // psz) ** 2
    num_class = params["w_fc"].shape[1]
    layers = params["layers"]

    nb = num_batch_blocks
    assert B % nb == 0, "batch must be divisible by num_batch_blocks"
    bb = B // nb

    # ---- wrapper-side (XLA) data / weight prep ----
    # (constant-folded under jit-over-data; if params ever become traced, hoist
    #  this prep out of the per-step function.)
    patches = _extract_patches(data, psz, img)                   # [B, T, PP]
    PP = patches.shape[-1]
    # No lane padding of PP: blocks cover the full array dims, so the (8,128)
    # divisibility rule does not apply (bb*T = sublane axis, PP = lane axis);
    # Mosaic pads the MXU K dim internally.
    patches = patches.reshape(nb, bb * T, PP)
    w_patch = params["w_patch"].astype(mxu_dtype)

    # lane-dense classifier output: pad classes up to a multiple of 128
    Cpad = ((num_class + 127) // 128) * 128
    w_fc = jnp.pad(params["w_fc"], ((0, 0), (0, Cpad - num_class))).astype(mxu_dtype)
    b_fc = jnp.pad(params["b_fc"], ((0, 0), (0, Cpad - num_class)))

    # Token-mixing weights stored pre-transposed ([J,T] / [T,J]) so the
    # per-image token mix is two plain transpose-free 2-D MXU matmuls.
    w1ts = jnp.stack([lp["w1"].T for lp in layers]).astype(mxu_dtype)  # [d, J, T]
    w2ts = jnp.stack([lp["w2"].T for lp in layers]).astype(mxu_dtype)  # [d, T, J]
    # [d, N, 1] bias layout is lane-padded in VMEM; accepted consciously (tiny
    # here) -- fold into the matmuls if J/T/depth ever grow large.
    b1s = jnp.stack([lp["b1"].reshape(-1, 1) for lp in layers])        # [d, J, 1]
    b2s = jnp.stack([lp["b2"].reshape(-1, 1) for lp in layers])        # [d, T, 1]
    gts = jnp.stack([lp["gt"] for lp in layers])                       # [d, 1, H]
    bts = jnp.stack([lp["bt"] for lp in layers])
    gcs = jnp.stack([lp["gc"] for lp in layers])
    bcs = jnp.stack([lp["bc"] for lp in layers])
    w3s = jnp.stack([lp["w3"] for lp in layers]).astype(mxu_dtype)     # [d, H, M]
    b3s = jnp.stack([lp["b3"] for lp in layers])                       # [d, 1, M]
    w4s = jnp.stack([lp["w4"] for lp in layers]).astype(mxu_dtype)     # [d, M, H]
    b4s = jnp.stack([lp["b4"] for lp in layers])                       # [d, 1, H]

    args = (patches, w_patch, w1ts, b1s, w2ts, b2s, gts, bts, gcs, bcs,
            w3s, b3s, w4s, b4s, params["ln_g"], params["ln_b"], w_fc, b_fc)

    in_specs = [pl.BlockSpec((1, bb * T, PP), lambda i: (i, 0, 0))]
    in_specs += [_weight_spec(a.shape) for a in args[1:]]

    # explicit scoped-VMEM budget: resident weights + (double-buffered)
    # activations/output plus headroom, capped under v7x's 64 MiB per core.
    resident = sum(_nbytes(a) for a in args) + nb * bb * Cpad * 4
    vmem_limit = int(min(max(2 * resident + (4 << 20), 32 << 20), 56 << 20))

    out = pl.pallas_call(
        _mixer_fused_kernel,
        out_shape=jax.ShapeDtypeStruct((nb, bb, Cpad), jnp.float32),
        grid=(nb,),
        in_specs=in_specs,
        out_specs=pl.BlockSpec((1, bb, Cpad), lambda i: (i, 0, 0)),
        compiler_params=pltpu.CompilerParams(
            dimension_semantics=("parallel",),
            vmem_limit_bytes=vmem_limit),
    )(*args)
    return out.reshape(B, Cpad)[:, :num_class]


def init_params(key, patch_size, depth, num_class, hidden_dim, tokens_mlp_dim,
                channels_mlp_dim, image_size=28):
    assert image_size % patch_size == 0
    assert depth > 1
    num_tokens = (image_size // patch_size) ** 2
    keys = iter(jax.random.split(key, 8 + depth * 8))

    def nrm(shape, scale=0.05):
        return (scale * jax.random.normal(next(keys), shape)).astype(jnp.float32)

    params = {
        "patch_size": patch_size,
        "image_size": image_size,
        # Conv2d weight [hidden, 1, P, P] stored flattened & transposed: [P*P, hidden]
        "w_patch": nrm((patch_size * patch_size, hidden_dim)),
        "layers": [],
        "ln_g": jnp.ones((1, hidden_dim), jnp.float32),
        "ln_b": jnp.zeros((1, hidden_dim), jnp.float32),
        "w_fc": nrm((hidden_dim, num_class)),      # Linear weight transposed: [in, out]
        "b_fc": nrm((1, num_class)),
    }
    for _ in range(depth):
        params["layers"].append({
            "gt": jnp.ones((1, hidden_dim), jnp.float32),
            "bt": jnp.zeros((1, hidden_dim), jnp.float32),
            "w1": nrm((num_tokens, tokens_mlp_dim), 0.1),
            "b1": nrm((1, tokens_mlp_dim), 0.1),
            "w2": nrm((tokens_mlp_dim, num_tokens), 0.1),
            "b2": nrm((1, num_tokens), 0.1),
            "gc": jnp.ones((1, hidden_dim), jnp.float32),
            "bc": jnp.zeros((1, hidden_dim), jnp.float32),
            "w3": nrm((hidden_dim, channels_mlp_dim), 0.1),
            "b3": nrm((1, channels_mlp_dim), 0.1),
            "w4": nrm((channels_mlp_dim, hidden_dim), 0.1),
            "b4": nrm((1, hidden_dim), 0.1),
        })
    return params


# ------------------------------ pure-JAX reference ------------------------------

def reference_forward(data, params):
    patches = _extract_patches(data, params["patch_size"], params["image_size"])
    x = patches @ params["w_patch"]

    def ln(v, g, b):
        mu = v.mean(-1, keepdims=True)
        var = ((v - mu) ** 2).mean(-1, keepdims=True)
        return (v - mu) / jnp.sqrt(var + 1e-5) * g + b

    gelu = lambda v: jax.nn.gelu(v, approximate=False)
    for lp in params["layers"]:
        y = ln(x, lp["gt"], lp["bt"]).transpose(0, 2, 1)
        y = gelu(gelu(y @ lp["w1"] + lp["b1"]) @ lp["w2"] + lp["b2"])
        x = x + y.transpose(0, 2, 1)
        z = ln(x, lp["gc"], lp["bc"])
        z = gelu(gelu(z @ lp["w3"] + lp["b3"]) @ lp["w4"] + lp["b4"])
        x = x + z
    x = ln(x, params["ln_g"], params["ln_b"]).mean(axis=1)
    return x @ params["w_fc"] + params["b_fc"]


if __name__ == "__main__":
    key = jax.random.PRNGKey(0)
    k_data, k_params = jax.random.split(key)

    # config: patch_size=7 -> 4x4 grid -> 16 tokens, hidden=32, depth=2, 10 classes
    params = init_params(k_params, patch_size=7, depth=2, num_class=10,
                         hidden_dim=32, tokens_mlp_dim=32, channels_mlp_dim=32,
                         image_size=28)
    data = jax.random.normal(k_data, (2, 1, 28, 28), dtype=jnp.float32)

    # num_batch_blocks=1 is right for v5e/v6e (1 TensorCore); on v7x pass 2 to
    # split the batch across both TensorCores.  jit over the data only so the
    # wrapper-side weight prep is constant-folded into the XLA program.
    fwd = jax.jit(lambda d: mlp_mixer_forward(d, params, num_batch_blocks=1))

    out = jax.block_until_ready(fwd(data))
    assert out.shape == (2, 10)

    ref = reference_forward(data, params)
    err = float(jnp.max(jnp.abs(out - ref)))
    assert jnp.allclose(out, ref, atol=1e-3, rtol=1e-3), err

    print("KERNEL_OK")
</pallas_src>

<mosaic_0001>
module attributes {stable_mosaic.version = 11 : i64} {
  func.func @_mixer_fused_kernel(%arg0: i32, %arg1: memref<1x32x49xf32, #tpu.memory_space<vmem>>, %arg2: memref<49x32xf32, #tpu.memory_space<vmem>>, %arg3: memref<2x32x16xf32, #tpu.memory_space<vmem>>, %arg4: memref<2x32x1xf32, #tpu.memory_space<vmem>>, %arg5: memref<2x16x32xf32, #tpu.memory_space<vmem>>, %arg6: memref<2x16x1xf32, #tpu.memory_space<vmem>>, %arg7: memref<2x1x32xf32, #tpu.memory_space<vmem>>, %arg8: memref<2x1x32xf32, #tpu.memory_space<vmem>>, %arg9: memref<2x1x32xf32, #tpu.memory_space<vmem>>, %arg10: memref<2x1x32xf32, #tpu.memory_space<vmem>>, %arg11: memref<2x32x32xf32, #tpu.memory_space<vmem>>, %arg12: memref<2x1x32xf32, #tpu.memory_space<vmem>>, %arg13: memref<2x32x32xf32, #tpu.memory_space<vmem>>, %arg14: memref<2x1x32xf32, #tpu.memory_space<vmem>>, %arg15: memref<1x32xf32, #tpu.memory_space<vmem>>, %arg16: memref<1x32xf32, #tpu.memory_space<vmem>>, %arg17: memref<32x128xf32, #tpu.memory_space<vmem>>, %arg18: memref<1x128xf32, #tpu.memory_space<vmem>>, %arg19: memref<1x2x128xf32, #tpu.memory_space<vmem>>) attributes {dimension_semantics = [#tpu.dimension_semantics<parallel>], iteration_bounds = array<i64: 1>, scalar_prefetch = 0 : i64, scratch_operands = 0 : i64, tpu.core_type = #tpu.core_type<tc>, window_params = [{transform_indices = @transform_0, window_bounds = array<i64: 1, 32, 49>}, {pipeline_mode = #tpu.pipeline_mode<synchronous>, transform_indices = @transform_1, window_bounds = array<i64: 49, 32>}, {pipeline_mode = #tpu.pipeline_mode<synchronous>, transform_indices = @transform_2, window_bounds = array<i64: 2, 32, 16>}, {pipeline_mode = #tpu.pipeline_mode<synchronous>, transform_indices = @transform_3, window_bounds = array<i64: 2, 32, 1>}, {pipeline_mode = #tpu.pipeline_mode<synchronous>, transform_indices = @transform_4, window_bounds = array<i64: 2, 16, 32>}, {pipeline_mode = #tpu.pipeline_mode<synchronous>, transform_indices = @transform_5, window_bounds = array<i64: 2, 16, 1>}, {pipeline_mode = #tpu.pipeline_mode<synchronous>, transform_indices = @transform_6, window_bounds = array<i64: 2, 1, 32>}, {pipeline_mode = #tpu.pipeline_mode<synchronous>, transform_indices = @transform_7, window_bounds = array<i64: 2, 1, 32>}, {pipeline_mode = #tpu.pipeline_mode<synchronous>, transform_indices = @transform_8, window_bounds = array<i64: 2, 1, 32>}, {pipeline_mode = #tpu.pipeline_mode<synchronous>, transform_indices = @transform_9, window_bounds = array<i64: 2, 1, 32>}, {pipeline_mode = #tpu.pipeline_mode<synchronous>, transform_indices = @transform_10, window_bounds = array<i64: 2, 32, 32>}, {pipeline_mode = #tpu.pipeline_mode<synchronous>, transform_indices = @transform_11, window_bounds = array<i64: 2, 1, 32>}, {pipeline_mode = #tpu.pipeline_mode<synchronous>, transform_indices = @transform_12, window_bounds = array<i64: 2, 32, 32>}, {pipeline_mode = #tpu.pipeline_mode<synchronous>, transform_indices = @transform_13, window_bounds = array<i64: 2, 1, 32>}, {pipeline_mode = #tpu.pipeline_mode<synchronous>, transform_indices = @transform_14, window_bounds = array<i64: 1, 32>}, {pipeline_mode = #tpu.pipeline_mode<synchronous>, transform_indices = @transform_15, window_bounds = array<i64: 1, 32>}, {pipeline_mode = #tpu.pipeline_mode<synchronous>, transform_indices = @transform_16, window_bounds = array<i64: 32, 128>}, {pipeline_mode = #tpu.pipeline_mode<synchronous>, transform_indices = @transform_17, window_bounds = array<i64: 1, 128>}, {transform_indices = @transform_18, window_bounds = array<i64: 1, 2, 128>}]} {
    %c0 = arith.constant 0 : index
    %c0_0 = arith.constant 0 : index
    %c0_1 = arith.constant 0 : index
    %0 = vector.load %arg1[%c0, %c0_0, %c0_1] : memref<1x32x49xf32, #tpu.memory_space<vmem>>, vector<1x32x49xf32>
    %1 = vector.shape_cast %0 : vector<1x32x49xf32> to vector<32x49xf32>
    %c0_2 = arith.constant 0 : index
    %c0_3 = arith.constant 0 : index
    %2 = vector.load %arg2[%c0_2, %c0_3] : memref<49x32xf32, #tpu.memory_space<vmem>>, vector<49x32xf32>
    %cst = arith.constant dense<0.000000e+00> : vector<32x32xf32>
    %3 = tpu.matmul %1, %2, %cst {dimension_numbers = #tpu.dot_dimension_numbers<[1], [0], [0], [1], [0, 0, 1, 1], [], []>} : vector<32x49xf32>, vector<49x32xf32>, vector<32x32xf32> -> vector<32x32xf32>
    %c0_4 = arith.constant 0 : index
    %c0_5 = arith.constant 0 : index
    %c0_6 = arith.constant 0 : index
    %4 = vector.load %arg7[%c0_4, %c0_5, %c0_6] : memref<2x1x32xf32, #tpu.memory_space<vmem>>, vector<1x1x32xf32>
    %5 = vector.shape_cast %4 : vector<1x1x32xf32> to vector<1x32xf32>
    %c0_7 = arith.constant 0 : index
    %c0_8 = arith.constant 0 : index
    %c0_9 = arith.constant 0 : index
    %6 = vector.load %arg8[%c0_7, %c0_8, %c0_9] : memref<2x1x32xf32, #tpu.memory_space<vmem>>, vector<1x1x32xf32>
    %7 = vector.shape_cast %6 : vector<1x1x32xf32> to vector<1x32xf32>
    %cst_10 = arith.constant dense<0.000000e+00> : vector<32xf32>
    %8 = vector.multi_reduction <add>, %3, %cst_10 [1] : vector<32x32xf32> to vector<32xf32>
    %9 = vector.shape_cast %8 : vector<32xf32> to vector<32x1xf32>
    %cst_11 = arith.constant 3.200000e+01 : f32
    %10 = vector.broadcast %cst_11 : f32 to vector<32x1xf32>
    %11 = arith.divf %9, %10 : vector<32x1xf32>
    %12 = arith.mulf %3, %3 : vector<32x32xf32>
    %cst_12 = arith.constant dense<0.000000e+00> : vector<32xf32>
    %13 = vector.multi_reduction <add>, %12, %cst_12 [1] : vector<32x32xf32> to vector<32xf32>
    %14 = vector.shape_cast %13 : vector<32xf32> to vector<32x1xf32>
    %cst_13 = arith.constant 3.200000e+01 : f32
    %15 = vector.broadcast %cst_13 : f32 to vector<32x1xf32>
    %16 = arith.divf %14, %15 : vector<32x1xf32>
    %17 = arith.mulf %11, %11 : vector<32x1xf32>
    %18 = arith.subf %16, %17 : vector<32x1xf32>
    %cst_14 = arith.constant 9.99999974E-6 : f32
    %19 = vector.broadcast %cst_14 : f32 to vector<32x1xf32>
    %20 = arith.addf %18, %19 : vector<32x1xf32>
    %21 = math.rsqrt %20 : vector<32x1xf32>
    %22 = vector.broadcast %11 : vector<32x1xf32> to vector<32x32xf32>
    %23 = arith.subf %3, %22 : vector<32x32xf32>
    %24 = vector.broadcast %5 : vector<1x32xf32> to vector<32x32xf32>
    %25 = vector.broadcast %21 : vector<32x1xf32> to vector<32x32xf32>
    %26 = arith.mulf %24, %25 : vector<32x32xf32>
    %27 = arith.mulf %23, %26 : vector<32x32xf32>
    %28 = vector.broadcast %7 : vector<1x32xf32> to vector<32x32xf32>
    %29 = arith.addf %27, %28 : vector<32x32xf32>
    %c0_15 = arith.constant 0 : index
    %c0_16 = arith.constant 0 : index
    %c0_17 = arith.constant 0 : index
    %30 = vector.load %arg3[%c0_15, %c0_16, %c0_17] : memref<2x32x16xf32, #tpu.memory_space<vmem>>, vector<1x32x16xf32>
    %31 = vector.shape_cast %30 : vector<1x32x16xf32> to vector<32x16xf32>
    %c0_18 = arith.constant 0 : index
    %c0_19 = arith.constant 0 : index
    %c0_20 = arith.constant 0 : index
    %32 = vector.load %arg4[%c0_18, %c0_19, %c0_20] : memref<2x32x1xf32, #tpu.memory_space<vmem>>, vector<1x32x1xf32>
    %33 = vector.shape_cast %32 : vector<1x32x1xf32> to vector<32x1xf32>
    %c0_21 = arith.constant 0 : index
    %c0_22 = arith.constant 0 : index
    %c0_23 = arith.constant 0 : index
    %34 = vector.load %arg5[%c0_21, %c0_22, %c0_23] : memref<2x16x32xf32, #tpu.memory_space<vmem>>, vector<1x16x32xf32>
    %35 = vector.shape_cast %34 : vector<1x16x32xf32> to vector<16x32xf32>
    %c0_24 = arith.constant 0 : index
    %c0_25 = arith.constant 0 : index
    %c0_26 = arith.constant 0 : index
    %36 = vector.load %arg6[%c0_24, %c0_25, %c0_26] : memref<2x16x1xf32, #tpu.memory_space<vmem>>, vector<1x16x1xf32>
    %37 = vector.shape_cast %36 : vector<1x16x1xf32> to vector<16x1xf32>
    %38 = vector.extract_strided_slice %29 {offsets = [0, 0], sizes = [16, 32], strides = [1, 1]} : vector<32x32xf32> to vector<16x32xf32>
    %cst_27 = arith.constant dense<0.000000e+00> : vector<32x32xf32>
    %39 = tpu.matmul %31, %38, %cst_27 {dimension_numbers = #tpu.dot_dimension_numbers<[1], [0], [0], [1], [0, 0, 1, 1], [], []>} : vector<32x16xf32>, vector<16x32xf32>, vector<32x32xf32> -> vector<32x32xf32>
    %40 = vector.broadcast %33 : vector<32x1xf32> to vector<32x32xf32>
    %41 = arith.addf %39, %40 : vector<32x32xf32>
    %cst_28 = arith.constant 5.000000e-01 : f32
    %42 = vector.broadcast %cst_28 : f32 to vector<32x32xf32>
    %43 = arith.mulf %42, %41 : vector<32x32xf32>
    %cst_29 = arith.constant 0.707106769 : f32
    %44 = vector.broadcast %cst_29 : f32 to vector<32x32xf32>
    %45 = arith.mulf %41, %44 : vector<32x32xf32>
    %cst_30 = arith.constant -4.000000e+00 : f32
    %cst_31 = arith.constant 4.000000e+00 : f32
    %46 = vector.broadcast %cst_30 : f32 to vector<32x32xf32>
    %47 = arith.maximumf %46, %45 : vector<32x32xf32>
    %48 = vector.broadcast %cst_31 : f32 to vector<32x32xf32>
    %49 = arith.minimumf %48, %47 : vector<32x32xf32>
    %50 = arith.mulf %49, %49 : vector<32x32xf32>
    %cst_32 = arith.constant -2.72614237E-10 : f32
    %51 = vector.broadcast %cst_32 : f32 to vector<32x32xf32>
    %52 = arith.mulf %51, %50 : vector<32x32xf32>
    %cst_33 = arith.constant 2.77068146E-8 : f32
    %53 = vector.broadcast %cst_33 : f32 to vector<32x32xf32>
    %54 = arith.addf %52, %53 : vector<32x32xf32>
    %55 = arith.mulf %54, %50 : vector<32x32xf32>
    %cst_34 = arith.constant -2.10102394E-6 : f32
    %56 = vector.broadcast %cst_34 : f32 to vector<32x32xf32>
    %57 = arith.addf %55, %56 : vector<32x32xf32>
    %58 = arith.mulf %57, %50 : vector<32x32xf32>
    %cst_35 = arith.constant -5.69250624E-5 : f32
    %59 = vector.broadcast %cst_35 : f32 to vector<32x32xf32>
    %60 = arith.addf %58, %59 : vector<32x32xf32>
    %61 = arith.mulf %60, %50 : vector<32x32xf32>
    %cst_36 = arith.constant -7.34990637E-4 : f32
    %62 = vector.broadcast %cst_36 : f32 to vector<32x32xf32>
    %63 = arith.addf %61, %62 : vector<32x32xf32>
    %64 = arith.mulf %63, %50 : vector<32x32xf32>
    %cst_37 = arith.constant -2.954600e-03 : f32
    %65 = vector.broadcast %cst_37 : f32 to vector<32x32xf32>
    %66 = arith.addf %64, %65 : vector<32x32xf32>
    %67 = arith.mulf %66, %50 : vector<32x32xf32>
    %cst_38 = arith.constant -0.0160960332 : f32
    %68 = vector.broadcast %cst_38 : f32 to vector<32x32xf32>
    %69 = arith.addf %67, %68 : vector<32x32xf32>
    %70 = arith.mulf %69, %49 : vector<32x32xf32>
    %cst_39 = arith.constant -1.45660715E-5 : f32
    %71 = vector.broadcast %cst_39 : f32 to vector<32x32xf32>
    %72 = arith.mulf %71, %50 : vector<32x32xf32>
    %cst_40 = arith.constant -2.13374049E-4 : f32
    %73 = vector.broadcast %cst_40 : f32 to vector<32x32xf32>
    %74 = arith.addf %72, %73 : vector<32x32xf32>
    %75 = arith.mulf %74, %50 : vector<32x32xf32>
    %cst_41 = arith.constant -0.00168282702 : f32
    %76 = vector.broadcast %cst_41 : f32 to vector<32x32xf32>
    %77 = arith.addf %75, %76 : vector<32x32xf32>
    %78 = arith.mulf %77, %50 : vector<32x32xf32>
    %cst_42 = arith.constant -0.00737332925 : f32
    %79 = vector.broadcast %cst_42 : f32 to vector<32x32xf32>
    %80 = arith.addf %78, %79 : vector<32x32xf32>
    %81 = arith.mulf %80, %50 : vector<32x32xf32>
    %cst_43 = arith.constant -0.0142647391 : f32
    %82 = vector.broadcast %cst_43 : f32 to vector<32x32xf32>
    %83 = arith.addf %81, %82 : vector<32x32xf32>
    %84 = tpu.reciprocal %83 {approx = true} : vector<32x32xf32> -> vector<32x32xf32>
    %85 = arith.mulf %83, %84 : vector<32x32xf32>
    %cst_44 = arith.constant 2.000000e+00 : f32
    %86 = vector.broadcast %cst_44 : f32 to vector<32x32xf32>
    %87 = arith.subf %86, %85 : vector<32x32xf32>
    %88 = arith.mulf %84, %87 : vector<32x32xf32>
    %89 = arith.mulf %70, %88 : vector<32x32xf32>
    %cst_45 = arith.constant 1.000000e+00 : f32
    %90 = vector.broadcast %cst_45 : f32 to vector<32x32xf32>
    %91 = arith.addf %90, %89 : vector<32x32xf32>
    %92 = arith.mulf %43, %91 : vector<32x32xf32>
    %cst_46 = arith.constant dense<0.000000e+00> : vector<16x32xf32>
    %93 = tpu.matmul %35, %92, %cst_46 {dimension_numbers = #tpu.dot_dimension_numbers<[1], [0], [0], [1], [0, 0, 1, 1], [], []>} : vector<16x32xf32>, vector<32x32xf32>, vector<16x32xf32> -> vector<16x32xf32>
    %94 = vector.broadcast %37 : vector<16x1xf32> to vector<16x32xf32>
    %95 = arith.addf %93, %94 : vector<16x32xf32>
    %cst_47 = arith.constant 5.000000e-01 : f32
    %96 = vector.broadcast %cst_47 : f32 to vector<16x32xf32>
    %97 = arith.mulf %96, %95 : vector<16x32xf32>
    %cst_48 = arith.constant 0.707106769 : f32
    %98 = vector.broadcast %cst_48 : f32 to vector<16x32xf32>
    %99 = arith.mulf %95, %98 : vector<16x32xf32>
    %cst_49 = arith.constant -4.000000e+00 : f32
    %cst_50 = arith.constant 4.000000e+00 : f32
    %100 = vector.broadcast %cst_49 : f32 to vector<16x32xf32>
    %101 = arith.maximumf %100, %99 : vector<16x32xf32>
    %102 = vector.broadcast %cst_50 : f32 to vector<16x32xf32>
    %103 = arith.minimumf %102, %101 : vector<16x32xf32>
    %104 = arith.mulf %103, %103 : vector<16x32xf32>
    %cst_51 = arith.constant -2.72614237E-10 : f32
    %105 = vector.broadcast %cst_51 : f32 to vector<16x32xf32>
    %106 = arith.mulf %105, %104 : vector<16x32xf32>
    %cst_52 = arith.constant 2.77068146E-8 : f32
    %107 = vector.broadcast %cst_52 : f32 to vector<16x32xf32>
    %108 = arith.addf %106, %107 : vector<16x32xf32>
    %109 = arith.mulf %108, %104 : vector<16x32xf32>
    %cst_53 = arith.constant -2.10102394E-6 : f32
    %110 = vector.broadcast %cst_53 : f32 to vector<16x32xf32>
    %111 = arith.addf %109, %110 : vector<16x32xf32>
    %112 = arith.mulf %111, %104 : vector<16x32xf32>
    %cst_54 = arith.constant -5.69250624E-5 : f32
    %113 = vector.broadcast %cst_54 : f32 to vector<16x32xf32>
    %114 = arith.addf %112, %113 : vector<16x32xf32>
    %115 = arith.mulf %114, %104 : vector<16x32xf32>
    %cst_55 = arith.constant -7.34990637E-4 : f32
    %116 = vector.broadcast %cst_55 : f32 to vector<16x32xf32>
    %117 = arith.addf %115, %116 : vector<16x32xf32>
    %118 = arith.mulf %117, %104 : vector<16x32xf32>
    %cst_56 = arith.constant -2.954600e-03 : f32
    %119 = vector.broadcast %cst_56 : f32 to vector<16x32xf32>
    %120 = arith.addf %118, %119 : vector<16x32xf32>
    %121 = arith.mulf %120, %104 : vector<16x32xf32>
    %cst_57 = arith.constant -0.0160960332 : f32
    %122 = vector.broadcast %cst_57 : f32 to vector<16x32xf32>
    %123 = arith.addf %121, %122 : vector<16x32xf32>
    %124 = arith.mulf %123, %103 : vector<16x32xf32>
    %cst_58 = arith.constant -1.45660715E-5 : f32
    %125 = vector.broadcast %cst_58 : f32 to vector<16x32xf32>
    %126 = arith.mulf %125, %104 : vector<16x32xf32>
    %cst_59 = arith.constant -2.13374049E-4 : f32
    %127 = vector.broadcast %cst_59 : f32 to vector<16x32xf32>
    %128 = arith.addf %126, %127 : vector<16x32xf32>
    %129 = arith.mulf %128, %104 : vector<16x32xf32>
    %cst_60 = arith.constant -0.00168282702 : f32
    %130 = vector.broadcast %cst_60 : f32 to vector<16x32xf32>
    %131 = arith.addf %129, %130 : vector<16x32xf32>
    %132 = arith.mulf %131, %104 : vector<16x32xf32>
    %cst_61 = arith.constant -0.00737332925 : f32
    %133 = vector.broadcast %cst_61 : f32 to vector<16x32xf32>
    %134 = arith.addf %132, %133 : vector<16x32xf32>
    %135 = arith.mulf %134, %104 : vector<16x32xf32>
    %cst_62 = arith.constant -0.0142647391 : f32
    %136 = vector.broadcast %cst_62 : f32 to vector<16x32xf32>
    %137 = arith.addf %135, %136 : vector<16x32xf32>
    %138 = tpu.reciprocal %137 {approx = true} : vector<16x32xf32> -> vector<16x32xf32>
    %139 = arith.mulf %137, %138 : vector<16x32xf32>
    %cst_63 = arith.constant 2.000000e+00 : f32
    %140 = vector.broadcast %cst_63 : f32 to vector<16x32xf32>
    %141 = arith.subf %140, %139 : vector<16x32xf32>
    %142 = arith.mulf %138, %141 : vector<16x32xf32>
    %143 = arith.mulf %124, %142 : vector<16x32xf32>
    %cst_64 = arith.constant 1.000000e+00 : f32
    %144 = vector.broadcast %cst_64 : f32 to vector<16x32xf32>
    %145 = arith.addf %144, %143 : vector<16x32xf32>
    %146 = arith.mulf %97, %145 : vector<16x32xf32>
    %147 = vector.extract_strided_slice %29 {offsets = [16, 0], sizes = [16, 32], strides = [1, 1]} : vector<32x32xf32> to vector<16x32xf32>
    %cst_65 = arith.constant dense<0.000000e+00> : vector<32x32xf32>
    %148 = tpu.matmul %31, %147, %cst_65 {dimension_numbers = #tpu.dot_dimension_numbers<[1], [0], [0], [1], [0, 0, 1, 1], [], []>} : vector<32x16xf32>, vector<16x32xf32>, vector<32x32xf32> -> vector<32x32xf32>
    %149 = vector.broadcast %33 : vector<32x1xf32> to vector<32x32xf32>
    %150 = arith.addf %148, %149 : vector<32x32xf32>
    %cst_66 = arith.constant 5.000000e-01 : f32
    %151 = vector.broadcast %cst_66 : f32 to vector<32x32xf32>
    %152 = arith.mulf %151, %150 : vector<32x32xf32>
    %cst_67 = arith.constant 0.707106769 : f32
    %153 = vector.broadcast %cst_67 : f32 to vector<32x32xf32>
    %154 = arith.mulf %150, %153 : vector<32x32xf32>
    %cst_68 = arith.constant -4.000000e+00 : f32
    %cst_69 = arith.constant 4.000000e+00 : f32
    %155 = vector.broadcast %cst_68 : f32 to vector<32x32xf32>
    %156 = arith.maximumf %155, %154 : vector<32x32xf32>
    %157 = vector.broadcast %cst_69 : f32 to vector<32x32xf32>
    %158 = arith.minimumf %157, %156 : vector<32x32xf32>
    %159 = arith.mulf %158, %158 : vector<32x32xf32>
    %cst_70 = arith.constant -2.72614237E-10 : f32
    %160 = vector.broadcast %cst_70 : f32 to vector<32x32xf32>
    %161 = arith.mulf %160, %159 : vector<32x32xf32>
    %cst_71 = arith.constant 2.77068146E-8 : f32
    %162 = vector.broadcast %cst_71 : f32 to vector<32x32xf32>
    %163 = arith.addf %161, %162 : vector<32x32xf32>
    %164 = arith.mulf %163, %159 : vector<32x32xf32>
    %cst_72 = arith.constant -2.10102394E-6 : f32
    %165 = vector.broadcast %cst_72 : f32 to vector<32x32xf32>
    %166 = arith.addf %164, %165 : vector<32x32xf32>
    %167 = arith.mulf %166, %159 : vector<32x32xf32>
    %cst_73 = arith.constant -5.69250624E-5 : f32
    %168 = vector.broadcast %cst_73 : f32 to vector<32x32xf32>
    %169 = arith.addf %167, %168 : vector<32x32xf32>
    %170 = arith.mulf %169, %159 : vector<32x32xf32>
    %cst_74 = arith.constant -7.34990637E-4 : f32
    %171 = vector.broadcast %cst_74 : f32 to vector<32x32xf32>
    %172 = arith.addf %170, %171 : vector<32x32xf32>
    %173 = arith.mulf %172, %159 : vector<32x32xf32>
    %cst_75 = arith.constant -2.954600e-03 : f32
    %174 = vector.broadcast %cst_75 : f32 to vector<32x32xf32>
    %175 = arith.addf %173, %174 : vector<32x32xf32>
    %176 = arith.mulf %175, %159 : vector<32x32xf32>
    %cst_76 = arith.constant -0.0160960332 : f32
    %177 = vector.broadcast %cst_76 : f32 to vector<32x32xf32>
    %178 = arith.addf %176, %177 : vector<32x32xf32>
    %179 = arith.mulf %178, %158 : vector<32x32xf32>
    %cst_77 = arith.constant -1.45660715E-5 : f32
    %180 = vector.broadcast %cst_77 : f32 to vector<32x32xf32>
    %181 = arith.mulf %180, %159 : vector<32x32xf32>
    %cst_78 = arith.constant -2.13374049E-4 : f32
    %182 = vector.broadcast %cst_78 : f32 to vector<32x32xf32>
    %183 = arith.addf %181, %182 : vector<32x32xf32>
    %184 = arith.mulf %183, %159 : vector<32x32xf32>
    %cst_79 = arith.constant -0.00168282702 : f32
    %185 = vector.broadcast %cst_79 : f32 to vector<32x32xf32>
    %186 = arith.addf %184, %185 : vector<32x32xf32>
    %187 = arith.mulf %186, %159 : vector<32x32xf32>
    %cst_80 = arith.constant -0.00737332925 : f32
    %188 = vector.broadcast %cst_80 : f32 to vector<32x32xf32>
    %189 = arith.addf %187, %188 : vector<32x32xf32>
    %190 = arith.mulf %189, %159 : vector<32x32xf32>
    %cst_81 = arith.constant -0.0142647391 : f32
    %191 = vector.broadcast %cst_81 : f32 to vector<32x32xf32>
    %192 = arith.addf %190, %191 : vector<32x32xf32>
    %193 = tpu.reciprocal %192 {approx = true} : vector<32x32xf32> -> vector<32x32xf32>
    %194 = arith.mulf %192, %193 : vector<32x32xf32>
    %cst_82 = arith.constant 2.000000e+00 : f32
    %195 = vector.broadcast %cst_82 : f32 to vector<32x32xf32>
    %196 = arith.subf %195, %194 : vector<32x32xf32>
    %197 = arith.mulf %193, %196 : vector<32x32xf32>
    %198 = arith.mulf %179, %197 : vector<32x32xf32>
    %cst_83 = arith.constant 1.000000e+00 : f32
    %199 = vector.broadcast %cst_83 : f32 to vector<32x32xf32>
    %200 = arith.addf %199, %198 : vector<32x32xf32>
    %201 = arith.mulf %152, %200 : vector<32x32xf32>
    %cst_84 = arith.constant dense<0.000000e+00> : vector<16x32xf32>
    %202 = tpu.matmul %35, %201, %cst_84 {dimension_numbers = #tpu.dot_dimension_numbers<[1], [0], [0], [1], [0, 0, 1, 1], [], []>} : vector<16x32xf32>, vector<32x32xf32>, vector<16x32xf32> -> vector<16x32xf32>
    %203 = vector.broadcast %37 : vector<16x1xf32> to vector<16x32xf32>
    %204 = arith.addf %202, %203 : vector<16x32xf32>
    %cst_85 = arith.constant 5.000000e-01 : f32
    %205 = vector.broadcast %cst_85 : f32 to vector<16x32xf32>
    %206 = arith.mulf %205, %204 : vector<16x32xf32>
    %cst_86 = arith.constant 0.707106769 : f32
    %207 = vector.broadcast %cst_86 : f32 to vector<16x32xf32>
    %208 = arith.mulf %204, %207 : vector<16x32xf32>
    %cst_87 = arith.constant -4.000000e+00 : f32
    %cst_88 = arith.constant 4.000000e+00 : f32
    %209 = vector.broadcast %cst_87 : f32 to vector<16x32xf32>
    %210 = arith.maximumf %209, %208 : vector<16x32xf32>
    %211 = vector.broadcast %cst_88 : f32 to vector<16x32xf32>
    %212 = arith.minimumf %211, %210 : vector<16x32xf32>
    %213 = arith.mulf %212, %212 : vector<16x32xf32>
    %cst_89 = arith.constant -2.72614237E-10 : f32
    %214 = vector.broadcast %cst_89 : f32 to vector<16x32xf32>
    %215 = arith.mulf %214, %213 : vector<16x32xf32>
    %cst_90 = arith.constant 2.77068146E-8 : f32
    %216 = vector.broadcast %cst_90 : f32 to vector<16x32xf32>
    %217 = arith.addf %215, %216 : vector<16x32xf32>
    %218 = arith.mulf %217, %213 : vector<16x32xf32>
    %cst_91 = arith.constant -2.10102394E-6 : f32
    %219 = vector.broadcast %cst_91 : f32 to vector<16x32xf32>
    %220 = arith.addf %218, %219 : vector<16x32xf32>
    %221 = arith.mulf %220, %213 : vector<16x32xf32>
    %cst_92 = arith.constant -5.69250624E-5 : f32
    %222 = vector.broadcast %cst_92 : f32 to vector<16x32xf32>
    %223 = arith.addf %221, %222 : vector<16x32xf32>
    %224 = arith.mulf %223, %213 : vector<16x32xf32>
    %cst_93 = arith.constant -7.34990637E-4 : f32
    %225 = vector.broadcast %cst_93 : f32 to vector<16x32xf32>
    %226 = arith.addf %224, %225 : vector<16x32xf32>
    %227 = arith.mulf %226, %213 : vector<16x32xf32>
    %cst_94 = arith.constant -2.954600e-03 : f32
    %228 = vector.broadcast %cst_94 : f32 to vector<16x32xf32>
    %229 = arith.addf %227, %228 : vector<16x32xf32>
    %230 = arith.mulf %229, %213 : vector<16x32xf32>
    %cst_95 = arith.constant -0.0160960332 : f32
    %231 = vector.broadcast %cst_95 : f32 to vector<16x32xf32>
    %232 = arith.addf %230, %231 : vector<16x32xf32>
    %233 = arith.mulf %232, %212 : vector<16x32xf32>
    %cst_96 = arith.constant -1.45660715E-5 : f32
    %234 = vector.broadcast %cst_96 : f32 to vector<16x32xf32>
    %235 = arith.mulf %234, %213 : vector<16x32xf32>
    %cst_97 = arith.constant -2.13374049E-4 : f32
    %236 = vector.broadcast %cst_97 : f32 to vector<16x32xf32>
    %237 = arith.addf %235, %236 : vector<16x32xf32>
    %238 = arith.mulf %237, %213 : vector<16x32xf32>
    %cst_98 = arith.constant -0.00168282702 : f32
    %239 = vector.broadcast %cst_98 : f32 to vector<16x32xf32>
    %240 = arith.addf %238, %239 : vector<16x32xf32>
    %241 = arith.mulf %240, %213 : vector<16x32xf32>
    %cst_99 = arith.constant -0.00737332925 : f32
    %242 = vector.broadcast %cst_99 : f32 to vector<16x32xf32>
    %243 = arith.addf %241, %242 : vector<16x32xf32>
    %244 = arith.mulf %243, %213 : vector<16x32xf32>
    %cst_100 = arith.constant -0.0142647391 : f32
    %245 = vector.broadcast %cst_100 : f32 to vector<16x32xf32>
    %246 = arith.addf %244, %245 : vector<16x32xf32>
    %247 = tpu.reciprocal %246 {approx = true} : vector<16x32xf32> -> vector<16x32xf32>
    %248 = arith.mulf %246, %247 : vector<16x32xf32>
    %cst_101 = arith.constant 2.000000e+00 : f32
    %249 = vector.broadcast %cst_101 : f32 to vector<16x32xf32>
    %250 = arith.subf %249, %248 : vector<16x32xf32>
    %251 = arith.mulf %247, %250 : vector<16x32xf32>
    %252 = arith.mulf %233, %251 : vector<16x32xf32>
    %cst_102 = arith.constant 1.000000e+00 : f32
    %253 = vector.broadcast %cst_102 : f32 to vector<16x32xf32>
    %254 = arith.addf %253, %252 : vector<16x32xf32>
    %255 = arith.mulf %206, %254 : vector<16x32xf32>
    %256 = tpu.concatenate %146, %255 in 0 : vector<16x32xf32>, vector<16x32xf32> -> vector<32x32xf32>
    %257 = arith.addf %3, %256 : vector<32x32xf32>
    %c0_103 = arith.constant 0 : index
    %c0_104 = arith.constant 0 : index
    %c0_105 = arith.constant 0 : index
    %258 = vector.load %arg9[%c0_103, %c0_104, %c0_105] : memref<2x1x32xf32, #tpu.memory_space<vmem>>, vector<1x1x32xf32>
    %259 = vector.shape_cast %258 : vector<1x1x32xf32> to vector<1x32xf32>
    %c0_106 = arith.constant 0 : index
    %c0_107 = arith.constant 0 : index
    %c0_108 = arith.constant 0 : index
    %260 = vector.load %arg10[%c0_106, %c0_107, %c0_108] : memref<2x1x32xf32, #tpu.memory_space<vmem>>, vector<1x1x32xf32>
    %261 = vector.shape_cast %260 : vector<1x1x32xf32> to vector<1x32xf32>
    %cst_109 = arith.constant dense<0.000000e+00> : vector<32xf32>
    %262 = vector.multi_reduction <add>, %257, %cst_109 [1] : vector<32x32xf32> to vector<32xf32>
    %263 = vector.shape_cast %262 : vector<32xf32> to vector<32x1xf32>
    %cst_110 = arith.constant 3.200000e+01 : f32
    %264 = vector.broadcast %cst_110 : f32 to vector<32x1xf32>
    %265 = arith.divf %263, %264 : vector<32x1xf32>
    %266 = arith.mulf %257, %257 : vector<32x32xf32>
    %cst_111 = arith.constant dense<0.000000e+00> : vector<32xf32>
    %267 = vector.multi_reduction <add>, %266, %cst_111 [1] : vector<32x32xf32> to vector<32xf32>
    %268 = vector.shape_cast %267 : vector<32xf32> to vector<32x1xf32>
    %cst_112 = arith.constant 3.200000e+01 : f32
    %269 = vector.broadcast %cst_112 : f32 to vector<32x1xf32>
    %270 = arith.divf %268, %269 : vector<32x1xf32>
    %271 = arith.mulf %265, %265 : vector<32x1xf32>
    %272 = arith.subf %270, %271 : vector<32x1xf32>
    %cst_113 = arith.constant 9.99999974E-6 : f32
    %273 = vector.broadcast %cst_113 : f32 to vector<32x1xf32>
    %274 = arith.addf %272, %273 : vector<32x1xf32>
    %275 = math.rsqrt %274 : vector<32x1xf32>
    %276 = vector.broadcast %265 : vector<32x1xf32> to vector<32x32xf32>
    %277 = arith.subf %257, %276 : vector<32x32xf32>
    %278 = vector.broadcast %259 : vector<1x32xf32> to vector<32x32xf32>
    %279 = vector.broadcast %275 : vector<32x1xf32> to vector<32x32xf32>
    %280 = arith.mulf %278, %279 : vector<32x32xf32>
    %281 = arith.mulf %277, %280 : vector<32x32xf32>
    %282 = vector.broadcast %261 : vector<1x32xf32> to vector<32x32xf32>
    %283 = arith.addf %281, %282 : vector<32x32xf32>
    %c0_114 = arith.constant 0 : index
    %c0_115 = arith.constant 0 : index
    %c0_116 = arith.constant 0 : index
    %284 = vector.load %arg11[%c0_114, %c0_115, %c0_116] : memref<2x32x32xf32, #tpu.memory_space<vmem>>, vector<1x32x32xf32>
    %285 = vector.shape_cast %284 : vector<1x32x32xf32> to vector<32x32xf32>
    %cst_117 = arith.constant dense<0.000000e+00> : vector<32x32xf32>
    %286 = tpu.matmul %283, %285, %cst_117 {dimension_numbers = #tpu.dot_dimension_numbers<[1], [0], [0], [1], [0, 0, 1, 1], [], []>} : vector<32x32xf32>, vector<32x32xf32>, vector<32x32xf32> -> vector<32x32xf32>
    %c0_118 = arith.constant 0 : index
    %c0_119 = arith.constant 0 : index
    %c0_120 = arith.constant 0 : index
    %287 = vector.load %arg12[%c0_118, %c0_119, %c0_120] : memref<2x1x32xf32, #tpu.memory_space<vmem>>, vector<1x1x32xf32>
    %288 = vector.shape_cast %287 : vector<1x1x32xf32> to vector<1x32xf32>
    %289 = vector.broadcast %288 : vector<1x32xf32> to vector<32x32xf32>
    %290 = arith.addf %286, %289 : vector<32x32xf32>
    %cst_121 = arith.constant 5.000000e-01 : f32
    %291 = vector.broadcast %cst_121 : f32 to vector<32x32xf32>
    %292 = arith.mulf %291, %290 : vector<32x32xf32>
    %cst_122 = arith.constant 0.707106769 : f32
    %293 = vector.broadcast %cst_122 : f32 to vector<32x32xf32>
    %294 = arith.mulf %290, %293 : vector<32x32xf32>
    %cst_123 = arith.constant -4.000000e+00 : f32
    %cst_124 = arith.constant 4.000000e+00 : f32
    %295 = vector.broadcast %cst_123 : f32 to vector<32x32xf32>
    %296 = arith.maximumf %295, %294 : vector<32x32xf32>
    %297 = vector.broadcast %cst_124 : f32 to vector<32x32xf32>
    %298 = arith.minimumf %297, %296 : vector<32x32xf32>
    %299 = arith.mulf %298, %298 : vector<32x32xf32>
    %cst_125 = arith.constant -2.72614237E-10 : f32
    %300 = vector.broadcast %cst_125 : f32 to vector<32x32xf32>
    %301 = arith.mulf %300, %299 : vector<32x32xf32>
    %cst_126 = arith.constant 2.77068146E-8 : f32
    %302 = vector.broadcast %cst_126 : f32 to vector<32x32xf32>
    %303 = arith.addf %301, %302 : vector<32x32xf32>
    %304 = arith.mulf %303, %299 : vector<32x32xf32>
    %cst_127 = arith.constant -2.10102394E-6 : f32
    %305 = vector.broadcast %cst_127 : f32 to vector<32x32xf32>
    %306 = arith.addf %304, %305 : vector<32x32xf32>
    %307 = arith.mulf %306, %299 : vector<32x32xf32>
    %cst_128 = arith.constant -5.69250624E-5 : f32
    %308 = vector.broadcast %cst_128 : f32 to vector<32x32xf32>
    %309 = arith.addf %307, %308 : vector<32x32xf32>
    %310 = arith.mulf %309, %299 : vector<32x32xf32>
    %cst_129 = arith.constant -7.34990637E-4 : f32
    %311 = vector.broadcast %cst_129 : f32 to vector<32x32xf32>
    %312 = arith.addf %310, %311 : vector<32x32xf32>
    %313 = arith.mulf %312, %299 : vector<32x32xf32>
    %cst_130 = arith.constant -2.954600e-03 : f32
    %314 = vector.broadcast %cst_130 : f32 to vector<32x32xf32>
    %315 = arith.addf %313, %314 : vector<32x32xf32>
    %316 = arith.mulf %315, %299 : vector<32x32xf32>
    %cst_131 = arith.constant -0.0160960332 : f32
    %317 = vector.broadcast %cst_131 : f32 to vector<32x32xf32>
    %318 = arith.addf %316, %317 : vector<32x32xf32>
    %319 = arith.mulf %318, %298 : vector<32x32xf32>
    %cst_132 = arith.constant -1.45660715E-5 : f32
    %320 = vector.broadcast %cst_132 : f32 to vector<32x32xf32>
    %321 = arith.mulf %320, %299 : vector<32x32xf32>
    %cst_133 = arith.constant -2.13374049E-4 : f32
    %322 = vector.broadcast %cst_133 : f32 to vector<32x32xf32>
    %323 = arith.addf %321, %322 : vector<32x32xf32>
    %324 = arith.mulf %323, %299 : vector<32x32xf32>
    %cst_134 = arith.constant -0.00168282702 : f32
    %325 = vector.broadcast %cst_134 : f32 to vector<32x32xf32>
    %326 = arith.addf %324, %325 : vector<32x32xf32>
    %327 = arith.mulf %326, %299 : vector<32x32xf32>
    %cst_135 = arith.constant -0.00737332925 : f32
    %328 = vector.broadcast %cst_135 : f32 to vector<32x32xf32>
    %329 = arith.addf %327, %328 : vector<32x32xf32>
    %330 = arith.mulf %329, %299 : vector<32x32xf32>
    %cst_136 = arith.constant -0.0142647391 : f32
    %331 = vector.broadcast %cst_136 : f32 to vector<32x32xf32>
    %332 = arith.addf %330, %331 : vector<32x32xf32>
    %333 = tpu.reciprocal %332 {approx = true} : vector<32x32xf32> -> vector<32x32xf32>
    %334 = arith.mulf %332, %333 : vector<32x32xf32>
    %cst_137 = arith.constant 2.000000e+00 : f32
    %335 = vector.broadcast %cst_137 : f32 to vector<32x32xf32>
    %336 = arith.subf %335, %334 : vector<32x32xf32>
    %337 = arith.mulf %333, %336 : vector<32x32xf32>
    %338 = arith.mulf %319, %337 : vector<32x32xf32>
    %cst_138 = arith.constant 1.000000e+00 : f32
    %339 = vector.broadcast %cst_138 : f32 to vector<32x32xf32>
    %340 = arith.addf %339, %338 : vector<32x32xf32>
    %341 = arith.mulf %292, %340 : vector<32x32xf32>
    %c0_139 = arith.constant 0 : index
    %c0_140 = arith.constant 0 : index
    %c0_141 = arith.constant 0 : index
    %342 = vector.load %arg13[%c0_139, %c0_140, %c0_141] : memref<2x32x32xf32, #tpu.memory_space<vmem>>, vector<1x32x32xf32>
    %343 = vector.shape_cast %342 : vector<1x32x32xf32> to vector<32x32xf32>
    %cst_142 = arith.constant dense<0.000000e+00> : vector<32x32xf32>
    %344 = tpu.matmul %341, %343, %cst_142 {dimension_numbers = #tpu.dot_dimension_numbers<[1], [0], [0], [1], [0, 0, 1, 1], [], []>} : vector<32x32xf32>, vector<32x32xf32>, vector<32x32xf32> -> vector<32x32xf32>
    %c0_143 = arith.constant 0 : index
    %c0_144 = arith.constant 0 : index
    %c0_145 = arith.constant 0 : index
    %345 = vector.load %arg14[%c0_143, %c0_144, %c0_145] : memref<2x1x32xf32, #tpu.memory_space<vmem>>, vector<1x1x32xf32>
    %346 = vector.shape_cast %345 : vector<1x1x32xf32> to vector<1x32xf32>
    %347 = vector.broadcast %346 : vector<1x32xf32> to vector<32x32xf32>
    %348 = arith.addf %344, %347 : vector<32x32xf32>
    %cst_146 = arith.constant 5.000000e-01 : f32
    %349 = vector.broadcast %cst_146 : f32 to vector<32x32xf32>
    %350 = arith.mulf %349, %348 : vector<32x32xf32>
    %cst_147 = arith.constant 0.707106769 : f32
    %351 = vector.broadcast %cst_147 : f32 to vector<32x32xf32>
    %352 = arith.mulf %348, %351 : vector<32x32xf32>
    %cst_148 = arith.constant -4.000000e+00 : f32
    %cst_149 = arith.constant 4.000000e+00 : f32
    %353 = vector.broadcast %cst_148 : f32 to vector<32x32xf32>
    %354 = arith.maximumf %353, %352 : vector<32x32xf32>
    %355 = vector.broadcast %cst_149 : f32 to vector<32x32xf32>
    %356 = arith.minimumf %355, %354 : vector<32x32xf32>
    %357 = arith.mulf %356, %356 : vector<32x32xf32>
    %cst_150 = arith.constant -2.72614237E-10 : f32
    %358 = vector.broadcast %cst_150 : f32 to vector<32x32xf32>
    %359 = arith.mulf %358, %357 : vector<32x32xf32>
    %cst_151 = arith.constant 2.77068146E-8 : f32
    %360 = vector.broadcast %cst_151 : f32 to vector<32x32xf32>
    %361 = arith.addf %359, %360 : vector<32x32xf32>
    %362 = arith.mulf %361, %357 : vector<32x32xf32>
    %cst_152 = arith.constant -2.10102394E-6 : f32
    %363 = vector.broadcast %cst_152 : f32 to vector<32x32xf32>
    %364 = arith.addf %362, %363 : vector<32x32xf32>
    %365 = arith.mulf %364, %357 : vector<32x32xf32>
    %cst_153 = arith.constant -5.69250624E-5 : f32
    %366 = vector.broadcast %cst_153 : f32 to vector<32x32xf32>
    %367 = arith.addf %365, %366 : vector<32x32xf32>
    %368 = arith.mulf %367, %357 : vector<32x32xf32>
    %cst_154 = arith.constant -7.34990637E-4 : f32
    %369 = vector.broadcast %cst_154 : f32 to vector<32x32xf32>
    %370 = arith.addf %368, %369 : vector<32x32xf32>
    %371 = arith.mulf %370, %357 : vector<32x32xf32>
    %cst_155 = arith.constant -2.954600e-03 : f32
    %372 = vector.broadcast %cst_155 : f32 to vector<32x32xf32>
    %373 = arith.addf %371, %372 : vector<32x32xf32>
    %374 = arith.mulf %373, %357 : vector<32x32xf32>
    %cst_156 = arith.constant -0.0160960332 : f32
    %375 = vector.broadcast %cst_156 : f32 to vector<32x32xf32>
    %376 = arith.addf %374, %375 : vector<32x32xf32>
    %377 = arith.mulf %376, %356 : vector<32x32xf32>
    %cst_157 = arith.constant -1.45660715E-5 : f32
    %378 = vector.broadcast %cst_157 : f32 to vector<32x32xf32>
    %379 = arith.mulf %378, %357 : vector<32x32xf32>
    %cst_158 = arith.constant -2.13374049E-4 : f32
    %380 = vector.broadcast %cst_158 : f32 to vector<32x32xf32>
    %381 = arith.addf %379, %380 : vector<32x32xf32>
    %382 = arith.mulf %381, %357 : vector<32x32xf32>
    %cst_159 = arith.constant -0.00168282702 : f32
    %383 = vector.broadcast %cst_159 : f32 to vector<32x32xf32>
    %384 = arith.addf %382, %383 : vector<32x32xf32>
    %385 = arith.mulf %384, %357 : vector<32x32xf32>
    %cst_160 = arith.constant -0.00737332925 : f32
    %386 = vector.broadcast %cst_160 : f32 to vector<32x32xf32>
    %387 = arith.addf %385, %386 : vector<32x32xf32>
    %388 = arith.mulf %387, %357 : vector<32x32xf32>
    %cst_161 = arith.constant -0.0142647391 : f32
    %389 = vector.broadcast %cst_161 : f32 to vector<32x32xf32>
    %390 = arith.addf %388, %389 : vector<32x32xf32>
    %391 = tpu.reciprocal %390 {approx = true} : vector<32x32xf32> -> vector<32x32xf32>
    %392 = arith.mulf %390, %391 : vector<32x32xf32>
    %cst_162 = arith.constant 2.000000e+00 : f32
    %393 = vector.broadcast %cst_162 : f32 to vector<32x32xf32>
    %394 = arith.subf %393, %392 : vector<32x32xf32>
    %395 = arith.mulf %391, %394 : vector<32x32xf32>
    %396 = arith.mulf %377, %395 : vector<32x32xf32>
    %cst_163 = arith.constant 1.000000e+00 : f32
    %397 = vector.broadcast %cst_163 : f32 to vector<32x32xf32>
    %398 = arith.addf %397, %396 : vector<32x32xf32>
    %399 = arith.mulf %350, %398 : vector<32x32xf32>
    %400 = arith.addf %257, %399 : vector<32x32xf32>
    %c1 = arith.constant 1 : index
    %c0_164 = arith.constant 0 : index
    %c0_165 = arith.constant 0 : index
    %401 = vector.load %arg7[%c1, %c0_164, %c0_165] : memref<2x1x32xf32, #tpu.memory_space<vmem>>, vector<1x1x32xf32>
    %402 = vector.shape_cast %401 : vector<1x1x32xf32> to vector<1x32xf32>
    %c1_166 = arith.constant 1 : index
    %c0_167 = arith.constant 0 : index
    %c0_168 = arith.constant 0 : index
    %403 = vector.load %arg8[%c1_166, %c0_167, %c0_168] : memref<2x1x32xf32, #tpu.memory_space<vmem>>, vector<1x1x32xf32>
    %404 = vector.shape_cast %403 : vector<1x1x32xf32> to vector<1x32xf32>
    %cst_169 = arith.constant dense<0.000000e+00> : vector<32xf32>
    %405 = vector.multi_reduction <add>, %400, %cst_169 [1] : vector<32x32xf32> to vector<32xf32>
    %406 = vector.shape_cast %405 : vector<32xf32> to vector<32x1xf32>
    %cst_170 = arith.constant 3.200000e+01 : f32
    %407 = vector.broadcast %cst_170 : f32 to vector<32x1xf32>
    %408 = arith.divf %406, %407 : vector<32x1xf32>
    %409 = arith.mulf %400, %400 : vector<32x32xf32>
    %cst_171 = arith.constant dense<0.000000e+00> : vector<32xf32>
    %410 = vector.multi_reduction <add>, %409, %cst_171 [1] : vector<32x32xf32> to vector<32xf32>
    %411 = vector.shape_cast %410 : vector<32xf32> to vector<32x1xf32>
    %cst_172 = arith.constant 3.200000e+01 : f32
    %412 = vector.broadcast %cst_172 : f32 to vector<32x1xf32>
    %413 = arith.divf %411, %412 : vector<32x1xf32>
    %414 = arith.mulf %408, %408 : vector<32x1xf32>
    %415 = arith.subf %413, %414 : vector<32x1xf32>
    %cst_173 = arith.constant 9.99999974E-6 : f32
    %416 = vector.broadcast %cst_173 : f32 to vector<32x1xf32>
    %417 = arith.addf %415, %416 : vector<32x1xf32>
    %418 = math.rsqrt %417 : vector<32x1xf32>
    %419 = vector.broadcast %408 : vector<32x1xf32> to vector<32x32xf32>
    %420 = arith.subf %400, %419 : vector<32x32xf32>
    %421 = vector.broadcast %402 : vector<1x32xf32> to vector<32x32xf32>
    %422 = vector.broadcast %418 : vector<32x1xf32> to vector<32x32xf32>
    %423 = arith.mulf %421, %422 : vector<32x32xf32>
    %424 = arith.mulf %420, %423 : vector<32x32xf32>
    %425 = vector.broadcast %404 : vector<1x32xf32> to vector<32x32xf32>
    %426 = arith.addf %424, %425 : vector<32x32xf32>
    %c1_174 = arith.constant 1 : index
    %c0_175 = arith.constant 0 : index
    %c0_176 = arith.constant 0 : index
    %427 = vector.load %arg3[%c1_174, %c0_175, %c0_176] : memref<2x32x16xf32, #tpu.memory_space<vmem>>, vector<1x32x16xf32>
    %428 = vector.shape_cast %427 : vector<1x32x16xf32> to vector<32x16xf32>
    %c1_177 = arith.constant 1 : index
    %c0_178 = arith.constant 0 : index
    %c0_179 = arith.constant 0 : index
    %429 = vector.load %arg4[%c1_177, %c0_178, %c0_179] : memref<2x32x1xf32, #tpu.memory_space<vmem>>, vector<1x32x1xf32>
    %430 = vector.shape_cast %429 : vector<1x32x1xf32> to vector<32x1xf32>
    %c1_180 = arith.constant 1 : index
    %c0_181 = arith.constant 0 : index
    %c0_182 = arith.constant 0 : index
    %431 = vector.load %arg5[%c1_180, %c0_181, %c0_182] : memref<2x16x32xf32, #tpu.memory_space<vmem>>, vector<1x16x32xf32>
    %432 = vector.shape_cast %431 : vector<1x16x32xf32> to vector<16x32xf32>
    %c1_183 = arith.constant 1 : index
    %c0_184 = arith.constant 0 : index
    %c0_185 = arith.constant 0 : index
    %433 = vector.load %arg6[%c1_183, %c0_184, %c0_185] : memref<2x16x1xf32, #tpu.memory_space<vmem>>, vector<1x16x1xf32>
    %434 = vector.shape_cast %433 : vector<1x16x1xf32> to vector<16x1xf32>
    %435 = vector.extract_strided_slice %426 {offsets = [0, 0], sizes = [16, 32], strides = [1, 1]} : vector<32x32xf32> to vector<16x32xf32>
    %cst_186 = arith.constant dense<0.000000e+00> : vector<32x32xf32>
    %436 = tpu.matmul %428, %435, %cst_186 {dimension_numbers = #tpu.dot_dimension_numbers<[1], [0], [0], [1], [0, 0, 1, 1], [], []>} : vector<32x16xf32>, vector<16x32xf32>, vector<32x32xf32> -> vector<32x32xf32>
    %437 = vector.broadcast %430 : vector<32x1xf32> to vector<32x32xf32>
    %438 = arith.addf %436, %437 : vector<32x32xf32>
    %cst_187 = arith.constant 5.000000e-01 : f32
    %439 = vector.broadcast %cst_187 : f32 to vector<32x32xf32>
    %440 = arith.mulf %439, %438 : vector<32x32xf32>
    %cst_188 = arith.constant 0.707106769 : f32
    %441 = vector.broadcast %cst_188 : f32 to vector<32x32xf32>
    %442 = arith.mulf %438, %441 : vector<32x32xf32>
    %cst_189 = arith.constant -4.000000e+00 : f32
    %cst_190 = arith.constant 4.000000e+00 : f32
    %443 = vector.broadcast %cst_189 : f32 to vector<32x32xf32>
    %444 = arith.maximumf %443, %442 : vector<32x32xf32>
    %445 = vector.broadcast %cst_190 : f32 to vector<32x32xf32>
    %446 = arith.minimumf %445, %444 : vector<32x32xf32>
    %447 = arith.mulf %446, %446 : vector<32x32xf32>
    %cst_191 = arith.constant -2.72614237E-10 : f32
    %448 = vector.broadcast %cst_191 : f32 to vector<32x32xf32>
    %449 = arith.mulf %448, %447 : vector<32x32xf32>
    %cst_192 = arith.constant 2.77068146E-8 : f32
    %450 = vector.broadcast %cst_192 : f32 to vector<32x32xf32>
    %451 = arith.addf %449, %450 : vector<32x32xf32>
    %452 = arith.mulf %451, %447 : vector<32x32xf32>
    %cst_193 = arith.constant -2.10102394E-6 : f32
    %453 = vector.broadcast %cst_193 : f32 to vector<32x32xf32>
    %454 = arith.addf %452, %453 : vector<32x32xf32>
    %455 = arith.mulf %454, %447 : vector<32x32xf32>
    %cst_194 = arith.constant -5.69250624E-5 : f32
    %456 = vector.broadcast %cst_194 : f32 to vector<32x32xf32>
    %457 = arith.addf %455, %456 : vector<32x32xf32>
    %458 = arith.mulf %457, %447 : vector<32x32xf32>
    %cst_195 = arith.constant -7.34990637E-4 : f32
    %459 = vector.broadcast %cst_195 : f32 to vector<32x32xf32>
    %460 = arith.addf %458, %459 : vector<32x32xf32>
    %461 = arith.mulf %460, %447 : vector<32x32xf32>
    %cst_196 = arith.constant -2.954600e-03 : f32
    %462 = vector.broadcast %cst_196 : f32 to vector<32x32xf32>
    %463 = arith.addf %461, %462 : vector<32x32xf32>
    %464 = arith.mulf %463, %447 : vector<32x32xf32>
    %cst_197 = arith.constant -0.0160960332 : f32
    %465 = vector.broadcast %cst_197 : f32 to vector<32x32xf32>
    %466 = arith.addf %464, %465 : vector<32x32xf32>
    %467 = arith.mulf %466, %446 : vector<32x32xf32>
    %cst_198 = arith.constant -1.45660715E-5 : f32
    %468 = vector.broadcast %cst_198 : f32 to vector<32x32xf32>
    %469 = arith.mulf %468, %447 : vector<32x32xf32>
    %cst_199 = arith.constant -2.13374049E-4 : f32
    %470 = vector.broadcast %cst_199 : f32 to vector<32x32xf32>
    %471 = arith.addf %469, %470 : vector<32x32xf32>
    %472 = arith.mulf %471, %447 : vector<32x32xf32>
    %cst_200 = arith.constant -0.00168282702 : f32
    %473 = vector.broadcast %cst_200 : f32 to vector<32x32xf32>
    %474 = arith.addf %472, %473 : vector<32x32xf32>
    %475 = arith.mulf %474, %447 : vector<32x32xf32>
    %cst_201 = arith.constant -0.00737332925 : f32
    %476 = vector.broadcast %cst_201 : f32 to vector<32x32xf32>
    %477 = arith.addf %475, %476 : vector<32x32xf32>
    %478 = arith.mulf %477, %447 : vector<32x32xf32>
    %cst_202 = arith.constant -0.0142647391 : f32
    %479 = vector.broadcast %cst_202 : f32 to vector<32x32xf32>
    %480 = arith.addf %478, %479 : vector<32x32xf32>
    %481 = tpu.reciprocal %480 {approx = true} : vector<32x32xf32> -> vector<32x32xf32>
    %482 = arith.mulf %480, %481 : vector<32x32xf32>
    %cst_203 = arith.constant 2.000000e+00 : f32
    %483 = vector.broadcast %cst_203 : f32 to vector<32x32xf32>
    %484 = arith.subf %483, %482 : vector<32x32xf32>
    %485 = arith.mulf %481, %484 : vector<32x32xf32>
    %486 = arith.mulf %467, %485 : vector<32x32xf32>
    %cst_204 = arith.constant 1.000000e+00 : f32
    %487 = vector.broadcast %cst_204 : f32 to vector<32x32xf32>
    %488 = arith.addf %487, %486 : vector<32x32xf32>
    %489 = arith.mulf %440, %488 : vector<32x32xf32>
    %cst_205 = arith.constant dense<0.000000e+00> : vector<16x32xf32>
    %490 = tpu.matmul %432, %489, %cst_205 {dimension_numbers = #tpu.dot_dimension_numbers<[1], [0], [0], [1], [0, 0, 1, 1], [], []>} : vector<16x32xf32>, vector<32x32xf32>, vector<16x32xf32> -> vector<16x32xf32>
    %491 = vector.broadcast %434 : vector<16x1xf32> to vector<16x32xf32>
    %492 = arith.addf %490, %491 : vector<16x32xf32>
    %cst_206 = arith.constant 5.000000e-01 : f32
    %493 = vector.broadcast %cst_206 : f32 to vector<16x32xf32>
    %494 = arith.mulf %493, %492 : vector<16x32xf32>
    %cst_207 = arith.constant 0.707106769 : f32
    %495 = vector.broadcast %cst_207 : f32 to vector<16x32xf32>
    %496 = arith.mulf %492, %495 : vector<16x32xf32>
    %cst_208 = arith.constant -4.000000e+00 : f32
    %cst_209 = arith.constant 4.000000e+00 : f32
    %497 = vector.broadcast %cst_208 : f32 to vector<16x32xf32>
    %498 = arith.maximumf %497, %496 : vector<16x32xf32>
    %499 = vector.broadcast %cst_209 : f32 to vector<16x32xf32>
    %500 = arith.minimumf %499, %498 : vector<16x32xf32>
    %501 = arith.mulf %500, %500 : vector<16x32xf32>
    %cst_210 = arith.constant -2.72614237E-10 : f32
    %502 = vector.broadcast %cst_210 : f32 to vector<16x32xf32>
    %503 = arith.mulf %502, %501 : vector<16x32xf32>
    %cst_211 = arith.constant 2.77068146E-8 : f32
    %504 = vector.broadcast %cst_211 : f32 to vector<16x32xf32>
    %505 = arith.addf %503, %504 : vector<16x32xf32>
    %506 = arith.mulf %505, %501 : vector<16x32xf32>
    %cst_212 = arith.constant -2.10102394E-6 : f32
    %507 = vector.broadcast %cst_212 : f32 to vector<16x32xf32>
    %508 = arith.addf %506, %507 : vector<16x32xf32>
    %509 = arith.mulf %508, %501 : vector<16x32xf32>
    %cst_213 = arith.constant -5.69250624E-5 : f32
    %510 = vector.broadcast %cst_213 : f32 to vector<16x32xf32>
    %511 = arith.addf %509, %510 : vector<16x32xf32>
    %512 = arith.mulf %511, %501 : vector<16x32xf32>
    %cst_214 = arith.constant -7.34990637E-4 : f32
    %513 = vector.broadcast %cst_214 : f32 to vector<16x32xf32>
    %514 = arith.addf %512, %513 : vector<16x32xf32>
    %515 = arith.mulf %514, %501 : vector<16x32xf32>
    %cst_215 = arith.constant -2.954600e-03 : f32
    %516 = vector.broadcast %cst_215 : f32 to vector<16x32xf32>
    %517 = arith.addf %515, %516 : vector<16x32xf32>
    %518 = arith.mulf %517, %501 : vector<16x32xf32>
    %cst_216 = arith.constant -0.0160960332 : f32
    %519 = vector.broadcast %cst_216 : f32 to vector<16x32xf32>
    %520 = arith.addf %518, %519 : vector<16x32xf32>
    %521 = arith.mulf %520, %500 : vector<16x32xf32>
    %cst_217 = arith.constant -1.45660715E-5 : f32
    %522 = vector.broadcast %cst_217 : f32 to vector<16x32xf32>
    %523 = arith.mulf %522, %501 : vector<16x32xf32>
    %cst_218 = arith.constant -2.13374049E-4 : f32
    %524 = vector.broadcast %cst_218 : f32 to vector<16x32xf32>
    %525 = arith.addf %523, %524 : vector<16x32xf32>
    %526 = arith.mulf %525, %501 : vector<16x32xf32>
    %cst_219 = arith.constant -0.00168282702 : f32
    %527 = vector.broadcast %cst_219 : f32 to vector<16x32xf32>
    %528 = arith.addf %526, %527 : vector<16x32xf32>
    %529 = arith.mulf %528, %501 : vector<16x32xf32>
    %cst_220 = arith.constant -0.00737332925 : f32
    %530 = vector.broadcast %cst_220 : f32 to vector<16x32xf32>
    %531 = arith.addf %529, %530 : vector<16x32xf32>
    %532 = arith.mulf %531, %501 : vector<16x32xf32>
    %cst_221 = arith.constant -0.0142647391 : f32
    %533 = vector.broadcast %cst_221 : f32 to vector<16x32xf32>
    %534 = arith.addf %532, %533 : vector<16x32xf32>
    %535 = tpu.reciprocal %534 {approx = true} : vector<16x32xf32> -> vector<16x32xf32>
    %536 = arith.mulf %534, %535 : vector<16x32xf32>
    %cst_222 = arith.constant 2.000000e+00 : f32
    %537 = vector.broadcast %cst_222 : f32 to vector<16x32xf32>
    %538 = arith.subf %537, %536 : vector<16x32xf32>
    %539 = arith.mulf %535, %538 : vector<16x32xf32>
    %540 = arith.mulf %521, %539 : vector<16x32xf32>
    %cst_223 = arith.constant 1.000000e+00 : f32
    %541 = vector.broadcast %cst_223 : f32 to vector<16x32xf32>
    %542 = arith.addf %541, %540 : vector<16x32xf32>
    %543 = arith.mulf %494, %542 : vector<16x32xf32>
    %544 = vector.extract_strided_slice %426 {offsets = [16, 0], sizes = [16, 32], strides = [1, 1]} : vector<32x32xf32> to vector<16x32xf32>
    %cst_224 = arith.constant dense<0.000000e+00> : vector<32x32xf32>
    %545 = tpu.matmul %428, %544, %cst_224 {dimension_numbers = #tpu.dot_dimension_numbers<[1], [0], [0], [1], [0, 0, 1, 1], [], []>} : vector<32x16xf32>, vector<16x32xf32>, vector<32x32xf32> -> vector<32x32xf32>
    %546 = vector.broadcast %430 : vector<32x1xf32> to vector<32x32xf32>
    %547 = arith.addf %545, %546 : vector<32x32xf32>
    %cst_225 = arith.constant 5.000000e-01 : f32
    %548 = vector.broadcast %cst_225 : f32 to vector<32x32xf32>
    %549 = arith.mulf %548, %547 : vector<32x32xf32>
    %cst_226 = arith.constant 0.707106769 : f32
    %550 = vector.broadcast %cst_226 : f32 to vector<32x32xf32>
    %551 = arith.mulf %547, %550 : vector<32x32xf32>
    %cst_227 = arith.constant -4.000000e+00 : f32
    %cst_228 = arith.constant 4.000000e+00 : f32
    %552 = vector.broadcast %cst_227 : f32 to vector<32x32xf32>
    %553 = arith.maximumf %552, %551 : vector<32x32xf32>
    %554 = vector.broadcast %cst_228 : f32 to vector<32x32xf32>
    %555 = arith.minimumf %554, %553 : vector<32x32xf32>
    %556 = arith.mulf %555, %555 : vector<32x32xf32>
    %cst_229 = arith.constant -2.72614237E-10 : f32
    %557 = vector.broadcast %cst_229 : f32 to vector<32x32xf32>
    %558 = arith.mulf %557, %556 : vector<32x32xf32>
    %cst_230 = arith.constant 2.77068146E-8 : f32
    %559 = vector.broadcast %cst_230 : f32 to vector<32x32xf32>
    %560 = arith.addf %558, %559 : vector<32x32xf32>
    %561 = arith.mulf %560, %556 : vector<32x32xf32>
    %cst_231 = arith.constant -2.10102394E-6 : f32
    %562 = vector.broadcast %cst_231 : f32 to vector<32x32xf32>
    %563 = arith.addf %561, %562 : vector<32x32xf32>
    %564 = arith.mulf %563, %556 : vector<32x32xf32>
    %cst_232 = arith.constant -5.69250624E-5 : f32
    %565 = vector.broadcast %cst_232 : f32 to vector<32x32xf32>
    %566 = arith.addf %564, %565 : vector<32x32xf32>
    %567 = arith.mulf %566, %556 : vector<32x32xf32>
    %cst_233 = arith.constant -7.34990637E-4 : f32
    %568 = vector.broadcast %cst_233 : f32 to vector<32x32xf32>
    %569 = arith.addf %567, %568 : vector<32x32xf32>
    %570 = arith.mulf %569, %556 : vector<32x32xf32>
    %cst_234 = arith.constant -2.954600e-03 : f32
    %571 = vector.broadcast %cst_234 : f32 to vector<32x32xf32>
    %572 = arith.addf %570, %571 : vector<32x32xf32>
    %573 = arith.mulf %572, %556 : vector<32x32xf32>
    %cst_235 = arith.constant -0.0160960332 : f32
    %574 = vector.broadcast %cst_235 : f32 to vector<32x32xf32>
    %575 = arith.addf %573, %574 : vector<32x32xf32>
    %576 = arith.mulf %575, %555 : vector<32x32xf32>
    %cst_236 = arith.constant -1.45660715E-5 : f32
    %577 = vector.broadcast %cst_236 : f32 to vector<32x32xf32>
    %578 = arith.mulf %577, %556 : vector<32x32xf32>
    %cst_237 = arith.constant -2.13374049E-4 : f32
    %579 = vector.broadcast %cst_237 : f32 to vector<32x32xf32>
    %580 = arith.addf %578, %579 : vector<32x32xf32>
    %581 = arith.mulf %580, %556 : vector<32x32xf32>
    %cst_238 = arith.constant -0.00168282702 : f32
    %582 = vector.broadcast %cst_238 : f32 to vector<32x32xf32>
    %583 = arith.addf %581, %582 : vector<32x32xf32>
    %584 = arith.mulf %583, %556 : vector<32x32xf32>
    %cst_239 = arith.constant -0.00737332925 : f32
    %585 = vector.broadcast %cst_239 : f32 to vector<32x32xf32>
    %586 = arith.addf %584, %585 : vector<32x32xf32>
    %587 = arith.mulf %586, %556 : vector<32x32xf32>
    %cst_240 = arith.constant -0.0142647391 : f32
    %588 = vector.broadcast %cst_240 : f32 to vector<32x32xf32>
    %589 = arith.addf %587, %588 : vector<32x32xf32>
    %590 = tpu.reciprocal %589 {approx = true} : vector<32x32xf32> -> vector<32x32xf32>
    %591 = arith.mulf %589, %590 : vector<32x32xf32>
    %cst_241 = arith.constant 2.000000e+00 : f32
    %592 = vector.broadcast %cst_241 : f32 to vector<32x32xf32>
    %593 = arith.subf %592, %591 : vector<32x32xf32>
    %594 = arith.mulf %590, %593 : vector<32x32xf32>
    %595 = arith.mulf %576, %594 : vector<32x32xf32>
    %cst_242 = arith.constant 1.000000e+00 : f32
    %596 = vector.broadcast %cst_242 : f32 to vector<32x32xf32>
    %597 = arith.addf %596, %595 : vector<32x32xf32>
    %598 = arith.mulf %549, %597 : vector<32x32xf32>
    %cst_243 = arith.constant dense<0.000000e+00> : vector<16x32xf32>
    %599 = tpu.matmul %432, %598, %cst_243 {dimension_numbers = #tpu.dot_dimension_numbers<[1], [0], [0], [1], [0, 0, 1, 1], [], []>} : vector<16x32xf32>, vector<32x32xf32>, vector<16x32xf32> -> vector<16x32xf32>
    %600 = vector.broadcast %434 : vector<16x1xf32> to vector<16x32xf32>
    %601 = arith.addf %599, %600 : vector<16x32xf32>
    %cst_244 = arith.constant 5.000000e-01 : f32
    %602 = vector.broadcast %cst_244 : f32 to vector<16x32xf32>
    %603 = arith.mulf %602, %601 : vector<16x32xf32>
    %cst_245 = arith.constant 0.707106769 : f32
    %604 = vector.broadcast %cst_245 : f32 to vector<16x32xf32>
    %605 = arith.mulf %601, %604 : vector<16x32xf32>
    %cst_246 = arith.constant -4.000000e+00 : f32
    %cst_247 = arith.constant 4.000000e+00 : f32
    %606 = vector.broadcast %cst_246 : f32 to vector<16x32xf32>
    %607 = arith.maximumf %606, %605 : vector<16x32xf32>
    %608 = vector.broadcast %cst_247 : f32 to vector<16x32xf32>
    %609 = arith.minimumf %608, %607 : vector<16x32xf32>
    %610 = arith.mulf %609, %609 : vector<16x32xf32>
    %cst_248 = arith.constant -2.72614237E-10 : f32
    %611 = vector.broadcast %cst_248 : f32 to vector<16x32xf32>
    %612 = arith.mulf %611, %610 : vector<16x32xf32>
    %cst_249 = arith.constant 2.77068146E-8 : f32
    %613 = vector.broadcast %cst_249 : f32 to vector<16x32xf32>
    %614 = arith.addf %612, %613 : vector<16x32xf32>
    %615 = arith.mulf %614, %610 : vector<16x32xf32>
    %cst_250 = arith.constant -2.10102394E-6 : f32
    %616 = vector.broadcast %cst_250 : f32 to vector<16x32xf32>
    %617 = arith.addf %615, %616 : vector<16x32xf32>
    %618 = arith.mulf %617, %610 : vector<16x32xf32>
    %cst_251 = arith.constant -5.69250624E-5 : f32
    %619 = vector.broadcast %cst_251 : f32 to vector<16x32xf32>
    %620 = arith.addf %618, %619 : vector<16x32xf32>
    %621 = arith.mulf %620, %610 : vector<16x32xf32>
    %cst_252 = arith.constant -7.34990637E-4 : f32
    %622 = vector.broadcast %cst_252 : f32 to vector<16x32xf32>
    %623 = arith.addf %621, %622 : vector<16x32xf32>
    %624 = arith.mulf %623, %610 : vector<16x32xf32>
    %cst_253 = arith.constant -2.954600e-03 : f32
    %625 = vector.broadcast %cst_253 : f32 to vector<16x32xf32>
    %626 = arith.addf %624, %625 : vector<16x32xf32>
    %627 = arith.mulf %626, %610 : vector<16x32xf32>
    %cst_254 = arith.constant -0.0160960332 : f32
    %628 = vector.broadcast %cst_254 : f32 to vector<16x32xf32>
    %629 = arith.addf %627, %628 : vector<16x32xf32>
    %630 = arith.mulf %629, %609 : vector<16x32xf32>
    %cst_255 = arith.constant -1.45660715E-5 : f32
    %631 = vector.broadcast %cst_255 : f32 to vector<16x32xf32>
    %632 = arith.mulf %631, %610 : vector<16x32xf32>
    %cst_256 = arith.constant -2.13374049E-4 : f32
    %633 = vector.broadcast %cst_256 : f32 to vector<16x32xf32>
    %634 = arith.addf %632, %633 : vector<16x32xf32>
    %635 = arith.mulf %634, %610 : vector<16x32xf32>
    %cst_257 = arith.constant -0.00168282702 : f32
    %636 = vector.broadcast %cst_257 : f32 to vector<16x32xf32>
    %637 = arith.addf %635, %636 : vector<16x32xf32>
    %638 = arith.mulf %637, %610 : vector<16x32xf32>
    %cst_258 = arith.constant -0.00737332925 : f32
    %639 = vector.broadcast %cst_258 : f32 to vector<16x32xf32>
    %640 = arith.addf %638, %639 : vector<16x32xf32>
    %641 = arith.mulf %640, %610 : vector<16x32xf32>
    %cst_259 = arith.constant -0.0142647391 : f32
    %642 = vector.broadcast %cst_259 : f32 to vector<16x32xf32>
    %643 = arith.addf %641, %642 : vector<16x32xf32>
    %644 = tpu.reciprocal %643 {approx = true} : vector<16x32xf32> -> vector<16x32xf32>
    %645 = arith.mulf %643, %644 : vector<16x32xf32>
    %cst_260 = arith.constant 2.000000e+00 : f32
    %646 = vector.broadcast %cst_260 : f32 to vector<16x32xf32>
    %647 = arith.subf %646, %645 : vector<16x32xf32>
    %648 = arith.mulf %644, %647 : vector<16x32xf32>
    %649 = arith.mulf %630, %648 : vector<16x32xf32>
    %cst_261 = arith.constant 1.000000e+00 : f32
    %650 = vector.broadcast %cst_261 : f32 to vector<16x32xf32>
    %651 = arith.addf %650, %649 : vector<16x32xf32>
    %652 = arith.mulf %603, %651 : vector<16x32xf32>
    %653 = tpu.concatenate %543, %652 in 0 : vector<16x32xf32>, vector<16x32xf32> -> vector<32x32xf32>
    %654 = arith.addf %400, %653 : vector<32x32xf32>
    %c1_262 = arith.constant 1 : index
    %c0_263 = arith.constant 0 : index
    %c0_264 = arith.constant 0 : index
    %655 = vector.load %arg9[%c1_262, %c0_263, %c0_264] : memref<2x1x32xf32, #tpu.memory_space<vmem>>, vector<1x1x32xf32>
    %656 = vector.shape_cast %655 : vector<1x1x32xf32> to vector<1x32xf32>
    %c1_265 = arith.constant 1 : index
    %c0_266 = arith.constant 0 : index
    %c0_267 = arith.constant 0 : index
    %657 = vector.load %arg10[%c1_265, %c0_266, %c0_267] : memref<2x1x32xf32, #tpu.memory_space<vmem>>, vector<1x1x32xf32>
    %658 = vector.shape_cast %657 : vector<1x1x32xf32> to vector<1x32xf32>
    %cst_268 = arith.constant dense<0.000000e+00> : vector<32xf32>
    %659 = vector.multi_reduction <add>, %654, %cst_268 [1] : vector<32x32xf32> to vector<32xf32>
    %660 = vector.shape_cast %659 : vector<32xf32> to vector<32x1xf32>
    %cst_269 = arith.constant 3.200000e+01 : f32
    %661 = vector.broadcast %cst_269 : f32 to vector<32x1xf32>
    %662 = arith.divf %660, %661 : vector<32x1xf32>
    %663 = arith.mulf %654, %654 : vector<32x32xf32>
    %cst_270 = arith.constant dense<0.000000e+00> : vector<32xf32>
    %664 = vector.multi_reduction <add>, %663, %cst_270 [1] : vector<32x32xf32> to vector<32xf32>
    %665 = vector.shape_cast %664 : vector<32xf32> to vector<32x1xf32>
    %cst_271 = arith.constant 3.200000e+01 : f32
    %666 = vector.broadcast %cst_271 : f32 to vector<32x1xf32>
    %667 = arith.divf %665, %666 : vector<32x1xf32>
    %668 = arith.mulf %662, %662 : vector<32x1xf32>
    %669 = arith.subf %667, %668 : vector<32x1xf32>
    %cst_272 = arith.constant 9.99999974E-6 : f32
    %670 = vector.broadcast %cst_272 : f32 to vector<32x1xf32>
    %671 = arith.addf %669, %670 : vector<32x1xf32>
    %672 = math.rsqrt %671 : vector<32x1xf32>
    %673 = vector.broadcast %662 : vector<32x1xf32> to vector<32x32xf32>
    %674 = arith.subf %654, %673 : vector<32x32xf32>
    %675 = vector.broadcast %656 : vector<1x32xf32> to vector<32x32xf32>
    %676 = vector.broadcast %672 : vector<32x1xf32> to vector<32x32xf32>
    %677 = arith.mulf %675, %676 : vector<32x32xf32>
    %678 = arith.mulf %674, %677 : vector<32x32xf32>
    %679 = vector.broadcast %658 : vector<1x32xf32> to vector<32x32xf32>
    %680 = arith.addf %678, %679 : vector<32x32xf32>
    %c1_273 = arith.constant 1 : index
    %c0_274 = arith.constant 0 : index
    %c0_275 = arith.constant 0 : index
    %681 = vector.load %arg11[%c1_273, %c0_274, %c0_275] : memref<2x32x32xf32, #tpu.memory_space<vmem>>, vector<1x32x32xf32>
    %682 = vector.shape_cast %681 : vector<1x32x32xf32> to vector<32x32xf32>
    %cst_276 = arith.constant dense<0.000000e+00> : vector<32x32xf32>
    %683 = tpu.matmul %680, %682, %cst_276 {dimension_numbers = #tpu.dot_dimension_numbers<[1], [0], [0], [1], [0, 0, 1, 1], [], []>} : vector<32x32xf32>, vector<32x32xf32>, vector<32x32xf32> -> vector<32x32xf32>
    %c1_277 = arith.constant 1 : index
    %c0_278 = arith.constant 0 : index
    %c0_279 = arith.constant 0 : index
    %684 = vector.load %arg12[%c1_277, %c0_278, %c0_279] : memref<2x1x32xf32, #tpu.memory_space<vmem>>, vector<1x1x32xf32>
    %685 = vector.shape_cast %684 : vector<1x1x32xf32> to vector<1x32xf32>
    %686 = vector.broadcast %685 : vector<1x32xf32> to vector<32x32xf32>
    %687 = arith.addf %683, %686 : vector<32x32xf32>
    %cst_280 = arith.constant 5.000000e-01 : f32
    %688 = vector.broadcast %cst_280 : f32 to vector<32x32xf32>
    %689 = arith.mulf %688, %687 : vector<32x32xf32>
    %cst_281 = arith.constant 0.707106769 : f32
    %690 = vector.broadcast %cst_281 : f32 to vector<32x32xf32>
    %691 = arith.mulf %687, %690 : vector<32x32xf32>
    %cst_282 = arith.constant -4.000000e+00 : f32
    %cst_283 = arith.constant 4.000000e+00 : f32
    %692 = vector.broadcast %cst_282 : f32 to vector<32x32xf32>
    %693 = arith.maximumf %692, %691 : vector<32x32xf32>
    %694 = vector.broadcast %cst_283 : f32 to vector<32x32xf32>
    %695 = arith.minimumf %694, %693 : vector<32x32xf32>
    %696 = arith.mulf %695, %695 : vector<32x32xf32>
    %cst_284 = arith.constant -2.72614237E-10 : f32
    %697 = vector.broadcast %cst_284 : f32 to vector<32x32xf32>
    %698 = arith.mulf %697, %696 : vector<32x32xf32>
    %cst_285 = arith.constant 2.77068146E-8 : f32
    %699 = vector.broadcast %cst_285 : f32 to vector<32x32xf32>
    %700 = arith.addf %698, %699 : vector<32x32xf32>
    %701 = arith.mulf %700, %696 : vector<32x32xf32>
    %cst_286 = arith.constant -2.10102394E-6 : f32
    %702 = vector.broadcast %cst_286 : f32 to vector<32x32xf32>
    %703 = arith.addf %701, %702 : vector<32x32xf32>
    %704 = arith.mulf %703, %696 : vector<32x32xf32>
    %cst_287 = arith.constant -5.69250624E-5 : f32
    %705 = vector.broadcast %cst_287 : f32 to vector<32x32xf32>
    %706 = arith.addf %704, %705 : vector<32x32xf32>
    %707 = arith.mulf %706, %696 : vector<32x32xf32>
    %cst_288 = arith.constant -7.34990637E-4 : f32
    %708 = vector.broadcast %cst_288 : f32 to vector<32x32xf32>
    %709 = arith.addf %707, %708 : vector<32x32xf32>
    %710 = arith.mulf %709, %696 : vector<32x32xf32>
    %cst_289 = arith.constant -2.954600e-03 : f32
    %711 = vector.broadcast %cst_289 : f32 to vector<32x32xf32>
    %712 = arith.addf %710, %711 : vector<32x32xf32>
    %713 = arith.mulf %712, %696 : vector<32x32xf32>
    %cst_290 = arith.constant -0.0160960332 : f32
    %714 = vector.broadcast %cst_290 : f32 to vector<32x32xf32>
    %715 = arith.addf %713, %714 : vector<32x32xf32>
    %716 = arith.mulf %715, %695 : vector<32x32xf32>
    %cst_291 = arith.constant -1.45660715E-5 : f32
    %717 = vector.broadcast %cst_291 : f32 to vector<32x32xf32>
    %718 = arith.mulf %717, %696 : vector<32x32xf32>
    %cst_292 = arith.constant -2.13374049E-4 : f32
    %719 = vector.broadcast %cst_292 : f32 to vector<32x32xf32>
    %720 = arith.addf %718, %719 : vector<32x32xf32>
    %721 = arith.mulf %720, %696 : vector<32x32xf32>
    %cst_293 = arith.constant -0.00168282702 : f32
    %722 = vector.broadcast %cst_293 : f32 to vector<32x32xf32>
    %723 = arith.addf %721, %722 : vector<32x32xf32>
    %724 = arith.mulf %723, %696 : vector<32x32xf32>
    %cst_294 = arith.constant -0.00737332925 : f32
    %725 = vector.broadcast %cst_294 : f32 to vector<32x32xf32>
    %726 = arith.addf %724, %725 : vector<32x32xf32>
    %727 = arith.mulf %726, %696 : vector<32x32xf32>
    %cst_295 = arith.constant -0.0142647391 : f32
    %728 = vector.broadcast %cst_295 : f32 to vector<32x32xf32>
    %729 = arith.addf %727, %728 : vector<32x32xf32>
    %730 = tpu.reciprocal %729 {approx = true} : vector<32x32xf32> -> vector<32x32xf32>
    %731 = arith.mulf %729, %730 : vector<32x32xf32>
    %cst_296 = arith.constant 2.000000e+00 : f32
    %732 = vector.broadcast %cst_296 : f32 to vector<32x32xf32>
    %733 = arith.subf %732, %731 : vector<32x32xf32>
    %734 = arith.mulf %730, %733 : vector<32x32xf32>
    %735 = arith.mulf %716, %734 : vector<32x32xf32>
    %cst_297 = arith.constant 1.000000e+00 : f32
    %736 = vector.broadcast %cst_297 : f32 to vector<32x32xf32>
    %737 = arith.addf %736, %735 : vector<32x32xf32>
    %738 = arith.mulf %689, %737 : vector<32x32xf32>
    %c1_298 = arith.constant 1 : index
    %c0_299 = arith.constant 0 : index
    %c0_300 = arith.constant 0 : index
    %739 = vector.load %arg13[%c1_298, %c0_299, %c0_300] : memref<2x32x32xf32, #tpu.memory_space<vmem>>, vector<1x32x32xf32>
    %740 = vector.shape_cast %739 : vector<1x32x32xf32> to vector<32x32xf32>
    %cst_301 = arith.constant dense<0.000000e+00> : vector<32x32xf32>
    %741 = tpu.matmul %738, %740, %cst_301 {dimension_numbers = #tpu.dot_dimension_numbers<[1], [0], [0], [1], [0, 0, 1, 1], [], []>} : vector<32x32xf32>, vector<32x32xf32>, vector<32x32xf32> -> vector<32x32xf32>
    %c1_302 = arith.constant 1 : index
    %c0_303 = arith.constant 0 : index
    %c0_304 = arith.constant 0 : index
    %742 = vector.load %arg14[%c1_302, %c0_303, %c0_304] : memref<2x1x32xf32, #tpu.memory_space<vmem>>, vector<1x1x32xf32>
    %743 = vector.shape_cast %742 : vector<1x1x32xf32> to vector<1x32xf32>
    %744 = vector.broadcast %743 : vector<1x32xf32> to vector<32x32xf32>
    %745 = arith.addf %741, %744 : vector<32x32xf32>
    %cst_305 = arith.constant 5.000000e-01 : f32
    %746 = vector.broadcast %cst_305 : f32 to vector<32x32xf32>
    %747 = arith.mulf %746, %745 : vector<32x32xf32>
    %cst_306 = arith.constant 0.707106769 : f32
    %748 = vector.broadcast %cst_306 : f32 to vector<32x32xf32>
    %749 = arith.mulf %745, %748 : vector<32x32xf32>
    %cst_307 = arith.constant -4.000000e+00 : f32
    %cst_308 = arith.constant 4.000000e+00 : f32
    %750 = vector.broadcast %cst_307 : f32 to vector<32x32xf32>
    %751 = arith.maximumf %750, %749 : vector<32x32xf32>
    %752 = vector.broadcast %cst_308 : f32 to vector<32x32xf32>
    %753 = arith.minimumf %752, %751 : vector<32x32xf32>
    %754 = arith.mulf %753, %753 : vector<32x32xf32>
    %cst_309 = arith.constant -2.72614237E-10 : f32
    %755 = vector.broadcast %cst_309 : f32 to vector<32x32xf32>
    %756 = arith.mulf %755, %754 : vector<32x32xf32>
    %cst_310 = arith.constant 2.77068146E-8 : f32
    %757 = vector.broadcast %cst_310 : f32 to vector<32x32xf32>
    %758 = arith.addf %756, %757 : vector<32x32xf32>
    %759 = arith.mulf %758, %754 : vector<32x32xf32>
    %cst_311 = arith.constant -2.10102394E-6 : f32
    %760 = vector.broadcast %cst_311 : f32 to vector<32x32xf32>
    %761 = arith.addf %759, %760 : vector<32x32xf32>
    %762 = arith.mulf %761, %754 : vector<32x32xf32>
    %cst_312 = arith.constant -5.69250624E-5 : f32
    %763 = vector.broadcast %cst_312 : f32 to vector<32x32xf32>
    %764 = arith.addf %762, %763 : vector<32x32xf32>
    %765 = arith.mulf %764, %754 : vector<32x32xf32>
    %cst_313 = arith.constant -7.34990637E-4 : f32
    %766 = vector.broadcast %cst_313 : f32 to vector<32x32xf32>
    %767 = arith.addf %765, %766 : vector<32x32xf32>
    %768 = arith.mulf %767, %754 : vector<32x32xf32>
    %cst_314 = arith.constant -2.954600e-03 : f32
    %769 = vector.broadcast %cst_314 : f32 to vector<32x32xf32>
    %770 = arith.addf %768, %769 : vector<32x32xf32>
    %771 = arith.mulf %770, %754 : vector<32x32xf32>
    %cst_315 = arith.constant -0.0160960332 : f32
    %772 = vector.broadcast %cst_315 : f32 to vector<32x32xf32>
    %773 = arith.addf %771, %772 : vector<32x32xf32>
    %774 = arith.mulf %773, %753 : vector<32x32xf32>
    %cst_316 = arith.constant -1.45660715E-5 : f32
    %775 = vector.broadcast %cst_316 : f32 to vector<32x32xf32>
    %776 = arith.mulf %775, %754 : vector<32x32xf32>
    %cst_317 = arith.constant -2.13374049E-4 : f32
    %777 = vector.broadcast %cst_317 : f32 to vector<32x32xf32>
    %778 = arith.addf %776, %777 : vector<32x32xf32>
    %779 = arith.mulf %778, %754 : vector<32x32xf32>
    %cst_318 = arith.constant -0.00168282702 : f32
    %780 = vector.broadcast %cst_318 : f32 to vector<32x32xf32>
    %781 = arith.addf %779, %780 : vector<32x32xf32>
    %782 = arith.mulf %781, %754 : vector<32x32xf32>
    %cst_319 = arith.constant -0.00737332925 : f32
    %783 = vector.broadcast %cst_319 : f32 to vector<32x32xf32>
    %784 = arith.addf %782, %783 : vector<32x32xf32>
    %785 = arith.mulf %784, %754 : vector<32x32xf32>
    %cst_320 = arith.constant -0.0142647391 : f32
    %786 = vector.broadcast %cst_320 : f32 to vector<32x32xf32>
    %787 = arith.addf %785, %786 : vector<32x32xf32>
    %788 = tpu.reciprocal %787 {approx = true} : vector<32x32xf32> -> vector<32x32xf32>
    %789 = arith.mulf %787, %788 : vector<32x32xf32>
    %cst_321 = arith.constant 2.000000e+00 : f32
    %790 = vector.broadcast %cst_321 : f32 to vector<32x32xf32>
    %791 = arith.subf %790, %789 : vector<32x32xf32>
    %792 = arith.mulf %788, %791 : vector<32x32xf32>
    %793 = arith.mulf %774, %792 : vector<32x32xf32>
    %cst_322 = arith.constant 1.000000e+00 : f32
    %794 = vector.broadcast %cst_322 : f32 to vector<32x32xf32>
    %795 = arith.addf %794, %793 : vector<32x32xf32>
    %796 = arith.mulf %747, %795 : vector<32x32xf32>
    %797 = arith.addf %654, %796 : vector<32x32xf32>
    %c0_323 = arith.constant 0 : index
    %c0_324 = arith.constant 0 : index
    %798 = vector.load %arg15[%c0_323, %c0_324] : memref<1x32xf32, #tpu.memory_space<vmem>>, vector<1x32xf32>
    %c0_325 = arith.constant 0 : index
    %c0_326 = arith.constant 0 : index
    %799 = vector.load %arg16[%c0_325, %c0_326] : memref<1x32xf32, #tpu.memory_space<vmem>>, vector<1x32xf32>
    %cst_327 = arith.constant dense<0.000000e+00> : vector<32xf32>
    %800 = vector.multi_reduction <add>, %797, %cst_327 [1] : vector<32x32xf32> to vector<32xf32>
    %801 = vector.shape_cast %800 : vector<32xf32> to vector<32x1xf32>
    %cst_328 = arith.constant 3.200000e+01 : f32
    %802 = vector.broadcast %cst_328 : f32 to vector<32x1xf32>
    %803 = arith.divf %801, %802 : vector<32x1xf32>
    %804 = arith.mulf %797, %797 : vector<32x32xf32>
    %cst_329 = arith.constant dense<0.000000e+00> : vector<32xf32>
    %805 = vector.multi_reduction <add>, %804, %cst_329 [1] : vector<32x32xf32> to vector<32xf32>
    %806 = vector.shape_cast %805 : vector<32xf32> to vector<32x1xf32>
    %cst_330 = arith.constant 3.200000e+01 : f32
    %807 = vector.broadcast %cst_330 : f32 to vector<32x1xf32>
    %808 = arith.divf %806, %807 : vector<32x1xf32>
    %809 = arith.mulf %803, %803 : vector<32x1xf32>
    %810 = arith.subf %808, %809 : vector<32x1xf32>
    %cst_331 = arith.constant 9.99999974E-6 : f32
    %811 = vector.broadcast %cst_331 : f32 to vector<32x1xf32>
    %812 = arith.addf %810, %811 : vector<32x1xf32>
    %813 = math.rsqrt %812 : vector<32x1xf32>
    %814 = vector.broadcast %803 : vector<32x1xf32> to vector<32x32xf32>
    %815 = arith.subf %797, %814 : vector<32x32xf32>
    %816 = vector.broadcast %798 : vector<1x32xf32> to vector<32x32xf32>
    %817 = vector.broadcast %813 : vector<32x1xf32> to vector<32x32xf32>
    %818 = arith.mulf %816, %817 : vector<32x32xf32>
    %819 = arith.mulf %815, %818 : vector<32x32xf32>
    %820 = vector.broadcast %799 : vector<1x32xf32> to vector<32x32xf32>
    %821 = arith.addf %819, %820 : vector<32x32xf32>
    %822 = vector.extract_strided_slice %821 {offsets = [0, 0], sizes = [16, 32], strides = [1, 1]} : vector<32x32xf32> to vector<16x32xf32>
    %cst_332 = arith.constant dense<0.000000e+00> : vector<32xf32>
    %823 = vector.multi_reduction <add>, %822, %cst_332 [0] : vector<16x32xf32> to vector<32xf32>
    %824 = vector.shape_cast %823 : vector<32xf32> to vector<1x32xf32>
    %cst_333 = arith.constant 1.600000e+01 : f32
    %825 = vector.broadcast %cst_333 : f32 to vector<1x32xf32>
    %826 = arith.divf %824, %825 : vector<1x32xf32>
    %827 = vector.extract_strided_slice %821 {offsets = [16, 0], sizes = [16, 32], strides = [1, 1]} : vector<32x32xf32> to vector<16x32xf32>
    %cst_334 = arith.constant dense<0.000000e+00> : vector<32xf32>
    %828 = vector.multi_reduction <add>, %827, %cst_334 [0] : vector<16x32xf32> to vector<32xf32>
    %829 = vector.shape_cast %828 : vector<32xf32> to vector<1x32xf32>
    %cst_335 = arith.constant 1.600000e+01 : f32
    %830 = vector.broadcast %cst_335 : f32 to vector<1x32xf32>
    %831 = arith.divf %829, %830 : vector<1x32xf32>
    %832 = tpu.concatenate %826, %831 in 0 : vector<1x32xf32>, vector<1x32xf32> -> vector<2x32xf32>
    %c0_336 = arith.constant 0 : index
    %c0_337 = arith.constant 0 : index
    %833 = vector.load %arg17[%c0_336, %c0_337] : memref<32x128xf32, #tpu.memory_space<vmem>>, vector<32x128xf32>
    %cst_338 = arith.constant dense<0.000000e+00> : vector<2x128xf32>
    %834 = tpu.matmul %832, %833, %cst_338 {dimension_numbers = #tpu.dot_dimension_numbers<[1], [0], [0], [1], [0, 0, 1, 1], [], []>} : vector<2x32xf32>, vector<32x128xf32>, vector<2x128xf32> -> vector<2x128xf32>
    %c0_339 = arith.constant 0 : index
    %c0_340 = arith.constant 0 : index
    %835 = vector.load %arg18[%c0_339, %c0_340] : memref<1x128xf32, #tpu.memory_space<vmem>>, vector<1x128xf32>
    %836 = vector.broadcast %835 : vector<1x128xf32> to vector<2x128xf32>
    %837 = arith.addf %834, %836 : vector<2x128xf32>
    %c0_341 = arith.constant 0 : index
    %c0_342 = arith.constant 0 : index
    %c0_343 = arith.constant 0 : index
    %838 = vector.load %arg19[%c0_341, %c0_342, %c0_343] : memref<1x2x128xf32, #tpu.memory_space<vmem>>, vector<1x2x128xf32>
    %839 = vector.shape_cast %838 : vector<1x2x128xf32> to vector<2x128xf32>
    %840 = vector.shape_cast %837 : vector<2x128xf32> to vector<1x2x128xf32>
    tpu.vector_store %arg19[%c0_341, %c0_342, %c0_343], %840 {strides = array<i32>} : memref<1x2x128xf32, #tpu.memory_space<vmem>>, vector<1x2x128xf32>,
    return
  }
  func.func @transform_0(%arg0: i32) -> (i32, i32, i32) {
    %c0_i32 = arith.constant 0 : i32
    %c0_i32_0 = arith.constant 0 : i32
    %c0_i32_1 = arith.constant 0 : i32
    return %arg0, %c0_i32, %c0_i32_0 : i32, i32, i32
  }
  func.func @transform_1(%arg0: i32) -> (i32, i32) {
    %c0_i32 = arith.constant 0 : i32
    %c0_i32_0 = arith.constant 0 : i32
    %c0_i32_1 = arith.constant 0 : i32
    return %c0_i32, %c0_i32_0 : i32, i32
  }
  func.func @transform_2(%arg0: i32) -> (i32, i32, i32) {
    %c0_i32 = arith.constant 0 : i32
    %c0_i32_0 = arith.constant 0 : i32
    %c0_i32_1 = arith.constant 0 : i32
    %c0_i32_2 = arith.constant 0 : i32
    return %c0_i32, %c0_i32_0, %c0_i32_1 : i32, i32, i32
  }
  func.func @transform_3(%arg0: i32) -> (i32, i32, i32) {
    %c0_i32 = arith.constant 0 : i32
    %c0_i32_0 = arith.constant 0 : i32
    %c0_i32_1 = arith.constant 0 : i32
    %c0_i32_2 = arith.constant 0 : i32
    return %c0_i32, %c0_i32_0, %c0_i32_1 : i32, i32, i32
  }
  func.func @transform_4(%arg0: i32) -> (i32, i32, i32) {
    %c0_i32 = arith.constant 0 : i32
    %c0_i32_0 = arith.constant 0 : i32
    %c0_i32_1 = arith.constant 0 : i32
    %c0_i32_2 = arith.constant 0 : i32
    return %c0_i32, %c0_i32_0, %c0_i32_1 : i32, i32, i32
  }
  func.func @transform_5(%arg0: i32) -> (i32, i32, i32) {
    %c0_i32 = arith.constant 0 : i32
    %c0_i32_0 = arith.constant 0 : i32
    %c0_i32_1 = arith.constant 0 : i32
    %c0_i32_2 = arith.constant 0 : i32
    return %c0_i32, %c0_i32_0, %c0_i32_1 : i32, i32, i32
  }
  func.func @transform_6(%arg0: i32) -> (i32, i32, i32) {
    %c0_i32 = arith.constant 0 : i32
    %c0_i32_0 = arith.constant 0 : i32
    %c0_i32_1 = arith.constant 0 : i32
    %c0_i32_2 = arith.constant 0 : i32
    return %c0_i32, %c0_i32_0, %c0_i32_1 : i32, i32, i32
  }
  func.func @transform_7(%arg0: i32) -> (i32, i32, i32) {
    %c0_i32 = arith.constant 0 : i32
    %c0_i32_0 = arith.constant 0 : i32
    %c0_i32_1 = arith.constant 0 : i32
    %c0_i32_2 = arith.constant 0 : i32
    return %c0_i32, %c0_i32_0, %c0_i32_1 : i32, i32, i32
  }
  func.func @transform_8(%arg0: i32) -> (i32, i32, i32) {
    %c0_i32 = arith.constant 0 : i32
    %c0_i32_0 = arith.constant 0 : i32
    %c0_i32_1 = arith.constant 0 : i32
    %c0_i32_2 = arith.constant 0 : i32
    return %c0_i32, %c0_i32_0, %c0_i32_1 : i32, i32, i32
  }
  func.func @transform_9(%arg0: i32) -> (i32, i32, i32) {
    %c0_i32 = arith.constant 0 : i32
    %c0_i32_0 = arith.constant 0 : i32
    %c0_i32_1 = arith.constant 0 : i32
    %c0_i32_2 = arith.constant 0 : i32
    return %c0_i32, %c0_i32_0, %c0_i32_1 : i32, i32, i32
  }
  func.func @transform_10(%arg0: i32) -> (i32, i32, i32) {
    %c0_i32 = arith.constant 0 : i32
    %c0_i32_0 = arith.constant 0 : i32
    %c0_i32_1 = arith.constant 0 : i32
    %c0_i32_2 = arith.constant 0 : i32
    return %c0_i32, %c0_i32_0, %c0_i32_1 : i32, i32, i32
  }
  func.func @transform_11(%arg0: i32) -> (i32, i32, i32) {
    %c0_i32 = arith.constant 0 : i32
    %c0_i32_0 = arith.constant 0 : i32
    %c0_i32_1 = arith.constant 0 : i32
    %c0_i32_2 = arith.constant 0 : i32
    return %c0_i32, %c0_i32_0, %c0_i32_1 : i32, i32, i32
  }
  func.func @transform_12(%arg0: i32) -> (i32, i32, i32) {
    %c0_i32 = arith.constant 0 : i32
    %c0_i32_0 = arith.constant 0 : i32
    %c0_i32_1 = arith.constant 0 : i32
    %c0_i32_2 = arith.constant 0 : i32
    return %c0_i32, %c0_i32_0, %c0_i32_1 : i32, i32, i32
  }
  func.func @transform_13(%arg0: i32) -> (i32, i32, i32) {
    %c0_i32 = arith.constant 0 : i32
    %c0_i32_0 = arith.constant 0 : i32
    %c0_i32_1 = arith.constant 0 : i32
    %c0_i32_2 = arith.constant 0 : i32
    return %c0_i32, %c0_i32_0, %c0_i32_1 : i32, i32, i32
  }
  func.func @transform_14(%arg0: i32) -> (i32, i32) {
    %c0_i32 = arith.constant 0 : i32
    %c0_i32_0 = arith.constant 0 : i32
    %c0_i32_1 = arith.constant 0 : i32
    return %c0_i32, %c0_i32_0 : i32, i32
  }
  func.func @transform_15(%arg0: i32) -> (i32, i32) {
    %c0_i32 = arith.constant 0 : i32
    %c0_i32_0 = arith.constant 0 : i32
    %c0_i32_1 = arith.constant 0 : i32
    return %c0_i32, %c0_i32_0 : i32, i32
  }
  func.func @transform_16(%arg0: i32) -> (i32, i32) {
    %c0_i32 = arith.constant 0 : i32
    %c0_i32_0 = arith.constant 0 : i32
    %c0_i32_1 = arith.constant 0 : i32
    return %c0_i32, %c0_i32_0 : i32, i32
  }
  func.func @transform_17(%arg0: i32) -> (i32, i32) {
    %c0_i32 = arith.constant 0 : i32
    %c0_i32_0 = arith.constant 0 : i32
    %c0_i32_1 = arith.constant 0 : i32
    return %c0_i32, %c0_i32_0 : i32, i32
  }
  func.func @transform_18(%arg0: i32) -> (i32, i32, i32) {
    %c0_i32 = arith.constant 0 : i32
    %c0_i32_0 = arith.constant 0 : i32
    %c0_i32_1 = arith.constant 0 : i32
    return %arg0, %c0_i32, %c0_i32_0 : i32, i32, i32
  }
}

</mosaic_0001>

<bundles_post_ra>
// kernel: squeeze.1
= control target key start
LH: loop header
LB: loop body
LE: loop exit
PB: predicated region body
PF: predicated region fallthrough
CT: control target
= control target key end

     0   :  { %s709_s10 = smov 121   ;;  %vm3_vm0 = vcmask 56320   ;;  %s710_s27 = smov 114   ;;  %s982_s0 = inlined_call_operand.vmem [shape: f32[2,28,28], index: 0, kind: input, shape index: {}]   ;;  %s983_s1 = inlined_call_operand.vmem [shape: f32[2,4,7,4,7], index: 1, kind: output, shape index: {}]  }
   0x1   :  { %v634_v0 = vld [vmem:[%s982_s0 + $0x10] sm:$0xff]   ;;  %v51_v1 = vld [vmem:[%s982_s0] sm:$0xff]   ;;  %v633_v2 = vld [vmem:[%s982_s0 + $0x8] sm:$0xff]   ;;  %s711_s28 = smov 107  }
   0x2   :  { %70 = vrot.lane.b32.xlu1 %v634_v0, %s709_s10  ;;  %52 = vrot.lane.b32.xlu0 %v51_v1, %s709_s10  ;;  %v635_v3 = vld.sshfl [vmem:[%s982_s0 + $0x18] sm:$0xff pattern:$0xba983210]   ;;  %19 = vst.msk [vmem:[#allocation0 + $0x80] ss:$8 sm:$0xf0] %vm3_vm0, %v634_v0  }
   0x3   :  { %17 = vst.msk [vmem:[#allocation0 + $0x80] ss:$8 sm:$0xf] %vm3_vm0, %v634_v0   ;;  %10 = vst.msk [vmem:[#allocation0 + $0x40] ss:$8 sm:$0xf] %vm3_vm0, %v633_v2  }
   0x4   :  { %12 = vst.msk [vmem:[#allocation0 + $0x40] ss:$8 sm:$0xf0] %vm3_vm0, %v633_v2   ;;  %4 = vst.msk [vmem:[#allocation0] ss:$8 sm:$0xf] %vm3_vm0, %v51_v1  }
   0x5   :  { %5 = vst.msk [vmem:[#allocation0] ss:$8 sm:$0xf0] %vm3_vm0, %v51_v1   ;;  %v637_v4 = vld [vmem:[%s982_s0 + $0x2c] sm:$0xff]   ;;  %v636_v5 = vld [vmem:[%s982_s0 + $0x24] sm:$0xff]   ;;  %v638_v9 = vld [vmem:[%s982_s0 + $0x34] sm:$0xff]  }
   0x6   :  { %79 = vrot.lane.b32.xlu1 %v635_v3, %s709_s10  ;;  %61 = vrot.lane.b32.xlu0 %v633_v2, %s709_s10  ;;  %v629_v6 = vld [vmem:[%s982_s0 + $0x20] sm:$0xff]   ;;  %v630_v7 = vld [vmem:[%s982_s0 + $0x28] sm:$0xff]  }
   0x7   :  { %31 = vst.msk [vmem:[#allocation0 + $0xe0] ss:$8 sm:$0xf0] %vm3_vm0, %v629_v6   ;;  %36 = vst.msk [vmem:[#allocation0 + $0x120] ss:$8 sm:$0xf] %vm3_vm0, %v630_v7  }
   0x8   :  { %29 = vst.msk [vmem:[#allocation0 + $0xe0] ss:$8 sm:$0xf] %vm3_vm0, %v629_v6   ;;  %38 = vst.msk [vmem:[#allocation0 + $0x120] ss:$8 sm:$0xf0] %vm3_vm0, %v630_v7  }
   0x9   :  { %v628_v8 = vld [vmem:[%s982_s0 + $0x18] sm:$0xf]   ;;  %v631_v10 = vld [vmem:[%s982_s0 + $0x30] sm:$0xff]  }
   0xa   :  { %97 = vrot.lane.b32.xlu1 %v637_v4, %s709_s10  ;;  %88 = vrot.lane.b32.xlu0 %v636_v5, %s709_s10  ;;  %24 = vst.msk [vmem:[#allocation0 + $0xc0] ss:$8 sm:$0xf] %vm3_vm0, %v628_v8   ;;  %43 = vst.msk [vmem:[#allocation0 + $0x160] ss:$8 sm:$0xf] %vm3_vm0, %v631_v10  }
   0xb   :  { %45 = vst.msk [vmem:[#allocation0 + $0x160] ss:$8 sm:$0xf0] %vm3_vm0, %v631_v10   ;;  %v632_v11 = vld [vmem:[%s982_s0 + $0x38] sm:$0xf]  }
   0xc   :  { %50 = vst.msk [vmem:[#allocation0 + $0x1a0] ss:$8 sm:$0xf] %vm3_vm0, %v632_v11  }
   0xe   :  { %114 = vrot.lane.b32.xlu1 %v51_v1, %s710_s27  ;;  %106 = vrot.lane.b32.xlu0 %v638_v9, %s709_s10 }
  0x12   :  { %132 = vrot.lane.b32.xlu1 %v634_v0, %s710_s27  ;;  %123 = vrot.lane.b32.xlu0 %v633_v2, %s710_s27 }
  0x16   :  { %150 = vrot.lane.b32.xlu1 %v636_v5, %s710_s27  ;;  %141 = vrot.lane.b32.xlu0 %v635_v3, %s710_s27 }
  0x1a   :  { %168 = vrot.lane.b32.xlu1 %v638_v9, %s710_s27  ;;  %159 = vrot.lane.b32.xlu0 %v637_v4, %s710_s27 }
  0x1e   :  { %185 = vrot.lane.b32.xlu1 %v633_v2, %s711_s28  ;;  %176 = vrot.lane.b32.xlu0 %v51_v1, %s711_s28 }
  0x22   :  { %203 = vrot.lane.b32.xlu1 %v635_v3, %s711_s28  ;;  %194 = vrot.lane.b32.xlu0 %v634_v0, %s711_s28 }
  0x26   :  { %221 = vrot.lane.b32.xlu1 %v637_v4, %s711_s28  ;;  %212 = vrot.lane.b32.xlu0 %v636_v5, %s711_s28 }
  0x2a   :  { %230 = vrot.lane.b32.xlu0 %v638_v9, %s711_s28 }
  0x74   :  { %v71_v12 = vpop.permute.xlu1 %70   ;;  %v53_v13 = vpop.permute.xlu0 %52  }
  0x75   :  { %74 = vst.msk [vmem:[#allocation0 + $0x81] ss:$8 sm:$0xf] %vm3_vm0, %v71_v12   ;;  %76 = vst.msk [vmem:[#allocation0 + $0x81] ss:$8 sm:$0xf0] %vm3_vm0, %v71_v12  }
  0x76   :  { %56 = vst.msk [vmem:[#allocation0 + $0x1] ss:$8 sm:$0xf] %vm3_vm0, %v53_v13   ;;  %58 = vst.msk [vmem:[#allocation0 + $0x1] ss:$8 sm:$0xf0] %vm3_vm0, %v53_v13  }
  0x78   :  { %v80_v14 = vpop.permute.xlu1 %79   ;;  %v62_v15 = vpop.permute.xlu0 %61  }
  0x79   :  { %83 = vst.msk [vmem:[#allocation0 + $0xc1] ss:$8 sm:$0xf] %vm3_vm0, %v80_v14   ;;  %85 = vst.msk [vmem:[#allocation0 + $0xc1] ss:$8 sm:$0xf0] %vm3_vm0, %v80_v14  }
  0x7a   :  { %65 = vst.msk [vmem:[#allocation0 + $0x41] ss:$8 sm:$0xf] %vm3_vm0, %v62_v15   ;;  %67 = vst.msk [vmem:[#allocation0 + $0x41] ss:$8 sm:$0xf0] %vm3_vm0, %v62_v15  }
  0x7c   :  { %v98_v16 = vpop.permute.xlu1 %97   ;;  %v89_v17 = vpop.permute.xlu0 %88  }
  0x7d   :  { %101 = vst.msk [vmem:[#allocation0 + $0x141] ss:$8 sm:$0xf] %vm3_vm0, %v98_v16   ;;  %103 = vst.msk [vmem:[#allocation0 + $0x141] ss:$8 sm:$0xf0] %vm3_vm0, %v98_v16  }
  0x7e   :  { %92 = vst.msk [vmem:[#allocation0 + $0x101] ss:$8 sm:$0xf] %vm3_vm0, %v89_v17   ;;  %94 = vst.msk [vmem:[#allocation0 + $0x101] ss:$8 sm:$0xf0] %vm3_vm0, %v89_v17  }
  0x80   :  { %v115_v18 = vpop.permute.xlu1 %114   ;;  %v107_v19 = vpop.permute.xlu0 %106  }
  0x81   :  { %118 = vst.msk [vmem:[#allocation0 + $0x2] ss:$8 sm:$0xf] %vm3_vm0, %v115_v18   ;;  %120 = vst.msk [vmem:[#allocation0 + $0x2] ss:$8 sm:$0xf0] %vm3_vm0, %v115_v18  }
  0x82   :  { %110 = vst.msk [vmem:[#allocation0 + $0x181] ss:$8 sm:$0xf] %vm3_vm0, %v107_v19   ;;  %112 = vst.msk [vmem:[#allocation0 + $0x181] ss:$8 sm:$0xf0] %vm3_vm0, %v107_v19  }
  0x84   :  { %v133_v20 = vpop.permute.xlu1 %132   ;;  %v124_v21 = vpop.permute.xlu0 %123  }
  0x85   :  { %136 = vst.msk [vmem:[#allocation0 + $0x82] ss:$8 sm:$0xf] %vm3_vm0, %v133_v20   ;;  %138 = vst.msk [vmem:[#allocation0 + $0x82] ss:$8 sm:$0xf0] %vm3_vm0, %v133_v20  }
  0x86   :  { %127 = vst.msk [vmem:[#allocation0 + $0x42] ss:$8 sm:$0xf] %vm3_vm0, %v124_v21   ;;  %129 = vst.msk [vmem:[#allocation0 + $0x42] ss:$8 sm:$0xf0] %vm3_vm0, %v124_v21  }
  0x88   :  { %v151_v22 = vpop.permute.xlu1 %150   ;;  %v142_v23 = vpop.permute.xlu0 %141  }
  0x89   :  { %154 = vst.msk [vmem:[#allocation0 + $0x102] ss:$8 sm:$0xf] %vm3_vm0, %v151_v22   ;;  %156 = vst.msk [vmem:[#allocation0 + $0x102] ss:$8 sm:$0xf0] %vm3_vm0, %v151_v22  }
  0x8a   :  { %145 = vst.msk [vmem:[#allocation0 + $0xc2] ss:$8 sm:$0xf] %vm3_vm0, %v142_v23   ;;  %147 = vst.msk [vmem:[#allocation0 + $0xc2] ss:$8 sm:$0xf0] %vm3_vm0, %v142_v23  }
  0x8c   :  { %v169_v24 = vpop.permute.xlu1 %168   ;;  %v160_v25 = vpop.permute.xlu0 %159  }
  0x8d   :  { %172 = vst.msk [vmem:[#allocation0 + $0x182] ss:$8 sm:$0xf] %vm3_vm0, %v169_v24   ;;  %174 = vst.msk [vmem:[#allocation0 + $0x182] ss:$8 sm:$0xf0] %vm3_vm0, %v169_v24  }
  0x8e   :  { %163 = vst.msk [vmem:[#allocation0 + $0x142] ss:$8 sm:$0xf] %vm3_vm0, %v160_v25   ;;  %165 = vst.msk [vmem:[#allocation0 + $0x142] ss:$8 sm:$0xf0] %vm3_vm0, %v160_v25  }
  0x90   :  { %v186_v26 = vpop.permute.xlu1 %185   ;;  %v177_v27 = vpop.permute.xlu0 %176  }
  0x91   :  { %189 = vst.msk [vmem:[#allocation0 + $0x43] ss:$8 sm:$0xf] %vm3_vm0, %v186_v26   ;;  %191 = vst.msk [vmem:[#allocation0 + $0x43] ss:$8 sm:$0xf0] %vm3_vm0, %v186_v26  }
  0x92   :  { %180 = vst.msk [vmem:[#allocation0 + $0x3] ss:$8 sm:$0xf] %vm3_vm0, %v177_v27   ;;  %182 = vst.msk [vmem:[#allocation0 + $0x3] ss:$8 sm:$0xf0] %vm3_vm0, %v177_v27  }
  0x94   :  { %v204_v28 = vpop.permute.xlu1 %203   ;;  %v195_v29 = vpop.permute.xlu0 %194  }
  0x95   :  { %207 = vst.msk [vmem:[#allocation0 + $0xc3] ss:$8 sm:$0xf] %vm3_vm0, %v204_v28   ;;  %209 = vst.msk [vmem:[#allocation0 + $0xc3] ss:$8 sm:$0xf0] %vm3_vm0, %v204_v28  }
  0x96   :  { %198 = vst.msk [vmem:[#allocation0 + $0x83] ss:$8 sm:$0xf] %vm3_vm0, %v195_v29   ;;  %200 = vst.msk [vmem:[#allocation0 + $0x83] ss:$8 sm:$0xf0] %vm3_vm0, %v195_v29  }
  0x98   :  { %v285_v30 = vld [vmem:[#allocation0 + $0x40] sm:$0xf]  ;;  %v291_v31 = vld [vmem:[#allocation0 + $0x48] sm:$0xf]  ;;  %v297_v32 = vld [vmem:[#allocation0 + $0x50] sm:$0xf]  ;;  %v222_v33 = vpop.permute.xlu1 %221   ;;  %v213_v34 = vpop.permute.xlu0 %212  }
  0x99   :  { %v303_v35 = vld [vmem:[#allocation0 + $0x58] sm:$0xf]  ;;  %v309_v36 = vld [vmem:[#allocation0 + $0x60] sm:$0xf]  ;;  %v315_v37 = vld [vmem:[#allocation0 + $0x68] sm:$0xf] }
  0x9a   :  { %658 = vst [vmem:[%s983_s1 + $0x20] sm:$0xf] %v285_v30  ;;  %659 = vst [vmem:[%s983_s1 + $0x24] sm:$0xf] %v291_v31  ;;  %v321_v38 = vld [vmem:[#allocation0 + $0x70] sm:$0xf] }
  0x9b   :  { %660 = vst [vmem:[%s983_s1 + $0x28] sm:$0xf] %v297_v32  ;;  %225 = vst.msk [vmem:[#allocation0 + $0x143] ss:$8 sm:$0xf] %vm3_vm0, %v222_v33  }
  0x9c   :  { %227 = vst.msk [vmem:[#allocation0 + $0x143] ss:$8 sm:$0xf0] %vm3_vm0, %v222_v33   ;;  %216 = vst.msk [vmem:[#allocation0 + $0x103] ss:$8 sm:$0xf] %vm3_vm0, %v213_v34   ;;  %v231_v47 = vpop.permute.xlu0 %230  }
  0x9d   :  { %218 = vst.msk [vmem:[#allocation0 + $0x103] ss:$8 sm:$0xf0] %vm3_vm0, %v213_v34   ;;  %v327_v39 = vld [vmem:[#allocation0 + $0x78] sm:$0xf] }
  0x9e   :  { %v240_v40 = vld [vmem:[#allocation0] sm:$0xf]  ;;  %661 = vst [vmem:[%s983_s1 + $0x2c] sm:$0xf] %v303_v35  ;;  %662 = vst [vmem:[%s983_s1 + $0x30] sm:$0xf] %v309_v36 }
  0x9f   :  { %663 = vst [vmem:[%s983_s1 + $0x34] sm:$0xf] %v315_v37  ;;  %242 = vst [vmem:[%s983_s1] sm:$0xf] %v240_v40  ;;  %v244_v41 = vld [vmem:[#allocation0 + $0x8] sm:$0xf] }
  0xa0   :  { %v249_v42 = vld [vmem:[#allocation0 + $0x10] sm:$0xf]  ;;  %v255_v43 = vld [vmem:[#allocation0 + $0x18] sm:$0xf]  ;;  %664 = vst [vmem:[%s983_s1 + $0x38] sm:$0xf] %v321_v38 }
  0xa1   :  { %665 = vst [vmem:[%s983_s1 + $0x3c] sm:$0xf] %v327_v39  ;;  %651 = vst [vmem:[%s983_s1 + $0x4] sm:$0xf] %v244_v41  ;;  %v261_v44 = vld [vmem:[#allocation0 + $0x20] sm:$0xf] }
  0xa2   :  { %652 = vst [vmem:[%s983_s1 + $0x8] sm:$0xf] %v249_v42  ;;  %653 = vst [vmem:[%s983_s1 + $0xc] sm:$0xf] %v255_v43  ;;  %v267_v45 = vld [vmem:[#allocation0 + $0x28] sm:$0xf] }
  0xa3   :  { %v273_v46 = vld [vmem:[#allocation0 + $0x30] sm:$0xf]  ;;  %654 = vst [vmem:[%s983_s1 + $0x10] sm:$0xf] %v261_v44  ;;  %655 = vst [vmem:[%s983_s1 + $0x14] sm:$0xf] %v267_v45 }
  0xa4   :  { %656 = vst [vmem:[%s983_s1 + $0x18] sm:$0xf] %v273_v46  ;;  %v279_v48 = vld [vmem:[#allocation0 + $0x38] sm:$0xf]  ;;  %v381_v49 = vld [vmem:[#allocation0 + $0xc0] sm:$0xf] }
  0xa5   :  { %v387_v50 = vld [vmem:[#allocation0 + $0xc8] sm:$0xf]  ;;  %234 = vst.msk [vmem:[#allocation0 + $0x183] ss:$8 sm:$0xf] %vm3_vm0, %v231_v47  }
  0xa6   :  { %236 = vst.msk [vmem:[#allocation0 + $0x183] ss:$8 sm:$0xf0] %vm3_vm0, %v231_v47   ;;  %657 = vst [vmem:[%s983_s1 + $0x1c] sm:$0xf] %v279_v48 }
  0xa7   :  { %v393_v51 = vld [vmem:[#allocation0 + $0xd0] sm:$0xf]  ;;  %v399_v52 = vld [vmem:[#allocation0 + $0xd8] sm:$0xf]  ;;  %v405_v53 = vld [vmem:[#allocation0 + $0xe0] sm:$0xf] }
  0xa8   :  { %674 = vst [vmem:[%s983_s1 + $0x60] sm:$0xf] %v381_v49  ;;  %675 = vst [vmem:[%s983_s1 + $0x64] sm:$0xf] %v387_v50  ;;  %v411_v54 = vld [vmem:[#allocation0 + $0xe8] sm:$0xf] }
  0xa9   :  { %v417_v55 = vld [vmem:[#allocation0 + $0xf0] sm:$0xf]  ;;  %v423_v56 = vld [vmem:[#allocation0 + $0xf8] sm:$0xf]  ;;  %676 = vst [vmem:[%s983_s1 + $0x68] sm:$0xf] %v393_v51 }
  0xaa   :  { %677 = vst [vmem:[%s983_s1 + $0x6c] sm:$0xf] %v399_v52  ;;  %678 = vst [vmem:[%s983_s1 + $0x70] sm:$0xf] %v405_v53  ;;  %v333_v57 = vld [vmem:[#allocation0 + $0x80] sm:$0xf] }
  0xab   :  { %v339_v58 = vld [vmem:[#allocation0 + $0x88] sm:$0xf]  ;;  %v345_v59 = vld [vmem:[#allocation0 + $0x90] sm:$0xf]  ;;  %679 = vst [vmem:[%s983_s1 + $0x74] sm:$0xf] %v411_v54 }
  0xac   :  { %680 = vst [vmem:[%s983_s1 + $0x78] sm:$0xf] %v417_v55  ;;  %681 = vst [vmem:[%s983_s1 + $0x7c] sm:$0xf] %v423_v56  ;;  %v351_v60 = vld [vmem:[#allocation0 + $0x98] sm:$0xf] }
  0xad   :  { %v357_v61 = vld [vmem:[#allocation0 + $0xa0] sm:$0xf]  ;;  %v363_v62 = vld [vmem:[#allocation0 + $0xa8] sm:$0xf]  ;;  %666 = vst [vmem:[%s983_s1 + $0x40] sm:$0xf] %v333_v57 }
  0xae   :  { %667 = vst [vmem:[%s983_s1 + $0x44] sm:$0xf] %v339_v58  ;;  %668 = vst [vmem:[%s983_s1 + $0x48] sm:$0xf] %v345_v59  ;;  %v369_v63 = vld [vmem:[#allocation0 + $0xb0] sm:$0xf] }
  0xaf   :  { %v375_v0 = vld [vmem:[#allocation0 + $0xb8] sm:$0xf]  ;;  %v477_v1 = vld [vmem:[#allocation0 + $0x140] sm:$0xf]  ;;  %669 = vst [vmem:[%s983_s1 + $0x4c] sm:$0xf] %v351_v60 }
  0xb0   :  { %670 = vst [vmem:[%s983_s1 + $0x50] sm:$0xf] %v357_v61  ;;  %671 = vst [vmem:[%s983_s1 + $0x54] sm:$0xf] %v363_v62  ;;  %v483_v2 = vld [vmem:[#allocation0 + $0x148] sm:$0xf] }
  0xb1   :  { %690 = vst [vmem:[%s983_s1 + $0xa0] sm:$0xf] %v477_v1  ;;  %v489_v3 = vld [vmem:[#allocation0 + $0x150] sm:$0xf]  ;;  %v495_v4 = vld [vmem:[#allocation0 + $0x158] sm:$0xf] }
  0xb2   :  { %672 = vst [vmem:[%s983_s1 + $0x58] sm:$0xf] %v369_v63  ;;  %673 = vst [vmem:[%s983_s1 + $0x5c] sm:$0xf] %v375_v0  ;;  %v501_v5 = vld [vmem:[#allocation0 + $0x160] sm:$0xf] }
  0xb3   :  { %691 = vst [vmem:[%s983_s1 + $0xa4] sm:$0xf] %v483_v2  ;;  %692 = vst [vmem:[%s983_s1 + $0xa8] sm:$0xf] %v489_v3  ;;  %v507_v6 = vld [vmem:[#allocation0 + $0x168] sm:$0xf] }
  0xb4   :  { %693 = vst [vmem:[%s983_s1 + $0xac] sm:$0xf] %v495_v4  ;;  %v513_v7 = vld [vmem:[#allocation0 + $0x170] sm:$0xf]  ;;  %694 = vst [vmem:[%s983_s1 + $0xb0] sm:$0xf] %v501_v5 }
  0xb5   :  { %695 = vst [vmem:[%s983_s1 + $0xb4] sm:$0xf] %v507_v6  ;;  %696 = vst [vmem:[%s983_s1 + $0xb8] sm:$0xf] %v513_v7  ;;  %v519_v8 = vld [vmem:[#allocation0 + $0x178] sm:$0xf] }
  0xb6   :  { %v429_v9 = vld [vmem:[#allocation0 + $0x100] sm:$0xf]  ;;  %v435_v10 = vld [vmem:[#allocation0 + $0x108] sm:$0xf]  ;;  %697 = vst [vmem:[%s983_s1 + $0xbc] sm:$0xf] %v519_v8 }
  0xb7   :  { %v441_v11 = vld [vmem:[#allocation0 + $0x110] sm:$0xf]  ;;  %v447_v12 = vld [vmem:[#allocation0 + $0x118] sm:$0xf]  ;;  %v453_v13 = vld [vmem:[#allocation0 + $0x120] sm:$0xf] }
  0xb8   :  { %682 = vst [vmem:[%s983_s1 + $0x80] sm:$0xf] %v429_v9  ;;  %683 = vst [vmem:[%s983_s1 + $0x84] sm:$0xf] %v435_v10  ;;  %v459_v14 = vld [vmem:[#allocation0 + $0x128] sm:$0xf] }
  0xb9   :  { %v465_v15 = vld [vmem:[#allocation0 + $0x130] sm:$0xf]  ;;  %v471_v16 = vld [vmem:[#allocation0 + $0x138] sm:$0xf]  ;;  %684 = vst [vmem:[%s983_s1 + $0x88] sm:$0xf] %v441_v11 }
  0xba   :  { %685 = vst [vmem:[%s983_s1 + $0x8c] sm:$0xf] %v447_v12  ;;  %686 = vst [vmem:[%s983_s1 + $0x90] sm:$0xf] %v453_v13  ;;  %v525_v17 = vld [vmem:[#allocation0 + $0x180] sm:$0xf] }
  0xbb   :  { %v531_v18 = vld [vmem:[#allocation0 + $0x188] sm:$0xf]  ;;  %v537_v19 = vld [vmem:[#allocation0 + $0x190] sm:$0xf]  ;;  %687 = vst [vmem:[%s983_s1 + $0x94] sm:$0xf] %v459_v14 }
  0xbc   :  { %688 = vst [vmem:[%s983_s1 + $0x98] sm:$0xf] %v465_v15  ;;  %689 = vst [vmem:[%s983_s1 + $0x9c] sm:$0xf] %v471_v16  ;;  %v543_v20 = vld [vmem:[#allocation0 + $0x198] sm:$0xf] }
  0xbd   :  { %698 = vst [vmem:[%s983_s1 + $0xc0] sm:$0xf] %v525_v17  ;;  %699 = vst [vmem:[%s983_s1 + $0xc4] sm:$0xf] %v531_v18  ;;  %v549_v21 = vld [vmem:[#allocation0 + $0x1a0] sm:$0xf] }
  0xbe   :  { %700 = vst [vmem:[%s983_s1 + $0xc8] sm:$0xf] %v537_v19  ;;  %v555_v22 = vld [vmem:[#allocation0 + $0x1a8] sm:$0xf]  ;;  %701 = vst [vmem:[%s983_s1 + $0xcc] sm:$0xf] %v543_v20 }
  0xbf   :  { %702 = vst [vmem:[%s983_s1 + $0xd0] sm:$0xf] %v549_v21  ;;  %703 = vst [vmem:[%s983_s1 + $0xd4] sm:$0xf] %v555_v22  ;;  %v561_v23 = vld [vmem:[#allocation0 + $0x1b0] sm:$0xf] }
  0xc0   :  { %v567_v24 = vld [vmem:[#allocation0 + $0x1b8] sm:$0xf]  ;;  %704 = vst [vmem:[%s983_s1 + $0xd8] sm:$0xf] %v561_v23 }
  0xc1   :  { %705 = vst [vmem:[%s983_s1 + $0xdc] sm:$0xf] %v567_v24 }

// kernel: _lambda_.1
= control target key start
LH: loop header
LB: loop body
LE: loop exit
PB: predicated region body
PF: predicated region fallthrough
CT: control target
= control target key end

     0   :  { %s5151_s0 = inlined_call_operand.vmem [shape: f32[1,32,49], index: 0, kind: input, shape index: {}]   ;;  %s5152_s1 = inlined_call_operand.vmem [shape: f32[49,32], index: 1, kind: input, shape index: {}]   ;;  %s5153_s2 = inlined_call_operand.vmem [shape: f32[2,32,16], index: 2, kind: input, shape index: {}]   ;;  %s5154_s3 = inlined_call_operand.vmem [shape: f32[2,32,1], index: 3, kind: input, shape index: {}]   ;;  %s5155_s4 = inlined_call_operand.vmem [shape: f32[2,16,32], index: 4, kind: input, shape index: {}]   ;;  %s5156_s5 = inlined_call_operand.vmem [shape: f32[2,16,1], index: 5, kind: input, shape index: {}]   ;;  %s5157_s6 = inlined_call_operand.vmem [shape: f32[2,1,32], index: 6, kind: input, shape index: {}, may-alias: {6,8}]   ;;  %s5158_s7 = inlined_call_operand.vmem [shape: f32[2,1,32], index: 7, kind: input, shape index: {}, may-alias: {7,9}]   ;;  %s5159_s8 = inlined_call_operand.vmem [shape: f32[2,1,32], index: 8, kind: input, shape index: {}, may-alias: {6,8}]   ;;  %s5160_s9 = inlined_call_operand.vmem [shape: f32[2,1,32], index: 9, kind: input, shape index: {}, may-alias: {7,9}]   ;;  %s5161_s10 = inlined_call_operand.vmem [shape: f32[2,32,32], index: 10, kind: input, shape index: {}]   ;;  %s5162_s11 = inlined_call_operand.vmem [shape: f32[2,1,32], index: 11, kind: input, shape index: {}]   ;;  %s5163_s12 = inlined_call_operand.vmem [shape: f32[2,32,32], index: 12, kind: input, shape index: {}]   ;;  %s5164_s13 = inlined_call_operand.vmem [shape: f32[2,1,32], index: 13, kind: input, shape index: {}]   ;;  %s5165_s14 = inlined_call_operand.vmem [shape: f32[1,32], index: 14, kind: input, shape index: {}]   ;;  %s5166_s15 = inlined_call_operand.vmem [shape: f32[1,32], index: 15, kind: input, shape index: {}]   ;;  %s5167_s16 = inlined_call_operand.vmem [shape: f32[32,128], index: 16, kind: input, shape index: {}]   ;;  %s5168_s17 = inlined_call_operand.vmem [shape: f32[1,128], index: 17, kind: input, shape index: {}]   ;;  %s5169_s18 = inlined_call_operand.hbm [shape: f32[1,2,128], index: 18, kind: output, shape index: {}]  }
   0x1   :  { %5173 = sst [smem:[#allocation5_spill]] %s5151_s0 }
   0x2   :  { %5174 = sst [smem:[#allocation6_spill]] %s5152_s1 }
   0x3   :  { %5175 = sst [smem:[#allocation7_spill]] %s5153_s2 }
   0x4   :  { %s5176_s29 = sld [smem:[#allocation6_spill]]  ;;  %vm71_vm0 = vcmask 400384   ;;  %s5177_s27 = sld [smem:[#allocation5_spill]] }
   0xa   :  { %v64_v0 = vld [vmem:[%s5176_s29] sm:$0xff]  ;;  %v65_v1 = vld [vmem:[%s5176_s29 + $0x8] sm:$0xff]  ;;  %v66_v2 = vld [vmem:[%s5176_s29 + $0x10] sm:$0xff] }
   0xb   :  { %v3641_v3 = vpack.c.bf16 %v65_v1, %v64_v0  ;;  %v67_v4 = vld [vmem:[%s5176_s29 + $0x18] sm:$0xff]  ;;  %v68_v6 = vld [vmem:[%s5176_s29 + $0x20] sm:$0xff]  ;;  %v69_v7 = vld [vmem:[%s5176_s29 + $0x28] sm:$0xff] }
   0xc   :  { %v3645_v5 = vpack.c.bf16 %v67_v4, %v66_v2  ;;  %v60_v8 = vld [vmem:[%s5177_s27] sm:$0xff] }
   0xd   :  { %3642 = vmatprep.subr.bf16.mxu0 %v3641_v3  ;;  %3484 = vmatprep.mubr.msk.f32.mxu0 %vm71_vm0, %v60_v8 }
   0xe   :  { %23 = vsyncpa [#allocation3], 0  ;;  %3644 = vmatpush3.bf16.msra.mxu0 %v3641_v3  ;;  %v3649_v9 = vpack.c.bf16 %v69_v7, %v68_v6  ;;  %v70_v10 = vld [vmem:[%s5176_s29 + $0x30] sm:$0x1]  ;;  %vm84_vm1 = vcmask 1040384   ;;  %v61_v11 = vld [vmem:[%s5177_s27 + $0x8] sm:$0xff] }
   0xf   :  { %3646 = vmatprep.subr.bf16.mxu0 %v3645_v5  ;;  %v62_v12 = vld [vmem:[%s5177_s27 + $0x10] sm:$0xff]  ;;  %v63_v13 = vld [vmem:[%s5177_s27 + $0x18] sm:$0xff]  ;;  %v3890_v14 = vmov 0   ;;  %vm175_vm2 = vcmask 261120   ;;  %v262_v25 = vld [vmem:[%s5154_s3 + $0x8] sm:$0xff]  ;;  %s5178_s19 = sld [smem:[#allocation7_spill]] }
  0x10   :  { %3745 = vset.pattern.permute.xlu1 %v3890_v14  ;;  %3744 = vset.pattern.permute.xlu0 %v3890_v14  ;;  %v261_v26 = vld [vmem:[%s5154_s3] sm:$0xff]  ;;  %v263_v27 = vld [vmem:[%s5154_s3 + $0x10] sm:$0xff]  ;;  %v264_v28 = vld [vmem:[%s5154_s3 + $0x18] sm:$0xff]  ;;  %vm289_vm3 = vcmask 130048   ;;  %vm3892_vm4 = vmmov 0   ;;  %s3894_s0 = smov [#allocation2]  }
  0x11   :  { %v268_v36 = vld [vmem:[%s5156_s5 + $0x8] sm:$0xff]  ;;  %v267_v37 = vld [vmem:[%s5156_s5] sm:$0xff]  ;;  %s3239_s1 = sshll.u32 %s3894_s0, 4  ;;  %s3240_s1 = int_to_ptr.vmem [resolvable:$true] %s3239_s1 }
  0x12   :  { %3648 = vmatpush3.bf16.msra.mxu0 %v3645_v5  ;;  %v3252_v52 = vld [vmem:[%s5157_s6] ss:$0 sm:$0xff]  ;;  %s3866_s20 = scalar_lea.vmem %s3240_s1, 32  ;;  %p3871_p1 = scmp.lt.s32.totalorder %s3240_s1, %s3240_s1 }
  0x13   :  { %3650 = vmatprep.subr.bf16.mxu0 %v3649_v9  ;;  %v3253_v60 = vld [vmem:[%s5158_s7] ss:$0 sm:$0xff]  ;;  %p3867_p0 = scmp.ne.s32.totalorder %s3240_s1, %s3866_s20  ;;  %p3872_p2 = scmp.lt.s32.totalorder %s3866_s20, %s3866_s20 }
  0x15   :  { %v4062_v29 = vld [vmem:[%s5178_s19] sm:$0xff]  ;;  %v4093_v1 = vld [vmem:[%s5178_s19 + $0x8] sm:$0xff]  ;;  %v4098_v2 = vld [vmem:[%s5178_s19 + $0x10] sm:$0xff]  ;;  %p3873_p3 = por %p3872_p2, %p3871_p1 }
  0x16   :  { %3652 = vmatpush3.bf16.msra.mxu0 %v3649_v9  ;;  %3494 = vmatprep.mubr.msk.f32.mxu1 %vm289_vm3, %v4062_v29  ;;  %v4107_v3 = vld [vmem:[%s5178_s19 + $0x18] sm:$0xff] }
  0x17   :  { %3482 = vmatprep.subr.msk.mxu0 %vm84_vm1, %v70_v10  ;;  %p3874_p4 = pnand %p3873_p3, %p3867_p0 }
  0x1a   :  { %3483 = vmatpush3.msk.msra.mxu0 %vm84_vm1, %v70_v10 }
  0x1b   :  { %3485 = vmatmul.mubr.msk.f32.vlgmr.msra.gmra.mrb[0].mxu0 %vm71_vm0, %v61_v11 }
  0x1c   :  { %3487 = vmatprep.mubr.msk.f32.mxu0 %vm71_vm0, %v62_v12 }
  0x1f   :  { %3488 = vmatmul.mubr.msk.f32.gmra.mrb[2].mxu0 %vm71_vm0, %v63_v13 }
  0xee   :  { %v4029_v15 = vpop.f32.mrb[0].mxu0 }
  0xef   :  { %v4031_v16 = vpop.f32.mrb[1].mxu0  ;;  %v194_v20 = vmul.f32 %v4029_v15, %v4029_v15  ;;  %v179_v23 = vsel %vm175_vm2, %v4029_v15, 0.0 }
  0xf0   :  { %v176_v17 = vsel %vm175_vm2, %v4031_v16, 0.0  ;;  %v193_v18 = vmul.f32 %v4031_v16, %v4031_v16 }
  0xf1   :  { %177 = vadd.xlane.f32.xlu0 %v176_v17  ;;  %v200_v24 = vsel %vm175_vm2, %v194_v20, 0.0 }
  0xf2   :  { %v197_v19 = vsel %vm175_vm2, %v193_v18, 0.0  ;;  %v4040_v21 = vpop.f32.mrb[2].mxu0 }
  0xf3   :  { %198 = vadd.xlane.f32.xlu1 %v197_v19  ;;  %v4042_v22 = vpop.f32.mrb[3].mxu0  ;;  %v185_v30 = vsel %vm175_vm2, %v4040_v21, 0.0  ;;  %v196_v34 = vmul.f32 %v4040_v21, %v4040_v21 }
  0xf4   :  { %v182_v31 = vsel %vm175_vm2, %v4042_v22, 0.0  ;;  %v195_v32 = vmul.f32 %v4042_v22, %v4042_v22 }
  0xf5   :  { %180 = vadd.xlane.f32.xlu0 %v179_v23  ;;  %v206_v35 = vsel %vm175_vm2, %v196_v34, 0.0 }
  0xf6   :  { %v203_v33 = vsel %vm175_vm2, %v195_v32, 0.0 }
  0xf7   :  { %201 = vadd.xlane.f32.xlu1 %v200_v24 }
 0x108   :  { %276 = vperm.xlu1 %3745, %v262_v25  }
 0x10b   :  { %271 = vperm.xlu0 %3744, %v261_v26  }
 0x10c   :  { %281 = vperm.xlu1 %3745, %v263_v27  }
 0x110   :  { %286 = vperm.xlu1 %3745, %v264_v28  }
 0x12a   :  { %186 = vadd.xlane.f32.xlu0 %v185_v30 }
 0x134   :  { %183 = vadd.xlane.f32.xlu1 %v182_v31 }
 0x138   :  { %204 = vadd.xlane.f32.xlu1 %v203_v33 }
 0x13c   :  { %207 = vadd.xlane.f32.xlu1 %v206_v35 }
 0x140   :  { %526 = vperm.xlu0 %3744, %v268_v36  }
 0x14d   :  { %521 = vperm.xlu1 %3745, %v267_v37  }
 0x17e   :  { %v178_v38 = vpop.xlane.xlu0 %177 }
 0x17f   :  { %v189_v39 = vmul.f32 0.03125, %v178_v38  ;;  %v265_v38 = vld [vmem:[%s5155_s4] sm:$0xff] }
 0x180   :  { %v199_v40 = vpop.xlane.xlu1 %198  ;;  %3529 = vmatprep.mubr.msk.f32.mxu0 %vm175_vm2, %v265_v38 }
 0x181   :  { %v213_v41 = vmul.f32 %v189_v39, %v189_v39  ;;  %v209_v42 = vmul.f32 0.03125, %v199_v40  ;;  %v229_v55 = vsub.f32 %v4031_v16, %v189_v39 }
 0x182   :  { %v181_v43 = vpop.xlane.xlu0 %180 }
 0x183   :  { %v217_v44 = vsub.f32 %v209_v42, %v213_v41  ;;  %v190_v45 = vmul.f32 0.03125, %v181_v43 }
 0x184   :  { %v202_v46 = vpop.xlane.xlu1 %201 }
 0x185   :  { %v221_v47 = vadd.f32 1e-05, %v217_v44  ;;  %v214_v48 = vmul.f32 %v190_v45, %v190_v45  ;;  %v210_v49 = vmul.f32 0.03125, %v202_v46  ;;  %v230_v57 = vsub.f32 %v4029_v15, %v190_v45 }
 0x187   :  { %3746 = vrsqrt.f32 %v221_v47  ;;  %v218_v50 = vsub.f32 %v210_v49, %v214_v48 }
 0x188   :  { %v4111_v4 = vpop.permute.xlu1 %276 }
 0x189   :  { %v222_v51 = vadd.f32 1e-05, %v218_v50 }
 0x18a   :  { %v4117_v7 = vpop.permute.xlu0 %271 }
 0x18b   :  { %3748 = vrsqrt.f32 %v222_v51 }
 0x18c   :  { %v4113_v5 = vpop.permute.xlu1 %281 }
 0x190   :  { %v4115_v6 = vpop.permute.xlu1 %286 }
 0x191   :  { %v3747_v53 = vpop.eup %3746 }
 0x192   :  { %v239_v54 = vmul.f32 %v3747_v53, %v3252_v52 }
 0x194   :  { %v243_v59 = vmul.f32 %v239_v54, %v229_v55 }
 0x195   :  { %v3749_v56 = vpop.eup %3748 }
 0x196   :  { %v240_v58 = vmul.f32 %v3749_v56, %v3252_v52  ;;  %v253_v62 = vadd.f32 %v3253_v60, %v243_v59 }
 0x198   :  { %v244_v61 = vmul.f32 %v240_v58, %v230_v57 }
 0x19a   :  { %v254_v63 = vadd.f32 %v3253_v60, %v244_v61 }
 0x19c   :  { %v3653_v0 = vpack.c.bf16 %v254_v63, %v253_v62 }
 0x19e   :  { %3654 = vmatprep.subr.bf16.mxu1 %v3653_v0 }
 0x19f   :  { %3656 = vmatpush3.bf16.msra.mxu1 %v3653_v0 }
 0x1a2   :  { %3495 = vmatmul.mubr.msk.f32.vlgmr.msra.gmra.mrb[0].mxu1 %vm289_vm3, %v4093_v1 }
 0x1a3   :  { %3497 = vmatprep.mubr.msk.f32.mxu1 %vm289_vm3, %v4098_v2 }
 0x1a6   :  { %3498 = vmatmul.mubr.msk.f32.gmra.mrb[2].mxu1 %vm289_vm3, %v4107_v3 }
 0x1a7   :  { %3508 = vmatprep.mubr.msk.f32.mxu1 %vm175_vm2, %v265_v38 }
 0x1b7   :  { %v187_v9 = vpop.xlane.xlu0 %186 }
 0x1b8   :  { %v192_v12 = vmul.f32 0.03125, %v187_v9 }
 0x1ba   :  { %v216_v18 = vmul.f32 %v192_v12, %v192_v12  ;;  %v232_v30 = vsub.f32 %v4040_v21, %v192_v12 }
 0x1c1   :  { %v184_v8 = vpop.xlane.xlu1 %183 }
 0x1c2   :  { %v191_v10 = vmul.f32 0.03125, %v184_v8 }
 0x1c4   :  { %v215_v11 = vmul.f32 %v191_v10, %v191_v10  ;;  %v231_v26 = vsub.f32 %v4042_v22, %v191_v10 }
 0x1c5   :  { %v205_v13 = vpop.xlane.xlu1 %204 }
 0x1c6   :  { %v211_v14 = vmul.f32 0.03125, %v205_v13 }
 0x1c8   :  { %v219_v17 = vsub.f32 %v211_v14, %v215_v11 }
 0x1c9   :  { %v208_v19 = vpop.xlane.xlu1 %207 }
 0x1ca   :  { %v223_v20 = vadd.f32 1e-05, %v219_v17  ;;  %v212_v23 = vmul.f32 0.03125, %v208_v19 }
 0x1cc   :  { %3750 = vrsqrt.f32 %v223_v20  ;;  %v220_v24 = vsub.f32 %v212_v23, %v216_v18 }
 0x1ce   :  { %v224_v25 = vadd.f32 1e-05, %v220_v24 }
 0x1d0   :  { %3752 = vrsqrt.f32 %v224_v25 }
 0x1d6   :  { %v3751_v27 = vpop.eup %3750 }
 0x1d7   :  { %v241_v28 = vmul.f32 %v3751_v27, %v3252_v52 }
 0x1d9   :  { %v245_v31 = vmul.f32 %v241_v28, %v231_v26 }
 0x1da   :  { %v3753_v32 = vpop.eup %3752 }
 0x1db   :  { %v242_v33 = vmul.f32 %v3753_v32, %v3252_v52  ;;  %v255_v35 = vadd.f32 %v3253_v60, %v245_v31 }
 0x1dd   :  { %v246_v34 = vmul.f32 %v242_v33, %v232_v30 }
 0x1df   :  { %v256_v36 = vadd.f32 %v3253_v60, %v246_v34 }
 0x1e1   :  { %v4121_v37 = vpack.c.bf16 %v256_v36, %v255_v35 }
 0x275   :  { %v3496_v39 = vpop.f32.mrb[0].mxu1 }
 0x276   :  { %v4129_v40 = vadd.f32 %v3496_v39, %v4111_v4  ;;  %v368_v41 = vpop.f32.mrb[1].mxu1 }
 0x277   :  { %v4132_v42 = vadd.f32 %v368_v41, %v4117_v7 }
 0x278   :  { %v392_v43 = vmul.f32 0.70710677, %v4129_v40 }
 0x279   :  { %v391_v44 = vmul.f32 0.70710677, %v4132_v42  ;;  %v3499_v45 = vpop.f32.mrb[2].mxu1 }
 0x27a   :  { %v4136_v46 = vclamps-f32 %v392_v43, 4.0  ;;  %v4139_v47 = vadd.f32 %v3499_v45, %v4115_v6  ;;  %v378_v48 = vpop.f32.mrb[3].mxu1 }
 0x27b   :  { %v4141_v49 = vclamps-f32 %v391_v44, 4.0  ;;  %v4144_v50 = vadd.f32 %v378_v48, %v4113_v5 }
 0x27c   :  { %v4148_v51 = vmul.f32 %v4136_v46, %v4136_v46  ;;  %v394_v52 = vmul.f32 0.70710677, %v4139_v47 }
 0x27d   :  { %v4153_v53 = vmul.f32 %v4141_v49, %v4141_v49  ;;  %v393_v54 = vmul.f32 0.70710677, %v4144_v50 }
 0x27e   :  { %v408_v55 = vmul.f32 -2.7261424e-10, %v4148_v51  ;;  %v460_v56 = vmul.f32 -1.45660715e-05, %v4148_v51  ;;  %v4158_v57 = vclamps-f32 %v394_v52, 4.0 }
 0x27f   :  { %v407_v58 = vmul.f32 -2.7261424e-10, %v4153_v53  ;;  %v459_v59 = vmul.f32 -1.45660715e-05, %v4153_v53  ;;  %v4162_v60 = vclamps-f32 %v393_v54, 4.0 }
 0x280   :  { %v412_v61 = vadd.f32 2.7706815e-08, %v408_v55  ;;  %v464_v62 = vadd.f32 -0.00021337405, %v460_v56  ;;  %v4166_v63 = vmul.f32 %v4158_v57, %v4158_v57 }
 0x281   :  { %v411_v0 = vadd.f32 2.7706815e-08, %v407_v58  ;;  %v463_v8 = vadd.f32 -0.00021337405, %v459_v59  ;;  %v4170_v9 = vmul.f32 %v4162_v60, %v4162_v60 }
 0x282   :  { %v416_v10 = vmul.f32 %v412_v61, %v4148_v51  ;;  %v468_v11 = vmul.f32 %v464_v62, %v4148_v51  ;;  %v410_v12 = vmul.f32 -2.7261424e-10, %v4166_v63  ;;  %v462_v13 = vmul.f32 -1.45660715e-05, %v4166_v63 }
 0x283   :  { %v415_v14 = vmul.f32 %v411_v0, %v4153_v53  ;;  %v467_v17 = vmul.f32 %v463_v8, %v4153_v53  ;;  %v409_v18 = vmul.f32 -2.7261424e-10, %v4170_v9  ;;  %v461_v19 = vmul.f32 -1.45660715e-05, %v4170_v9 }
 0x284   :  { %v420_v20 = vadd.f32 -2.101024e-06, %v416_v10  ;;  %v472_v23 = vadd.f32 -0.001682827, %v468_v11  ;;  %v414_v24 = vadd.f32 2.7706815e-08, %v410_v12 }
 0x285   :  { %v419_v25 = vadd.f32 -2.101024e-06, %v415_v14  ;;  %v471_v26 = vadd.f32 -0.001682827, %v467_v17  ;;  %v466_v27 = vadd.f32 -0.00021337405, %v462_v13 }
 0x286   :  { %v424_v28 = vmul.f32 %v420_v20, %v4148_v51  ;;  %v476_v30 = vmul.f32 %v472_v23, %v4148_v51  ;;  %v418_v31 = vmul.f32 %v414_v24, %v4166_v63  ;;  %v413_v32 = vadd.f32 2.7706815e-08, %v409_v18 }
 0x287   :  { %v423_v33 = vmul.f32 %v419_v25, %v4153_v53  ;;  %v475_v34 = vmul.f32 %v471_v26, %v4153_v53  ;;  %v470_v35 = vmul.f32 %v466_v27, %v4166_v63  ;;  %v465_v36 = vadd.f32 -0.00021337405, %v461_v19 }
 0x288   :  { %v428_v38 = vadd.f32 -5.6925062e-05, %v424_v28  ;;  %v480_v39 = vadd.f32 -0.0073733293, %v476_v30  ;;  %v422_v41 = vadd.f32 -2.101024e-06, %v418_v31  ;;  %v417_v43 = vmul.f32 %v413_v32, %v4170_v9 }
 0x289   :  { %v427_v44 = vadd.f32 -5.6925062e-05, %v423_v33  ;;  %v479_v45 = vadd.f32 -0.0073733293, %v475_v34  ;;  %v474_v48 = vadd.f32 -0.001682827, %v470_v35  ;;  %v469_v52 = vmul.f32 %v465_v36, %v4170_v9 }
 0x28a   :  { %v432_v54 = vmul.f32 %v428_v38, %v4148_v51  ;;  %v484_v55 = vmul.f32 %v480_v39, %v4148_v51  ;;  %v426_v56 = vmul.f32 %v422_v41, %v4166_v63  ;;  %v421_v58 = vadd.f32 -2.101024e-06, %v417_v43 }
 0x28b   :  { %v431_v59 = vmul.f32 %v427_v44, %v4153_v53  ;;  %v483_v61 = vmul.f32 %v479_v45, %v4153_v53  ;;  %v478_v62 = vmul.f32 %v474_v48, %v4166_v63  ;;  %v473_v0 = vadd.f32 -0.001682827, %v469_v52 }
 0x28c   :  { %v436_v8 = vadd.f32 -0.00073499064, %v432_v54  ;;  %v488_v10 = vadd.f32 -0.014264739, %v484_v55  ;;  %v430_v11 = vadd.f32 -5.6925062e-05, %v426_v56  ;;  %v425_v12 = vmul.f32 %v421_v58, %v4170_v9 }
 0x28d   :  { %v435_v13 = vadd.f32 -0.00073499064, %v431_v59  ;;  %v487_v14 = vadd.f32 -0.014264739, %v483_v61  ;;  %v482_v17 = vadd.f32 -0.0073733293, %v478_v62  ;;  %v477_v18 = vmul.f32 %v473_v0, %v4170_v9 }
 0x28e   :  { %v440_v19 = vmul.f32 %v436_v8, %v4148_v51  ;;  %3754 = vrcp.f32 %v488_v10  ;;  %v434_v20 = vmul.f32 %v430_v11, %v4166_v63  ;;  %v429_v23 = vadd.f32 -5.6925062e-05, %v425_v12 }
 0x28f   :  { %v439_v24 = vmul.f32 %v435_v13, %v4153_v53  ;;  %3756 = vrcp.f32 %v487_v14  ;;  %v486_v25 = vmul.f32 %v482_v17, %v4166_v63  ;;  %v481_v26 = vadd.f32 -0.0073733293, %v477_v18 }
 0x290   :  { %v438_v27 = vadd.f32 -0.00073499064, %v434_v20  ;;  %v433_v28 = vmul.f32 %v429_v23, %v4170_v9  ;;  %v444_v30 = vadd.f32 -0.0029546, %v440_v19 }
 0x291   :  { %v490_v31 = vadd.f32 -0.014264739, %v486_v25  ;;  %v485_v32 = vmul.f32 %v481_v26, %v4170_v9  ;;  %v443_v33 = vadd.f32 -0.0029546, %v439_v24 }
 0x292   :  { %v442_v34 = vmul.f32 %v438_v27, %v4166_v63  ;;  %v437_v35 = vadd.f32 -0.00073499064, %v433_v28  ;;  %v448_v39 = vmul.f32 %v444_v30, %v4148_v51 }
 0x293   :  { %3758 = vrcp.f32 %v490_v31  ;;  %v489_v36 = vadd.f32 -0.014264739, %v485_v32  ;;  %v447_v41 = vmul.f32 %v443_v33, %v4153_v53  ;;  %v390_v32 = vmul.f32 0.5, %v4139_v47  ;;  %v4233_v47 = vpop.permute.xlu0 %526 }
 0x294   :  { %v441_v38 = vmul.f32 %v437_v35, %v4170_v9  ;;  %v446_v43 = vadd.f32 -0.0029546, %v442_v34  ;;  %v452_v52 = vadd.f32 -0.016096033, %v448_v39  ;;  %v4235_v39 = vpop.permute.xlu1 %521 }
 0x295   :  { %3760 = vrcp.f32 %v489_v36  ;;  %v451_v55 = vadd.f32 -0.016096033, %v447_v41 }
 0x296   :  { %v445_v45 = vadd.f32 -0.0029546, %v441_v38  ;;  %v450_v58 = vmul.f32 %v446_v43, %v4166_v63  ;;  %v456_v51 = vmul.f32 %v4136_v46, %v452_v52  ;;  %v388_v63 = vmul.f32 0.5, %v4129_v40 }
 0x297   :  { %v455_v53 = vmul.f32 %v4141_v49, %v451_v55 }
 0x298   :  { %v3755_v44 = vpop.eup %3754  ;;  %v449_v62 = vmul.f32 %v445_v45, %v4170_v9  ;;  %v454_v12 = vadd.f32 -0.016096033, %v450_v58  ;;  %v387_v9 = vmul.f32 0.5, %v4132_v42 }
 0x299   :  { %v3757_v48 = vpop.eup %3756  ;;  %v496_v54 = vmul.f32 %v3755_v44, %v488_v10 }
 0x29a   :  { %v495_v56 = vmul.f32 %v3757_v48, %v487_v14  ;;  %v453_v14 = vadd.f32 -0.016096033, %v449_v62  ;;  %v458_v46 = vmul.f32 %v4158_v57, %v454_v12 }
 0x29b   :  { %v500_v59 = vsub.f32 2.0, %v496_v54 }
 0x29c   :  { %v499_v61 = vsub.f32 2.0, %v495_v56  ;;  %v457_v30 = vmul.f32 %v4162_v60, %v453_v14  ;;  %v4219_v60 = vld [vmem:[%s5155_s4 + $0x8] sm:$0xff] }
 0x29d   :  { %v3759_v0 = vpop.eup %3758  ;;  %v504_v8 = vmul.f32 %v3755_v44, %v500_v59 }
 0x29e   :  { %v503_v11 = vmul.f32 %v3757_v48, %v499_v61  ;;  %v498_v13 = vmul.f32 %v3759_v0, %v490_v31 }
 0x29f   :  { %v3761_v17 = vpop.eup %3760  ;;  %v508_v18 = vmul.f32 %v504_v8, %v456_v51 }
 0x2a0   :  { %v507_v10 = vmul.f32 %v503_v11, %v455_v53  ;;  %v502_v19 = vsub.f32 2.0, %v498_v13  ;;  %v497_v20 = vmul.f32 %v3761_v17, %v489_v36  ;;  %v389_v36 = vmul.f32 0.5, %v4144_v50 }
 0x2a1   :  { %v512_v23 = vadd.f32 1.0, %v508_v18 }
 0x2a2   :  { %v511_v24 = vadd.f32 1.0, %v507_v10  ;;  %v506_v25 = vmul.f32 %v3759_v0, %v502_v19  ;;  %v501_v26 = vsub.f32 2.0, %v497_v20 }
 0x2a3   :  { %v516_v49 = vmul.f32 %v512_v23, %v388_v63 }
 0x2a4   :  { %v515_v27 = vmul.f32 %v511_v24, %v387_v9  ;;  %v510_v28 = vmul.f32 %v506_v25, %v458_v46  ;;  %v505_v31 = vmul.f32 %v3761_v17, %v501_v26 }
 0x2a6   :  { %v514_v33 = vadd.f32 1.0, %v510_v28  ;;  %v509_v34 = vmul.f32 %v505_v31, %v457_v30  ;;  %v3657_v35 = vpack.c.bf16 %v516_v49, %v515_v27 }
 0x2a8   :  { %v518_v40 = vmul.f32 %v514_v33, %v390_v32  ;;  %v513_v42 = vadd.f32 1.0, %v509_v34  ;;  %3658 = vmatprep.subr.bf16.mxu1 %v3657_v35 }
 0x2a9   :  { %3660 = vmatpush3.bf16.msra.mxu1 %v3657_v35 }
 0x2aa   :  { %v517_v57 = vmul.f32 %v513_v42, %v389_v36 }
 0x2ac   :  { %v3661_v38 = vpack.c.bf16 %v518_v40, %v517_v57 }
 0x2ae   :  { %3662 = vmatprep.subr.bf16.mxu1 %v3661_v38 }
 0x2af   :  { %3664 = vmatpush3.bf16.msra.mxu1 %v3661_v38 }
 0x2b0   :  { %3666 = vmatprep.subr.bf16.mxu1 %v4121_v37 }
 0x2b2   :  { %3509 = vmatmul.mubr.msk.f32.vlgmr.msra.gmra.mrb[4].mxu1 %vm175_vm2, %v4219_v60 }
 0x2b3   :  { %3668 = vmatpush3.bf16.msra.mxu1 %v4121_v37  ;;  %3515 = vmatprep.mubr.msk.f32.mxu1 %vm289_vm3, %v4062_v29 }
 0x2b6   :  { %3516 = vmatmul.mubr.msk.f32.vlgmr.msra.gmra.mrb[6].mxu1 %vm289_vm3, %v4093_v1 }
 0x2b7   :  { %3518 = vmatprep.mubr.msk.f32.mxu1 %vm289_vm3, %v4098_v2 }
 0x2ba   :  { %3519 = vmatmul.mubr.msk.f32.gmra.mrb[8].mxu1 %vm289_vm3, %v4107_v3 }
 0x385   :  { %v3510_v50 = vpop.f32.mrb[4].mxu1 }
 0x386   :  { %v4238_v41 = vadd.f32 %v3510_v50, %v4233_v47  ;;  %v601_v37 = vpop.f32.mrb[5].mxu1 }
 0x387   :  { %v4241_v29 = vadd.f32 %v601_v37, %v4235_v39 }
 0x388   :  { %v613_v1 = vmul.f32 0.70710677, %v4238_v41 }
 0x389   :  { %v612_v43 = vmul.f32 0.70710677, %v4241_v29  ;;  %v3517_v2 = vpop.f32.mrb[6].mxu1 }
 0x38a   :  { %v4245_v44 = vclamps-f32 %v613_v1, 4.0  ;;  %v4248_v3 = vadd.f32 %v3517_v2, %v4111_v4  ;;  %v742_v45 = vpop.f32.mrb[7].mxu1 }
 0x38b   :  { %v4250_v48 = vclamps-f32 %v612_v43, 4.0  ;;  %v4253_v52 = vadd.f32 %v742_v45, %v4117_v7 }
 0x38c   :  { %v4257_v54 = vmul.f32 %v4245_v44, %v4245_v44  ;;  %v766_v55 = vmul.f32 0.70710677, %v4248_v3 }
 0x38d   :  { %v4262_v56 = vmul.f32 %v4250_v48, %v4250_v48  ;;  %v765_v58 = vmul.f32 0.70710677, %v4253_v52  ;;  %v3520_v4 = vpop.f32.mrb[8].mxu1 }
 0x38e   :  { %v621_v59 = vmul.f32 -2.7261424e-10, %v4257_v54  ;;  %v647_v61 = vmul.f32 -1.45660715e-05, %v4257_v54  ;;  %v4267_v62 = vclamps-f32 %v766_v55, 4.0  ;;  %v4270_v7 = vadd.f32 %v3520_v4, %v4115_v6  ;;  %v752_v0 = vpop.f32.mrb[9].mxu1 }
 0x38f   :  { %v620_v51 = vmul.f32 -2.7261424e-10, %v4262_v56  ;;  %v646_v8 = vmul.f32 -1.45660715e-05, %v4262_v56  ;;  %v4274_v53 = vclamps-f32 %v765_v58, 4.0  ;;  %v4294_v31 = vadd.f32 %v752_v0, %v4113_v5 }
 0x390   :  { %v623_v11 = vadd.f32 2.7706815e-08, %v621_v59  ;;  %v649_v12 = vadd.f32 -0.00021337405, %v647_v61  ;;  %v4278_v13 = vmul.f32 %v4267_v62, %v4267_v62  ;;  %v768_v6 = vmul.f32 0.70710677, %v4270_v7 }
 0x391   :  { %v622_v17 = vadd.f32 2.7706815e-08, %v620_v51  ;;  %v648_v18 = vadd.f32 -0.00021337405, %v646_v8  ;;  %v4282_v10 = vmul.f32 %v4274_v53, %v4274_v53 }
 0x392   :  { %v625_v19 = vmul.f32 %v623_v11, %v4257_v54  ;;  %v651_v14 = vmul.f32 %v649_v12, %v4257_v54  ;;  %v782_v20 = vmul.f32 -2.7261424e-10, %v4278_v13  ;;  %v834_v63 = vmul.f32 -1.45660715e-05, %v4278_v13 }
 0x393   :  { %v624_v23 = vmul.f32 %v622_v17, %v4262_v56  ;;  %v650_v9 = vmul.f32 %v648_v18, %v4262_v56  ;;  %v781_v24 = vmul.f32 -2.7261424e-10, %v4282_v10  ;;  %v833_v46 = vmul.f32 -1.45660715e-05, %v4282_v10 }
 0x394   :  { %v627_v25 = vadd.f32 -2.101024e-06, %v625_v19  ;;  %v653_v26 = vadd.f32 -0.001682827, %v651_v14  ;;  %v786_v49 = vadd.f32 2.7706815e-08, %v782_v20 }
 0x395   :  { %v626_v27 = vadd.f32 -2.101024e-06, %v624_v23  ;;  %v652_v28 = vadd.f32 -0.001682827, %v650_v9  ;;  %v838_v30 = vadd.f32 -0.00021337405, %v834_v63 }
 0x396   :  { %v629_v32 = vmul.f32 %v627_v25, %v4257_v54  ;;  %v655_v33 = vmul.f32 %v653_v26, %v4257_v54  ;;  %v790_v34 = vmul.f32 %v786_v49, %v4278_v13  ;;  %v785_v35 = vadd.f32 2.7706815e-08, %v781_v24 }
 0x397   :  { %v628_v40 = vmul.f32 %v626_v27, %v4262_v56  ;;  %v654_v36 = vmul.f32 %v652_v28, %v4262_v56  ;;  %v842_v42 = vmul.f32 %v838_v30, %v4278_v13  ;;  %v837_v57 = vadd.f32 -0.00021337405, %v833_v46 }
 0x398   :  { %v631_v38 = vadd.f32 -5.6925062e-05, %v629_v32  ;;  %v657_v50 = vadd.f32 -0.0073733293, %v655_v33  ;;  %v794_v37 = vadd.f32 -2.101024e-06, %v790_v34  ;;  %v789_v5 = vmul.f32 %v785_v35, %v4282_v10 }
 0x399   :  { %v630_v1 = vadd.f32 -5.6925062e-05, %v628_v40  ;;  %v656_v43 = vadd.f32 -0.0073733293, %v654_v36  ;;  %v846_v2 = vadd.f32 -0.001682827, %v842_v42  ;;  %v841_v45 = vmul.f32 %v837_v57, %v4282_v10 }
 0x39a   :  { %v633_v55 = vmul.f32 %v631_v38, %v4257_v54  ;;  %v659_v58 = vmul.f32 %v657_v50, %v4257_v54  ;;  %v798_v4 = vmul.f32 %v794_v37, %v4278_v13  ;;  %v793_v59 = vadd.f32 -2.101024e-06, %v789_v5 }
 0x39b   :  { %v632_v61 = vmul.f32 %v630_v1, %v4262_v56  ;;  %v658_v0 = vmul.f32 %v656_v43, %v4262_v56  ;;  %v850_v51 = vmul.f32 %v846_v2, %v4278_v13  ;;  %v845_v8 = vadd.f32 -0.001682827, %v841_v45 }
 0x39c   :  { %v635_v11 = vadd.f32 -0.00073499064, %v633_v55  ;;  %v661_v12 = vadd.f32 -0.014264739, %v659_v58  ;;  %v802_v17 = vadd.f32 -5.6925062e-05, %v798_v4  ;;  %v797_v18 = vmul.f32 %v793_v59, %v4282_v10 }
 0x39d   :  { %v634_v19 = vadd.f32 -0.00073499064, %v632_v61  ;;  %v660_v14 = vadd.f32 -0.014264739, %v658_v0  ;;  %v854_v20 = vadd.f32 -0.0073733293, %v850_v51  ;;  %v849_v63 = vmul.f32 %v845_v8, %v4282_v10 }
 0x39e   :  { %v637_v23 = vmul.f32 %v635_v11, %v4257_v54  ;;  %3762 = vrcp.f32 %v661_v12  ;;  %v806_v9 = vmul.f32 %v802_v17, %v4278_v13  ;;  %v801_v24 = vadd.f32 -5.6925062e-05, %v797_v18 }
 0x39f   :  { %v636_v46 = vmul.f32 %v634_v19, %v4262_v56  ;;  %3764 = vrcp.f32 %v660_v14  ;;  %v858_v25 = vmul.f32 %v854_v20, %v4278_v13  ;;  %v853_v26 = vadd.f32 -0.0073733293, %v849_v63 }
 0x3a0   :  { %v639_v49 = vadd.f32 -0.0029546, %v637_v23  ;;  %v810_v27 = vadd.f32 -0.00073499064, %v806_v9  ;;  %v805_v28 = vmul.f32 %v801_v24, %v4282_v10  ;;  %v4317_v30 = vclamps-f32 %v768_v6, 4.0 }
 0x3a1   :  { %v638_v32 = vadd.f32 -0.0029546, %v636_v46  ;;  %v862_v33 = vadd.f32 -0.014264739, %v858_v25  ;;  %v857_v34 = vmul.f32 %v853_v26, %v4282_v10  ;;  %v767_v38 = vmul.f32 0.70710677, %v4294_v31 }
 0x3a2   :  { %v814_v35 = vmul.f32 %v810_v27, %v4278_v13  ;;  %v809_v40 = vadd.f32 -0.00073499064, %v805_v28  ;;  %v4323_v36 = vmul.f32 %v4317_v30, %v4317_v30  ;;  %v641_v42 = vmul.f32 %v639_v49, %v4257_v54 }
 0x3a3   :  { %3766 = vrcp.f32 %v862_v33  ;;  %v861_v57 = vadd.f32 -0.014264739, %v857_v34  ;;  %v640_v6 = vmul.f32 %v638_v32, %v4262_v56  ;;  %v4331_v43 = vclamps-f32 %v767_v38, 4.0 }
 0x3a4   :  { %v818_v50 = vadd.f32 -0.0029546, %v814_v35  ;;  %v813_v37 = vmul.f32 %v809_v40, %v4282_v10  ;;  %v784_v5 = vmul.f32 -2.7261424e-10, %v4323_v36  ;;  %v836_v1 = vmul.f32 -1.45660715e-05, %v4323_v36 }
 0x3a5   :  { %3768 = vrcp.f32 %v861_v57  ;;  %v611_v55 = vmul.f32 0.5, %v4238_v41  ;;  %v643_v58 = vadd.f32 -0.016096033, %v641_v42  ;;  %v4337_v56 = vmul.f32 %v4331_v43, %v4331_v43 }
 0x3a6   :  { %v822_v2 = vmul.f32 %v818_v50, %v4278_v13  ;;  %v817_v45 = vadd.f32 -0.0029546, %v813_v37  ;;  %v788_v54 = vadd.f32 2.7706815e-08, %v784_v5  ;;  %v840_v4 = vadd.f32 -0.00021337405, %v836_v1 }
 0x3a7   :  { %v642_v61 = vadd.f32 -0.016096033, %v640_v6  ;;  %v783_v18 = vmul.f32 -2.7261424e-10, %v4337_v56  ;;  %v835_v41 = vmul.f32 -1.45660715e-05, %v4337_v56  ;;  %v645_v9 = vmul.f32 %v4245_v44, %v643_v58 }
 0x3a8   :  { %v3763_v59 = vpop.eup %3762  ;;  %v826_v0 = vadd.f32 -0.016096033, %v822_v2  ;;  %v821_v51 = vmul.f32 %v817_v45, %v4282_v10  ;;  %v792_v8 = vmul.f32 %v788_v54, %v4323_v36  ;;  %v844_v13 = vmul.f32 %v840_v4, %v4323_v36 }
 0x3a9   :  { %v3765_v11 = vpop.eup %3764  ;;  %v665_v17 = vmul.f32 %v3763_v59, %v661_v12  ;;  %v610_v19 = vmul.f32 0.5, %v4241_v29  ;;  %v787_v10 = vadd.f32 2.7706815e-08, %v783_v18  ;;  %v644_v25 = vmul.f32 %v4250_v48, %v642_v61 }
 0x3aa   :  { %v664_v20 = vmul.f32 %v3765_v11, %v660_v14  ;;  %v825_v63 = vadd.f32 -0.016096033, %v821_v51  ;;  %v796_v23 = vadd.f32 -2.101024e-06, %v792_v8  ;;  %v848_v46 = vadd.f32 -0.001682827, %v844_v13 }
 0x3ab   :  { %v667_v24 = vsub.f32 2.0, %v665_v17  ;;  %v839_v49 = vadd.f32 -0.00021337405, %v835_v41  ;;  %v830_v32 = vmul.f32 %v4267_v62, %v826_v0  ;;  %v791_v14 = vmul.f32 %v787_v10, %v4337_v56 }
 0x3ac   :  { %v666_v26 = vsub.f32 2.0, %v664_v20  ;;  %v800_v12 = vmul.f32 %v796_v23, %v4323_v36  ;;  %v852_v29 = vmul.f32 %v848_v46, %v4323_v36  ;;  %v829_v48 = vmul.f32 %v4274_v53, %v825_v63 }
 0x3ad   :  { %v3767_v27 = vpop.eup %3766  ;;  %v669_v28 = vmul.f32 %v3763_v59, %v667_v24  ;;  %v843_v40 = vmul.f32 %v839_v49, %v4337_v56  ;;  %v795_v50 = vadd.f32 -2.101024e-06, %v791_v14 }
 0x3ae   :  { %v668_v34 = vmul.f32 %v3765_v11, %v666_v26  ;;  %v870_v35 = vmul.f32 %v3767_v27, %v862_v33  ;;  %v804_v44 = vadd.f32 -5.6925062e-05, %v800_v12  ;;  %v856_v6 = vadd.f32 -0.0073733293, %v852_v29 }
 0x3af   :  { %v3769_v42 = vpop.eup %3768  ;;  %v671_v38 = vmul.f32 %v669_v28, %v645_v9  ;;  %v799_v54 = vmul.f32 %v795_v50, %v4337_v56  ;;  %v847_v33 = vadd.f32 -0.001682827, %v843_v40 }
 0x3b0   :  { %v670_v37 = vmul.f32 %v668_v34, %v644_v25  ;;  %v874_v5 = vsub.f32 2.0, %v870_v35  ;;  %v869_v1 = vmul.f32 %v3769_v42, %v861_v57  ;;  %v808_v62 = vmul.f32 %v804_v44, %v4323_v36 }
 0x3b1   :  { %v673_v2 = vadd.f32 1.0, %v671_v38  ;;  %v860_v45 = vmul.f32 %v856_v6, %v4323_v36  ;;  %v803_v53 = vadd.f32 -5.6925062e-05, %v799_v54  ;;  %v851_v8 = vmul.f32 %v847_v33, %v4337_v56 }
 0x3b2   :  { %v672_v58 = vadd.f32 1.0, %v670_v37  ;;  %v878_v4 = vmul.f32 %v3767_v27, %v874_v5  ;;  %v873_v59 = vsub.f32 2.0, %v869_v1  ;;  %v812_v61 = vadd.f32 -0.00073499064, %v808_v62 }
 0x3b3   :  { %v675_v0 = vmul.f32 %v673_v2, %v611_v55  ;;  %v864_v51 = vadd.f32 -0.014264739, %v860_v45  ;;  %v807_v41 = vmul.f32 %v803_v53, %v4337_v56  ;;  %v855_v20 = vadd.f32 -0.0073733293, %v851_v8 }
 0x3b4   :  { %v674_v11 = vmul.f32 %v672_v58, %v610_v19  ;;  %v882_v17 = vmul.f32 %v878_v4, %v830_v32  ;;  %v877_v57 = vmul.f32 %v3769_v42, %v873_v59  ;;  %v816_v13 = vmul.f32 %v812_v61, %v4323_v36 }
 0x3b5   :  { %v4359_v18 = vadd.f32 %v4029_v15, %v675_v0  ;;  %3770 = vrcp.f32 %v864_v51  ;;  %v762_v55 = vmul.f32 0.5, %v4248_v3  ;;  %v761_v19 = vmul.f32 0.5, %v4253_v52  ;;  %v1123_v0 = vld [vmem:[%s5161_s10 + $0x18] sm:$0xff] }
 0x3b6   :  { %v4363_v63 = vadd.f32 %v674_v11, %v4031_v16  ;;  %v886_v23 = vadd.f32 1.0, %v882_v17  ;;  %v881_v9 = vmul.f32 %v877_v57, %v829_v48  ;;  %v811_v24 = vadd.f32 -0.00073499064, %v807_v41 }
 0x3b7   :  { %v859_v46 = vmul.f32 %v855_v20, %v4337_v56  ;;  %v1043_v15 = vsel %vm175_vm2, %v4359_v18, 0.0  ;;  %v820_v26 = vadd.f32 -0.0029546, %v816_v13  ;;  %v1057_v29 = vmul.f32 %v4359_v18, %v4359_v18 }
 0x3b8   :  { %v890_v10 = vmul.f32 %v886_v23, %v762_v55  ;;  %v885_v25 = vadd.f32 1.0, %v881_v9  ;;  %1044 = vadd.xlane.f32.xlu0 %v1043_v15  ;;  %v1040_v16 = vsel %vm175_vm2, %v4363_v63, 0.0  ;;  %v1056_v3 = vmul.f32 %v4363_v63, %v4363_v63 }
 0x3b9   :  { %v863_v12 = vadd.f32 -0.014264739, %v859_v46  ;;  %1041 = vadd.xlane.f32.xlu1 %v1040_v16  ;;  %v815_v52 = vmul.f32 %v811_v24, %v4337_v56  ;;  %v824_v27 = vmul.f32 %v820_v26, %v4323_v36  ;;  %v1063_v40 = vsel %vm175_vm2, %v1057_v29, 0.0  ;;  %v4402_v46 = vld [vmem:[%s5159_s8] ss:$0 sm:$0xff] }
 0x3ba   :  { %v889_v49 = vmul.f32 %v885_v25, %v761_v19  ;;  %v1060_v32 = vsel %vm175_vm2, %v1056_v3, 0.0  ;;  %v764_v54 = vmul.f32 0.5, %v4270_v7  ;;  %v763_v4 = vmul.f32 0.5, %v4294_v31  ;;  %v1121_v7 = vld [vmem:[%s5161_s10 + $0x8] sm:$0xff]  ;;  %v1122_v31 = vld [vmem:[%s5161_s10 + $0x10] sm:$0xff] }
 0x3bb   :  { %3772 = vrcp.f32 %v863_v12  ;;  %v819_v14 = vadd.f32 -0.0029546, %v815_v52  ;;  %v828_v35 = vadd.f32 -0.016096033, %v824_v27  ;;  %v4409_v26 = vld [vmem:[%s5160_s9] ss:$0 sm:$0xff] }
 0x3bc   :  { %v3669_v28 = vpack.c.bf16 %v890_v10, %v889_v49 }
 0x3bd   :  { %1061 = vadd.xlane.f32.xlu1 %v1060_v32  ;;  %v823_v38 = vmul.f32 %v819_v14, %v4337_v56  ;;  %v832_v36 = vmul.f32 %v4317_v30, %v828_v35  ;;  %v1120_v30 = vld [vmem:[%s5161_s10] sm:$0xff] }
 0x3be   :  { %3670 = vmatprep.subr.bf16.mxu0 %v3669_v28 }
 0x3bf   :  { %v3771_v34 = vpop.eup %3770  ;;  %3672 = vmatpush3.bf16.msra.mxu0 %v3669_v28  ;;  %v827_v37 = vadd.f32 -0.016096033, %v823_v38 }
 0x3c0   :  { %v872_v44 = vmul.f32 %v3771_v34, %v864_v51  ;;  %v3681_v51 = vpack.c.bf16 %v1123_v0, %v1122_v31 }
 0x3c1   :  { %1064 = vadd.xlane.f32.xlu1 %v1063_v40  ;;  %v831_v2 = vmul.f32 %v4331_v43, %v827_v37  ;;  %v3677_v43 = vpack.c.bf16 %v1121_v7, %v1120_v30 }
 0x3c2   :  { %v876_v42 = vsub.f32 2.0, %v872_v44 }
 0x3c3   :  { %3678 = vmatprep.subr.bf16.mxu1 %v3677_v43 }
 0x3c4   :  { %v880_v48 = vmul.f32 %v3771_v34, %v876_v42  ;;  %3680 = vmatpush3.bf16.msra.mxu1 %v3677_v43 }
 0x3c5   :  { %v3773_v6 = vpop.eup %3772  ;;  %3682 = vmatprep.subr.bf16.mxu1 %v3681_v51 }
 0x3c6   :  { %v884_v50 = vmul.f32 %v880_v48, %v832_v36  ;;  %v871_v5 = vmul.f32 %v3773_v6, %v863_v12 }
 0x3c8   :  { %v875_v1 = vsub.f32 2.0, %v871_v5  ;;  %v888_v62 = vadd.f32 1.0, %v884_v50  ;;  %3684 = vmatpush3.bf16.msra.mxu1 %v3681_v51 }
 0x3ca   :  { %v879_v45 = vmul.f32 %v3773_v6, %v875_v1  ;;  %v892_v58 = vmul.f32 %v888_v62, %v764_v54 }
 0x3cc   :  { %v883_v33 = vmul.f32 %v879_v45, %v831_v2 }
 0x3ce   :  { %v887_v59 = vadd.f32 1.0, %v883_v33 }
 0x3d0   :  { %v891_v56 = vmul.f32 %v887_v59, %v763_v4 }
 0x3d2   :  { %v3673_v61 = vpack.c.bf16 %v892_v58, %v891_v56 }
 0x3d4   :  { %3674 = vmatprep.subr.bf16.mxu0 %v3673_v61 }
 0x3d5   :  { %3676 = vmatpush3.bf16.msra.mxu0 %v3673_v61 }
 0x3d8   :  { %3530 = vmatmul.mubr.msk.f32.vlgmr.msra.gmra.mrb[4].mxu0 %vm175_vm2, %v4219_v60 }
 0x445   :  { %v1045_v8 = vpop.xlane.xlu0 %1044 }
 0x446   :  { %v1042_v60 = vpop.xlane.xlu1 %1041  ;;  %v1053_v17 = vmul.f32 0.03125, %v1045_v8 }
 0x447   :  { %v1052_v53 = vmul.f32 0.03125, %v1042_v60 }
 0x448   :  { %v1077_v55 = vmul.f32 %v1053_v17, %v1053_v17  ;;  %v1093_v3 = vsub.f32 %v4359_v18, %v1053_v17 }
 0x449   :  { %v1076_v57 = vmul.f32 %v1052_v53, %v1052_v53  ;;  %v1092_v10 = vsub.f32 %v4363_v63, %v1052_v53 }
 0x44a   :  { %v1062_v11 = vpop.xlane.xlu1 %1061 }
 0x44b   :  { %v1072_v13 = vmul.f32 0.03125, %v1062_v11 }
 0x44d   :  { %v1080_v41 = vsub.f32 %v1072_v13, %v1076_v57 }
 0x44e   :  { %v1065_v20 = vpop.xlane.xlu1 %1064 }
 0x44f   :  { %v1084_v23 = vadd.f32 1e-05, %v1080_v41  ;;  %v1073_v9 = vmul.f32 0.03125, %v1065_v20 }
 0x451   :  { %3774 = vrsqrt.f32 %v1084_v23  ;;  %v1081_v19 = vsub.f32 %v1073_v9, %v1077_v55 }
 0x453   :  { %v1085_v24 = vadd.f32 1e-05, %v1081_v19 }
 0x455   :  { %3776 = vrsqrt.f32 %v1085_v24 }
 0x45b   :  { %v3775_v15 = vpop.eup %3774 }
 0x45c   :  { %v1102_v25 = vmul.f32 %v3775_v15, %v4402_v46 }
 0x45e   :  { %v1106_v16 = vmul.f32 %v1102_v25, %v1092_v10 }
 0x45f   :  { %v3777_v12 = vpop.eup %3776 }
 0x460   :  { %v1103_v49 = vmul.f32 %v3777_v12, %v4402_v46  ;;  %v1116_v52 = vadd.f32 %v4409_v26, %v1106_v16 }
 0x462   :  { %v1107_v27 = vmul.f32 %v1103_v49, %v1093_v3  ;;  %3540 = vmatprep.mubr.msk.f32.mxu1 %vm175_vm2, %v1116_v52 }
 0x464   :  { %v1117_v28 = vadd.f32 %v4409_v26, %v1107_v27 }
 0x466   :  { %3541 = vmatmul.mubr.msk.f32.vlgmr.msra.gmra.mrb[10].mxu1 %vm175_vm2, %v1117_v28 }
 0x4ab   :  { %v3531_v32 = vpop.f32.mrb[4].mxu0 }
 0x4ac   :  { %v4418_v29 = vadd.f32 %v3531_v32, %v4233_v47  ;;  %v959_v14 = vpop.f32.mrb[5].mxu0 }
 0x4ad   :  { %v960_v34 = vadd.f32 %v959_v14, %v4235_v39 }
 0x4ae   :  { %v971_v35 = vmul.f32 0.70710677, %v4418_v29 }
 0x4af   :  { %v970_v44 = vmul.f32 0.70710677, %v960_v34 }
 0x4b0   :  { %v3277_v40 = vclamps-f32 %v971_v35, 4.0 }
 0x4b1   :  { %v3276_v42 = vclamps-f32 %v970_v44, 4.0 }
 0x4b2   :  { %v977_v38 = vmul.f32 %v3277_v40, %v3277_v40 }
 0x4b3   :  { %v976_v36 = vmul.f32 %v3276_v42, %v3276_v42 }
 0x4b4   :  { %v979_v48 = vmul.f32 -2.7261424e-10, %v977_v38  ;;  %v1005_v6 = vmul.f32 -1.45660715e-05, %v977_v38 }
 0x4b5   :  { %v978_v50 = vmul.f32 -2.7261424e-10, %v976_v36  ;;  %v1004_v37 = vmul.f32 -1.45660715e-05, %v976_v36 }
 0x4b6   :  { %v981_v5 = vadd.f32 2.7706815e-08, %v979_v48  ;;  %v1007_v1 = vadd.f32 -0.00021337405, %v1005_v6  ;;  %v969_v48 = vmul.f32 0.5, %v4418_v29 }
 0x4b7   :  { %v980_v62 = vadd.f32 2.7706815e-08, %v978_v50  ;;  %v1006_v2 = vadd.f32 -0.00021337405, %v1004_v37  ;;  %v968_v50 = vmul.f32 0.5, %v960_v34 }
 0x4b8   :  { %v983_v47 = vmul.f32 %v981_v5, %v977_v38  ;;  %v1009_v45 = vmul.f32 %v1007_v1, %v977_v38 }
 0x4b9   :  { %v982_v54 = vmul.f32 %v980_v62, %v976_v36  ;;  %v1008_v33 = vmul.f32 %v1006_v2, %v976_v36  ;;  %v1360_v62 = vld [vmem:[%s5163_s12] sm:$0xff]  ;;  %v1361_v2 = vld [vmem:[%s5163_s12 + $0x8] sm:$0xff] }
 0x4ba   :  { %v985_v39 = vadd.f32 -2.101024e-06, %v983_v47  ;;  %v1011_v58 = vadd.f32 -0.001682827, %v1009_v45  ;;  %v3685_v47 = vpack.c.bf16 %v1361_v2, %v1360_v62  ;;  %v1362_v45 = vld [vmem:[%s5163_s12 + $0x10] sm:$0xff] }
 0x4bb   :  { %v984_v4 = vadd.f32 -2.101024e-06, %v982_v54  ;;  %v1010_v59 = vadd.f32 -0.001682827, %v1008_v33  ;;  %v1363_v54 = vld [vmem:[%s5163_s12 + $0x18] sm:$0xff] }
 0x4bc   :  { %v987_v56 = vmul.f32 %v985_v39, %v977_v38  ;;  %v1013_v61 = vmul.f32 %v1011_v58, %v977_v38  ;;  %3686 = vmatprep.subr.bf16.mxu0 %v3685_v47  ;;  %v3689_v33 = vpack.c.bf16 %v1363_v54, %v1362_v45  ;;  %v4454_v39 = vld [vmem:[%s5162_s11] ss:$0 sm:$0xff] }
 0x4bd   :  { %v986_v30 = vmul.f32 %v984_v4, %v976_v36  ;;  %v1012_v7 = vmul.f32 %v1010_v59, %v976_v36  ;;  %3688 = vmatpush3.bf16.msra.mxu0 %v3685_v47 }
 0x4be   :  { %v989_v31 = vadd.f32 -5.6925062e-05, %v987_v56  ;;  %v1015_v43 = vadd.f32 -0.0073733293, %v1013_v61  ;;  %3690 = vmatprep.subr.bf16.mxu0 %v3689_v33 }
 0x4bf   :  { %v988_v0 = vadd.f32 -5.6925062e-05, %v986_v30  ;;  %v1014_v51 = vadd.f32 -0.0073733293, %v1012_v7 }
 0x4c0   :  { %v991_v60 = vmul.f32 %v989_v31, %v977_v38  ;;  %v1017_v53 = vmul.f32 %v1015_v43, %v977_v38 }
 0x4c1   :  { %v990_v8 = vmul.f32 %v988_v0, %v976_v36  ;;  %v1016_v11 = vmul.f32 %v1014_v51, %v976_v36  ;;  %3692 = vmatpush3.bf16.msra.mxu0 %v3689_v33 }
 0x4c2   :  { %v993_v17 = vadd.f32 -0.00073499064, %v991_v60  ;;  %v1019_v57 = vadd.f32 -0.014264739, %v1017_v53 }
 0x4c3   :  { %v992_v13 = vadd.f32 -0.00073499064, %v990_v8  ;;  %v1018_v41 = vadd.f32 -0.014264739, %v1016_v11 }
 0x4c4   :  { %v995_v20 = vmul.f32 %v993_v17, %v977_v38  ;;  %3778 = vrcp.f32 %v1019_v57 }
 0x4c5   :  { %v994_v55 = vmul.f32 %v992_v13, %v976_v36  ;;  %3780 = vrcp.f32 %v1018_v41 }
 0x4c6   :  { %v997_v23 = vadd.f32 -0.0029546, %v995_v20 }
 0x4c7   :  { %v996_v9 = vadd.f32 -0.0029546, %v994_v55 }
 0x4c8   :  { %v999_v19 = vmul.f32 %v997_v23, %v977_v38 }
 0x4c9   :  { %v998_v24 = vmul.f32 %v996_v9, %v976_v36 }
 0x4ca   :  { %v1001_v25 = vadd.f32 -0.016096033, %v999_v19 }
 0x4cb   :  { %v1000_v12 = vadd.f32 -0.016096033, %v998_v24 }
 0x4cc   :  { %v1003_v27 = vmul.f32 %v3277_v40, %v1001_v25 }
 0x4cd   :  { %v1002_v32 = vmul.f32 %v3276_v42, %v1000_v12 }
 0x4ce   :  { %v3779_v15 = vpop.eup %3778 }
 0x4cf   :  { %v3781_v10 = vpop.eup %3780  ;;  %v1023_v16 = vmul.f32 %v3779_v15, %v1019_v57 }
 0x4d0   :  { %v1022_v3 = vmul.f32 %v3781_v10, %v1018_v41 }
 0x4d1   :  { %v1025_v49 = vsub.f32 2.0, %v1023_v16 }
 0x4d2   :  { %v1024_v52 = vsub.f32 2.0, %v1022_v3 }
 0x4d3   :  { %v1027_v28 = vmul.f32 %v3779_v15, %v1025_v49 }
 0x4d4   :  { %v1026_v14 = vmul.f32 %v3781_v10, %v1024_v52 }
 0x4d5   :  { %v1029_v35 = vmul.f32 %v1027_v28, %v1003_v27 }
 0x4d6   :  { %v1028_v44 = vmul.f32 %v1026_v14, %v1002_v32 }
 0x4d7   :  { %v1031_v6 = vadd.f32 1.0, %v1029_v35 }
 0x4d8   :  { %v1030_v38 = vadd.f32 1.0, %v1028_v44 }
 0x4d9   :  { %v1033_v36 = vmul.f32 %v1031_v6, %v969_v48 }
 0x4da   :  { %v1032_v37 = vmul.f32 %v1030_v38, %v968_v50 }
 0x4db   :  { %v4424_v5 = vadd.f32 %v4040_v21, %v1033_v36 }
 0x4dc   :  { %v4427_v1 = vadd.f32 %v1032_v37, %v4042_v22 }
 0x4dd   :  { %v1049_v40 = vsel %vm175_vm2, %v4424_v5, 0.0  ;;  %v1059_v42 = vmul.f32 %v4424_v5, %v4424_v5 }
 0x4de   :  { %1050 = vadd.xlane.f32.xlu1 %v1049_v40  ;;  %v1046_v29 = vsel %vm175_vm2, %v4427_v1, 0.0  ;;  %v1058_v34 = vmul.f32 %v4427_v1, %v4427_v1 }
 0x4df   :  { %1047 = vadd.xlane.f32.xlu0 %v1046_v29  ;;  %v1069_v21 = vsel %vm175_vm2, %v1059_v42, 0.0 }
 0x4e0   :  { %v1066_v22 = vsel %vm175_vm2, %v1058_v34, 0.0 }
 0x4e2   :  { %1070 = vadd.xlane.f32.xlu1 %v1069_v21 }
 0x4e3   :  { %1067 = vadd.xlane.f32.xlu0 %v1066_v22 }
 0x539   :  { %v3542_v58 = vpop.f32.mrb[10].mxu1 }
 0x53a   :  { %v4457_v4 = vadd.f32 %v3542_v58, %v4454_v39  ;;  %v1209_v59 = vpop.f32.mrb[11].mxu1 }
 0x53b   :  { %v1210_v56 = vadd.f32 %v4454_v39, %v1209_v59 }
 0x53c   :  { %v1233_v61 = vmul.f32 0.70710677, %v4457_v4 }
 0x53d   :  { %v1232_v30 = vmul.f32 0.70710677, %v1210_v56 }
 0x53e   :  { %v3286_v7 = vclamps-f32 %v1233_v61, 4.0 }
 0x53f   :  { %v3285_v31 = vclamps-f32 %v1232_v30, 4.0 }
 0x540   :  { %v1245_v43 = vmul.f32 %v3286_v7, %v3286_v7 }
 0x541   :  { %v1244_v0 = vmul.f32 %v3285_v31, %v3285_v31 }
 0x542   :  { %v1249_v51 = vmul.f32 -2.7261424e-10, %v1245_v43  ;;  %v1301_v60 = vmul.f32 -1.45660715e-05, %v1245_v43 }
 0x543   :  { %v1248_v53 = vmul.f32 -2.7261424e-10, %v1244_v0  ;;  %v1300_v8 = vmul.f32 -1.45660715e-05, %v1244_v0 }
 0x544   :  { %v1253_v11 = vadd.f32 2.7706815e-08, %v1249_v51  ;;  %v1305_v17 = vadd.f32 -0.00021337405, %v1301_v60 }
 0x545   :  { %v1252_v57 = vadd.f32 2.7706815e-08, %v1248_v53  ;;  %v1304_v13 = vadd.f32 -0.00021337405, %v1300_v8  ;;  %v1228_v53 = vmul.f32 0.5, %v1210_v56 }
 0x546   :  { %v1257_v41 = vmul.f32 %v1253_v11, %v1245_v43  ;;  %v1309_v20 = vmul.f32 %v1305_v17, %v1245_v43 }
 0x547   :  { %v1256_v55 = vmul.f32 %v1252_v57, %v1244_v0  ;;  %v1308_v23 = vmul.f32 %v1304_v13, %v1244_v0 }
 0x548   :  { %v1261_v9 = vadd.f32 -2.101024e-06, %v1257_v41  ;;  %v1313_v19 = vadd.f32 -0.001682827, %v1309_v20 }
 0x549   :  { %v1260_v24 = vadd.f32 -2.101024e-06, %v1256_v55  ;;  %v1312_v15 = vadd.f32 -0.001682827, %v1308_v23 }
 0x54a   :  { %v1265_v10 = vmul.f32 %v1261_v9, %v1245_v43  ;;  %v1317_v25 = vmul.f32 %v1313_v19, %v1245_v43 }
 0x54b   :  { %v1264_v16 = vmul.f32 %v1260_v24, %v1244_v0  ;;  %v1316_v12 = vmul.f32 %v1312_v15, %v1244_v0 }
 0x54c   :  { %v1269_v3 = vadd.f32 -5.6925062e-05, %v1265_v10  ;;  %v1321_v49 = vadd.f32 -0.0073733293, %v1317_v25 }
 0x54d   :  { %v1268_v52 = vadd.f32 -5.6925062e-05, %v1264_v16  ;;  %v1320_v27 = vadd.f32 -0.0073733293, %v1316_v12 }
 0x54e   :  { %v1273_v28 = vmul.f32 %v1269_v3, %v1245_v43  ;;  %v1325_v32 = vmul.f32 %v1321_v49, %v1245_v43 }
 0x54f   :  { %v1272_v14 = vmul.f32 %v1268_v52, %v1244_v0  ;;  %v1324_v35 = vmul.f32 %v1320_v27, %v1244_v0 }
 0x550   :  { %v1277_v44 = vadd.f32 -0.00073499064, %v1273_v28  ;;  %v1329_v48 = vadd.f32 -0.014264739, %v1325_v32  ;;  %v4475_v32 = vld [vmem:[%s5164_s13] ss:$0 sm:$0xff] }
 0x551   :  { %v1276_v6 = vadd.f32 -0.00073499064, %v1272_v14  ;;  %v1328_v50 = vadd.f32 -0.014264739, %v1324_v35 }
 0x552   :  { %v1281_v38 = vmul.f32 %v1277_v44, %v1245_v43  ;;  %3782 = vrcp.f32 %v1329_v48 }
 0x553   :  { %v1280_v36 = vmul.f32 %v1276_v6, %v1244_v0  ;;  %3784 = vrcp.f32 %v1328_v50 }
 0x554   :  { %v1285_v37 = vadd.f32 -0.0029546, %v1281_v38 }
 0x555   :  { %v1284_v40 = vadd.f32 -0.0029546, %v1280_v36 }
 0x556   :  { %v1289_v42 = vmul.f32 %v1285_v37, %v1245_v43  ;;  %v1229_v43 = vmul.f32 0.5, %v4457_v4 }
 0x557   :  { %v1288_v29 = vmul.f32 %v1284_v40, %v1244_v0 }
 0x558   :  { %v1293_v22 = vadd.f32 -0.016096033, %v1289_v42 }
 0x559   :  { %v1292_v2 = vadd.f32 -0.016096033, %v1288_v29 }
 0x55a   :  { %v1297_v33 = vmul.f32 %v3286_v7, %v1293_v22 }
 0x55b   :  { %v1296_v59 = vmul.f32 %v3285_v31, %v1292_v2 }
 0x55c   :  { %v3783_v34 = vpop.eup %3782 }
 0x55d   :  { %v3785_v21 = vpop.eup %3784  ;;  %v1337_v62 = vmul.f32 %v3783_v34, %v1329_v48 }
 0x55e   :  { %v1336_v47 = vmul.f32 %v3785_v21, %v1328_v50 }
 0x55f   :  { %v1341_v45 = vsub.f32 2.0, %v1337_v62 }
 0x560   :  { %v1340_v54 = vsub.f32 2.0, %v1336_v47 }
 0x561   :  { %v1345_v58 = vmul.f32 %v3783_v34, %v1341_v45 }
 0x562   :  { %v1344_v61 = vmul.f32 %v3785_v21, %v1340_v54 }
 0x563   :  { %v1349_v30 = vmul.f32 %v1345_v58, %v1297_v33 }
 0x564   :  { %v1348_v51 = vmul.f32 %v1344_v61, %v1296_v59 }
 0x565   :  { %v1353_v60 = vadd.f32 1.0, %v1349_v30 }
 0x566   :  { %v1352_v8 = vadd.f32 1.0, %v1348_v51 }
 0x567   :  { %v1357_v11 = vmul.f32 %v1353_v60, %v1229_v43 }
 0x568   :  { %v1356_v0 = vmul.f32 %v1352_v8, %v1228_v53 }
 0x56a   :  { %3554 = vmatprep.mubr.msk.f32.mxu0 %vm175_vm2, %v1356_v0 }
 0x56b   :  { %v1051_v17 = vpop.xlane.xlu1 %1050  ;;  %3555 = vmatmul.mubr.msk.f32.vlgmr.msra.gmra.mrb[6].mxu0 %vm175_vm2, %v1357_v11 }
 0x56c   :  { %v1055_v57 = vmul.f32 0.03125, %v1051_v17  ;;  %v1048_v13 = vpop.xlane.xlu0 %1047 }
 0x56d   :  { %v1054_v7 = vmul.f32 0.03125, %v1048_v13 }
 0x56e   :  { %v1079_v31 = vmul.f32 %v1055_v57, %v1055_v57  ;;  %v1095_v25 = vsub.f32 %v4424_v5, %v1055_v57 }
 0x56f   :  { %v1071_v41 = vpop.xlane.xlu1 %1070  ;;  %v1078_v23 = vmul.f32 %v1054_v7, %v1054_v7  ;;  %v1094_v12 = vsub.f32 %v4427_v1, %v1054_v7 }
 0x570   :  { %v1075_v20 = vmul.f32 0.03125, %v1071_v41  ;;  %v1068_v55 = vpop.xlane.xlu0 %1067 }
 0x571   :  { %v1074_v9 = vmul.f32 0.03125, %v1068_v55 }
 0x572   :  { %v1083_v56 = vsub.f32 %v1075_v20, %v1079_v31 }
 0x573   :  { %v1082_v19 = vsub.f32 %v1074_v9, %v1078_v23 }
 0x574   :  { %v1087_v24 = vadd.f32 1e-05, %v1083_v56 }
 0x575   :  { %v1086_v4 = vadd.f32 1e-05, %v1082_v19 }
 0x576   :  { %3786 = vrsqrt.f32 %v1087_v24 }
 0x577   :  { %3788 = vrsqrt.f32 %v1086_v4 }
 0x580   :  { %v3787_v15 = vpop.eup %3786 }
 0x581   :  { %v3789_v10 = vpop.eup %3788  ;;  %v1105_v16 = vmul.f32 %v3787_v15, %v4402_v46 }
 0x582   :  { %v1104_v3 = vmul.f32 %v3789_v10, %v4402_v46 }
 0x583   :  { %v1109_v49 = vmul.f32 %v1105_v16, %v1095_v25 }
 0x584   :  { %v1108_v52 = vmul.f32 %v1104_v3, %v1094_v12 }
 0x585   :  { %v1119_v28 = vadd.f32 %v4409_v26, %v1109_v49 }
 0x586   :  { %v1118_v27 = vadd.f32 %v4409_v26, %v1108_v52 }
 0x588   :  { %3543 = vmatprep.mubr.msk.f32.mxu1 %vm175_vm2, %v1118_v27 }
 0x589   :  { %3544 = vmatmul.mubr.msk.f32.gmra.mrb[12].mxu1 %vm175_vm2, %v1119_v28 }
 0x63e   :  { %v3556_v14 = vpop.f32.mrb[6].mxu0 }
 0x63f   :  { %v4478_v35 = vadd.f32 %v3556_v14, %v4475_v32  ;;  %v1449_v46 = vpop.f32.mrb[7].mxu0 }
 0x640   :  { %v4481_v44 = vadd.f32 %v4475_v32, %v1449_v46 }
 0x641   :  { %v1473_v48 = vmul.f32 0.70710677, %v4478_v35 }
 0x642   :  { %v1472_v26 = vmul.f32 0.70710677, %v4481_v44 }
 0x643   :  { %v4485_v6 = vclamps-f32 %v1473_v48, 4.0 }
 0x644   :  { %v4487_v50 = vclamps-f32 %v1472_v26, 4.0 }
 0x645   :  { %v1485_v38 = vmul.f32 %v4485_v6, %v4485_v6 }
 0x646   :  { %v1484_v36 = vmul.f32 %v4487_v50, %v4487_v50 }
 0x647   :  { %v1489_v37 = vmul.f32 -2.7261424e-10, %v1485_v38  ;;  %v1541_v40 = vmul.f32 -1.45660715e-05, %v1485_v38 }
 0x648   :  { %v1488_v42 = vmul.f32 -2.7261424e-10, %v1484_v36  ;;  %v1540_v29 = vmul.f32 -1.45660715e-05, %v1484_v36 }
 0x649   :  { %v1493_v34 = vadd.f32 2.7706815e-08, %v1489_v37  ;;  %v1545_v21 = vadd.f32 -0.00021337405, %v1541_v40 }
 0x64a   :  { %v1492_v22 = vadd.f32 2.7706815e-08, %v1488_v42  ;;  %v1544_v62 = vadd.f32 -0.00021337405, %v1540_v29 }
 0x64b   :  { %v1497_v2 = vmul.f32 %v1493_v34, %v1485_v38  ;;  %v1549_v47 = vmul.f32 %v1545_v21, %v1485_v38 }
 0x64c   :  { %v1496_v45 = vmul.f32 %v1492_v22, %v1484_v36  ;;  %v1548_v54 = vmul.f32 %v1544_v62, %v1484_v36 }
 0x64d   :  { %v1501_v33 = vadd.f32 -2.101024e-06, %v1497_v2  ;;  %v1553_v58 = vadd.f32 -0.001682827, %v1549_v47 }
 0x64e   :  { %v1500_v59 = vadd.f32 -2.101024e-06, %v1496_v45  ;;  %v1552_v61 = vadd.f32 -0.001682827, %v1548_v54 }
 0x64f   :  { %v1505_v30 = vmul.f32 %v1501_v33, %v1485_v38  ;;  %v1557_v51 = vmul.f32 %v1553_v58, %v1485_v38 }
 0x650   :  { %v1504_v60 = vmul.f32 %v1500_v59, %v1484_v36  ;;  %v1556_v53 = vmul.f32 %v1552_v61, %v1484_v36 }
 0x651   :  { %v1509_v8 = vadd.f32 -5.6925062e-05, %v1505_v30  ;;  %v1561_v43 = vadd.f32 -0.0073733293, %v1557_v51 }
 0x652   :  { %v1508_v0 = vadd.f32 -5.6925062e-05, %v1504_v60  ;;  %v1560_v11 = vadd.f32 -0.0073733293, %v1556_v53 }
 0x653   :  { %v1513_v17 = vmul.f32 %v1509_v8, %v1485_v38  ;;  %v1565_v57 = vmul.f32 %v1561_v43, %v1485_v38 }
 0x654   :  { %v1512_v13 = vmul.f32 %v1508_v0, %v1484_v36  ;;  %v1564_v7 = vmul.f32 %v1560_v11, %v1484_v36 }
 0x655   :  { %v1517_v41 = vadd.f32 -0.00073499064, %v1513_v17  ;;  %v1569_v31 = vadd.f32 -0.014264739, %v1565_v57 }
 0x656   :  { %v1516_v20 = vadd.f32 -0.00073499064, %v1512_v13  ;;  %v1568_v55 = vadd.f32 -0.014264739, %v1564_v7 }
 0x657   :  { %v1521_v23 = vmul.f32 %v1517_v41, %v1485_v38  ;;  %3790 = vrcp.f32 %v1569_v31 }
 0x658   :  { %v1520_v9 = vmul.f32 %v1516_v20, %v1484_v36  ;;  %3792 = vrcp.f32 %v1568_v55 }
 0x659   :  { %v1525_v56 = vadd.f32 -0.0029546, %v1521_v23 }
 0x65a   :  { %v1524_v19 = vadd.f32 -0.0029546, %v1520_v9 }
 0x65b   :  { %v1529_v10 = vmul.f32 %v1525_v56, %v1485_v38 }
 0x65c   :  { %v3545_v24 = vpop.f32.mrb[12].mxu1  ;;  %v1528_v16 = vmul.f32 %v1524_v19, %v1484_v36 }
 0x65d   :  { %v4494_v4 = vadd.f32 %v3545_v24, %v4454_v39  ;;  %v1219_v15 = vpop.f32.mrb[13].mxu1  ;;  %v1533_v28 = vadd.f32 -0.016096033, %v1529_v10 }
 0x65e   :  { %v4497_v25 = vadd.f32 %v4454_v39, %v1219_v15  ;;  %v1532_v48 = vadd.f32 -0.016096033, %v1528_v16 }
 0x65f   :  { %v1235_v12 = vmul.f32 0.70710677, %v4494_v4  ;;  %v1537_v29 = vmul.f32 %v4485_v6, %v1533_v28  ;;  %v1469_v6 = vmul.f32 0.5, %v4478_v35 }
 0x660   :  { %v1234_v3 = vmul.f32 0.70710677, %v4497_v25  ;;  %v1536_v62 = vmul.f32 %v4487_v50, %v1532_v48  ;;  %v1468_v50 = vmul.f32 0.5, %v4481_v44 }
 0x661   :  { %v3791_v49 = vpop.eup %3790  ;;  %v4501_v52 = vclamps-f32 %v1235_v12, 4.0 }
 0x662   :  { %v3793_v27 = vpop.eup %3792  ;;  %v1577_v14 = vmul.f32 %v3791_v49, %v1569_v31  ;;  %v4503_v46 = vclamps-f32 %v1234_v3, 4.0 }
 0x663   :  { %v1576_v26 = vmul.f32 %v3793_v27, %v1568_v55  ;;  %v4507_v38 = vmul.f32 %v4501_v52, %v4501_v52 }
 0x664   :  { %v1581_v39 = vsub.f32 2.0, %v1577_v14  ;;  %v4511_v36 = vmul.f32 %v4503_v46, %v4503_v46 }
 0x665   :  { %v1580_v37 = vsub.f32 2.0, %v1576_v26  ;;  %v1251_v40 = vmul.f32 -2.7261424e-10, %v4507_v38  ;;  %v1303_v42 = vmul.f32 -1.45660715e-05, %v4507_v38 }
 0x666   :  { %v1585_v34 = vmul.f32 %v3791_v49, %v1581_v39  ;;  %v1250_v21 = vmul.f32 -2.7261424e-10, %v4511_v36  ;;  %v1302_v22 = vmul.f32 -1.45660715e-05, %v4511_v36 }
 0x667   :  { %v1584_v2 = vmul.f32 %v3793_v27, %v1580_v37  ;;  %v1255_v47 = vadd.f32 2.7706815e-08, %v1251_v40  ;;  %v1307_v45 = vadd.f32 -0.00021337405, %v1303_v42 }
 0x668   :  { %v1589_v54 = vmul.f32 %v1585_v34, %v1537_v29  ;;  %v1254_v33 = vadd.f32 2.7706815e-08, %v1250_v21  ;;  %v1306_v58 = vadd.f32 -0.00021337405, %v1302_v22 }
 0x669   :  { %v1588_v59 = vmul.f32 %v1584_v2, %v1536_v62  ;;  %v1259_v61 = vmul.f32 %v1255_v47, %v4507_v38  ;;  %v1311_v30 = vmul.f32 %v1307_v45, %v4507_v38 }
 0x66a   :  { %v1593_v51 = vadd.f32 1.0, %v1589_v54  ;;  %v1258_v60 = vmul.f32 %v1254_v33, %v4511_v36  ;;  %v1310_v53 = vmul.f32 %v1306_v58, %v4511_v36 }
 0x66b   :  { %v1592_v8 = vadd.f32 1.0, %v1588_v59  ;;  %v1263_v43 = vadd.f32 -2.101024e-06, %v1259_v61  ;;  %v1315_v0 = vadd.f32 -0.001682827, %v1311_v30 }
 0x66c   :  { %v1597_v11 = vmul.f32 %v1593_v51, %v1469_v6  ;;  %v1262_v17 = vadd.f32 -2.101024e-06, %v1258_v60  ;;  %v1314_v57 = vadd.f32 -0.001682827, %v1310_v53  ;;  %v1231_v60 = vmul.f32 0.5, %v4494_v4 }
 0x66d   :  { %v1596_v13 = vmul.f32 %v1592_v8, %v1468_v50  ;;  %v1267_v7 = vmul.f32 %v1263_v43, %v4507_v38  ;;  %v1319_v41 = vmul.f32 %v1315_v0, %v4507_v38 }
 0x66e   :  { %v4528_v35 = vadd.f32 %v1597_v11, %v4359_v18  ;;  %v1266_v31 = vmul.f32 %v1262_v17, %v4511_v36  ;;  %v1318_v20 = vmul.f32 %v1314_v57, %v4511_v36 }
 0x66f   :  { %v4533_v44 = vadd.f32 %v1596_v13, %v4363_v63  ;;  %v1271_v55 = vadd.f32 -5.6925062e-05, %v1267_v7  ;;  %v1323_v23 = vadd.f32 -0.0073733293, %v1319_v41 }
 0x670   :  { %v1270_v9 = vadd.f32 -5.6925062e-05, %v1266_v31  ;;  %v1322_v56 = vadd.f32 -0.0073733293, %v1318_v20  ;;  %v1611_v19 = vsel %vm175_vm2, %v4528_v35, 0.0  ;;  %v1625_v24 = vmul.f32 %v4528_v35, %v4528_v35 }
 0x671   :  { %v1275_v18 = vmul.f32 %v1271_v55, %v4507_v38  ;;  %v1327_v15 = vmul.f32 %v1323_v23, %v4507_v38  ;;  %1612 = vadd.xlane.f32.xlu1 %v1611_v19  ;;  %v1608_v10 = vsel %vm175_vm2, %v4533_v44, 0.0  ;;  %v1624_v63 = vmul.f32 %v4533_v44, %v4533_v44  ;;  %v4566_v55 = vld [vmem:[%s5157_s6 + $0x1] ss:$0 sm:$0xff] }
 0x672   :  { %v1274_v16 = vmul.f32 %v1270_v9, %v4511_v36  ;;  %v1326_v12 = vmul.f32 %v1322_v56, %v4511_v36  ;;  %1609 = vadd.xlane.f32.xlu0 %v1608_v10  ;;  %v1631_v14 = vsel %vm175_vm2, %v1625_v24, 0.0 }
 0x673   :  { %v1279_v3 = vadd.f32 -0.00073499064, %v1275_v18  ;;  %v1331_v49 = vadd.f32 -0.014264739, %v1327_v15  ;;  %v1628_v26 = vsel %vm175_vm2, %v1624_v63, 0.0 }
 0x674   :  { %v1278_v27 = vadd.f32 -0.00073499064, %v1274_v16  ;;  %v1330_v28 = vadd.f32 -0.014264739, %v1326_v12  ;;  %v4574_v18 = vld [vmem:[%s5158_s7 + $0x1] ss:$0 sm:$0xff] }
 0x675   :  { %v1283_v48 = vmul.f32 %v1279_v3, %v4507_v38  ;;  %3794 = vrcp.f32 %v1331_v49  ;;  %1632 = vadd.xlane.f32.xlu1 %v1631_v14 }
 0x676   :  { %v1282_v39 = vmul.f32 %v1278_v27, %v4511_v36  ;;  %3796 = vrcp.f32 %v1330_v28  ;;  %1629 = vadd.xlane.f32.xlu0 %v1628_v26  ;;  %v4587_v27 = vld [vmem:[%s5178_s19 + $0x30] sm:$0xff] }
 0x677   :  { %v1287_v37 = vadd.f32 -0.0029546, %v1283_v48 }
 0x678   :  { %v1286_v40 = vadd.f32 -0.0029546, %v1282_v39 }
 0x679   :  { %v1291_v42 = vmul.f32 %v1287_v37, %v4507_v38  ;;  %v1230_v38 = vmul.f32 0.5, %v4497_v25 }
 0x67a   :  { %v1290_v29 = vmul.f32 %v1286_v40, %v4511_v36 }
 0x67b   :  { %v1295_v22 = vadd.f32 -0.016096033, %v1291_v42 }
 0x67c   :  { %v1294_v2 = vadd.f32 -0.016096033, %v1290_v29 }
 0x67d   :  { %v1299_v33 = vmul.f32 %v4501_v52, %v1295_v22  ;;  %v3302_v52 = vld [vmem:[%s5178_s19 + $0x20] sm:$0xff] }
 0x67e   :  { %v1298_v59 = vmul.f32 %v4503_v46, %v1294_v2  ;;  %3564 = vmatprep.mubr.msk.f32.mxu1 %vm289_vm3, %v3302_v52 }
 0x67f   :  { %v3795_v34 = vpop.eup %3794 }
 0x680   :  { %v3797_v21 = vpop.eup %3796  ;;  %v1339_v62 = vmul.f32 %v3795_v34, %v1331_v49  ;;  %v4582_v49 = vld [vmem:[%s5178_s19 + $0x28] sm:$0xff] }
 0x681   :  { %v1338_v47 = vmul.f32 %v3797_v21, %v1330_v28  ;;  %v4596_v28 = vld [vmem:[%s5178_s19 + $0x38] sm:$0xff] }
 0x682   :  { %v1343_v45 = vsub.f32 2.0, %v1339_v62 }
 0x683   :  { %v1342_v54 = vsub.f32 2.0, %v1338_v47 }
 0x684   :  { %v1347_v58 = vmul.f32 %v3795_v34, %v1343_v45 }
 0x685   :  { %v1346_v61 = vmul.f32 %v3797_v21, %v1342_v54 }
 0x686   :  { %v1351_v30 = vmul.f32 %v1347_v58, %v1299_v33 }
 0x687   :  { %v1350_v6 = vmul.f32 %v1346_v61, %v1298_v59 }
 0x688   :  { %v1355_v51 = vadd.f32 1.0, %v1351_v30 }
 0x689   :  { %v1354_v36 = vadd.f32 1.0, %v1350_v6 }
 0x68a   :  { %v1359_v50 = vmul.f32 %v1355_v51, %v1231_v60 }
 0x68b   :  { %v1358_v53 = vmul.f32 %v1354_v36, %v1230_v38 }
 0x68d   :  { %3557 = vmatprep.mubr.msk.f32.mxu0 %vm175_vm2, %v1358_v53 }
 0x68e   :  { %3558 = vmatmul.mubr.msk.f32.gmra.mrb[8].mxu0 %vm175_vm2, %v1359_v50 }
 0x6fe   :  { %v1613_v46 = vpop.xlane.xlu1 %1612 }
 0x6ff   :  { %v1621_v8 = vmul.f32 0.03125, %v1613_v46  ;;  %v1610_v43 = vpop.xlane.xlu0 %1609 }
 0x700   :  { %v1620_v0 = vmul.f32 0.03125, %v1610_v43 }
 0x701   :  { %v1645_v11 = vmul.f32 %v1621_v8, %v1621_v8  ;;  %v1661_v56 = vsub.f32 %v4528_v35, %v1621_v8 }
 0x702   :  { %v1633_v25 = vpop.xlane.xlu1 %1632  ;;  %v1644_v57 = vmul.f32 %v1620_v0, %v1620_v0  ;;  %v1660_v24 = vsub.f32 %v4533_v44, %v1620_v0 }
 0x703   :  { %v1641_v17 = vmul.f32 0.03125, %v1633_v25  ;;  %v1630_v4 = vpop.xlane.xlu0 %1629 }
 0x704   :  { %v1640_v13 = vmul.f32 0.03125, %v1630_v4 }
 0x705   :  { %v1649_v7 = vsub.f32 %v1641_v17, %v1645_v11 }
 0x706   :  { %v1648_v41 = vsub.f32 %v1640_v13, %v1644_v57 }
 0x707   :  { %v1653_v31 = vadd.f32 1e-05, %v1649_v7 }
 0x708   :  { %v1652_v20 = vadd.f32 1e-05, %v1648_v41 }
 0x709   :  { %3798 = vrsqrt.f32 %v1653_v31 }
 0x70a   :  { %3800 = vrsqrt.f32 %v1652_v20 }
 0x713   :  { %v3799_v23 = vpop.eup %3798 }
 0x714   :  { %v3801_v9 = vpop.eup %3800  ;;  %v1671_v19 = vmul.f32 %v3799_v23, %v4566_v55 }
 0x715   :  { %v1670_v15 = vmul.f32 %v3801_v9, %v4566_v55 }
 0x716   :  { %v1675_v10 = vmul.f32 %v1671_v19, %v1661_v56 }
 0x717   :  { %v1674_v63 = vmul.f32 %v1670_v15, %v1660_v24 }
 0x718   :  { %v1685_v16 = vadd.f32 %v4574_v18, %v1675_v10 }
 0x719   :  { %v1684_v12 = vadd.f32 %v4574_v18, %v1674_v63 }
 0x71b   :  { %v3693_v3 = vpack.c.bf16 %v1685_v16, %v1684_v12 }
 0x71d   :  { %3694 = vmatprep.subr.bf16.mxu1 %v3693_v3 }
 0x71e   :  { %3696 = vmatpush3.bf16.msra.mxu1 %v3693_v3 }
 0x721   :  { %3565 = vmatmul.mubr.msk.f32.vlgmr.msra.gmra.mrb[14].mxu1 %vm289_vm3, %v4582_v49 }
 0x722   :  { %3567 = vmatprep.mubr.msk.f32.mxu1 %vm289_vm3, %v4587_v27 }
 0x725   :  { %3568 = vmatmul.mubr.msk.f32.gmra.mrb[16].mxu1 %vm289_vm3, %v4596_v28 }
 0x726   :  { %3585 = vmatprep.mubr.msk.f32.mxu1 %vm289_vm3, %v3302_v52 }
 0x761   :  { %v3559_v14 = vpop.f32.mrb[8].mxu0 }
 0x762   :  { %v4602_v48 = vadd.f32 %v3559_v14, %v4475_v32  ;;  %v1459_v26 = vpop.f32.mrb[9].mxu0 }
 0x763   :  { %v1460_v39 = vadd.f32 %v4475_v32, %v1459_v26 }
 0x764   :  { %v1475_v37 = vmul.f32 0.70710677, %v4602_v48 }
 0x765   :  { %v1474_v40 = vmul.f32 0.70710677, %v1460_v39 }
 0x766   :  { %v3297_v42 = vclamps-f32 %v1475_v37, 4.0 }
 0x767   :  { %v3296_v29 = vclamps-f32 %v1474_v40, 4.0 }
 0x768   :  { %v1487_v34 = vmul.f32 %v3297_v42, %v3297_v42 }
 0x769   :  { %v1486_v21 = vmul.f32 %v3296_v29, %v3296_v29 }
 0x76a   :  { %v1491_v22 = vmul.f32 -2.7261424e-10, %v1487_v34  ;;  %v1543_v62 = vmul.f32 -1.45660715e-05, %v1487_v34 }
 0x76b   :  { %v1490_v2 = vmul.f32 -2.7261424e-10, %v1486_v21  ;;  %v1542_v47 = vmul.f32 -1.45660715e-05, %v1486_v21 }
 0x76c   :  { %v1495_v45 = vadd.f32 2.7706815e-08, %v1491_v22  ;;  %v1547_v54 = vadd.f32 -0.00021337405, %v1543_v62 }
 0x76d   :  { %v1494_v33 = vadd.f32 2.7706815e-08, %v1490_v2  ;;  %v1546_v58 = vadd.f32 -0.00021337405, %v1542_v47  ;;  %v1471_v47 = vmul.f32 0.5, %v4602_v48 }
 0x76e   :  { %v1499_v59 = vmul.f32 %v1495_v45, %v1487_v34  ;;  %v1551_v61 = vmul.f32 %v1547_v54, %v1487_v34  ;;  %v1470_v54 = vmul.f32 0.5, %v1460_v39 }
 0x76f   :  { %v1498_v30 = vmul.f32 %v1494_v33, %v1486_v21  ;;  %v1550_v6 = vmul.f32 %v1546_v58, %v1486_v21 }
 0x770   :  { %v1503_v32 = vadd.f32 -2.101024e-06, %v1499_v59  ;;  %v1555_v51 = vadd.f32 -0.001682827, %v1551_v61  ;;  %v3307_v61 = vld [vmem:[%s5154_s3 + $0x28] sm:$0xff] }
 0x771   :  { %v1502_v38 = vadd.f32 -2.101024e-06, %v1498_v30  ;;  %v1554_v36 = vadd.f32 -0.001682827, %v1550_v6  ;;  %v3308_v30 = vld [vmem:[%s5154_s3 + $0x30] sm:$0xff]  ;;  %v3306_v6 = vld [vmem:[%s5154_s3 + $0x20] sm:$0xff] }
 0x772   :  { %v1507_v60 = vmul.f32 %v1503_v32, %v1487_v34  ;;  %v1559_v53 = vmul.f32 %v1555_v51, %v1487_v34  ;;  %v3312_v32 = vld [vmem:[%s5156_s5 + $0x10] sm:$0xff]  ;;  %v3309_v51 = vld [vmem:[%s5154_s3 + $0x38] sm:$0xff] }
 0x773   :  { %v1506_v50 = vmul.f32 %v1502_v38, %v1486_v21  ;;  %v1558_v52 = vmul.f32 %v1554_v36, %v1486_v21  ;;  %v3313_v38 = vld [vmem:[%s5156_s5 + $0x18] sm:$0xff]  ;;  %v4644_v36 = vld [vmem:[%s5155_s4 + $0x10] sm:$0xff] }
 0x774   :  { %v1511_v46 = vadd.f32 -5.6925062e-05, %v1507_v60  ;;  %v1563_v8 = vadd.f32 -0.0073733293, %v1559_v53  ;;  %3578 = vmatprep.mubr.msk.f32.mxu0 %vm175_vm2, %v4644_v36 }
 0x775   :  { %v1510_v43 = vadd.f32 -5.6925062e-05, %v1506_v50  ;;  %v1562_v0 = vadd.f32 -0.0073733293, %v1558_v52 }
 0x776   :  { %v1515_v25 = vmul.f32 %v1511_v46, %v1487_v34  ;;  %v1567_v11 = vmul.f32 %v1563_v8, %v1487_v34 }
 0x777   :  { %v1514_v17 = vmul.f32 %v1510_v43, %v1486_v21  ;;  %v1566_v4 = vmul.f32 %v1562_v0, %v1486_v21 }
 0x778   :  { %v1519_v57 = vadd.f32 -0.00073499064, %v1515_v25  ;;  %v1571_v13 = vadd.f32 -0.014264739, %v1567_v11 }
 0x779   :  { %v1518_v7 = vadd.f32 -0.00073499064, %v1514_v17  ;;  %v1570_v41 = vadd.f32 -0.014264739, %v1566_v4 }
 0x77a   :  { %v1523_v31 = vmul.f32 %v1519_v57, %v1487_v34  ;;  %3802 = vrcp.f32 %v1571_v13 }
 0x77b   :  { %v1522_v20 = vmul.f32 %v1518_v7, %v1486_v21  ;;  %3804 = vrcp.f32 %v1570_v41 }
 0x77c   :  { %v1527_v23 = vadd.f32 -0.0029546, %v1523_v31 }
 0x77d   :  { %v1526_v9 = vadd.f32 -0.0029546, %v1522_v20 }
 0x77e   :  { %v1531_v56 = vmul.f32 %v1527_v23, %v1487_v34 }
 0x77f   :  { %v1530_v19 = vmul.f32 %v1526_v9, %v1486_v21 }
 0x780   :  { %v1535_v10 = vadd.f32 -0.016096033, %v1531_v56 }
 0x781   :  { %v1534_v16 = vadd.f32 -0.016096033, %v1530_v19 }
 0x782   :  { %v1539_v26 = vmul.f32 %v3297_v42, %v1535_v10 }
 0x783   :  { %v1538_v40 = vmul.f32 %v3296_v29, %v1534_v16 }
 0x784   :  { %v3803_v24 = vpop.eup %3802 }
 0x785   :  { %v3805_v15 = vpop.eup %3804  ;;  %v1579_v63 = vmul.f32 %v3803_v24, %v1571_v13 }
 0x786   :  { %v1578_v12 = vmul.f32 %v3805_v15, %v1570_v41 }
 0x787   :  { %v1583_v3 = vsub.f32 2.0, %v1579_v63 }
 0x788   :  { %v1582_v14 = vsub.f32 2.0, %v1578_v12 }
 0x789   :  { %v1587_v37 = vmul.f32 %v3803_v24, %v1583_v3 }
 0x78a   :  { %v1586_v22 = vmul.f32 %v3805_v15, %v1582_v14 }
 0x78b   :  { %v1591_v62 = vmul.f32 %v1587_v37, %v1539_v26 }
 0x78c   :  { %v1590_v2 = vmul.f32 %v1586_v22, %v1538_v40 }
 0x78d   :  { %v1595_v45 = vadd.f32 1.0, %v1591_v62 }
 0x78e   :  { %v1594_v34 = vadd.f32 1.0, %v1590_v2 }
 0x78f   :  { %v1599_v21 = vmul.f32 %v1595_v45, %v1471_v47 }
 0x790   :  { %v1598_v33 = vmul.f32 %v1594_v34, %v1470_v54 }
 0x791   :  { %v4608_v58 = vadd.f32 %v1599_v21, %v4424_v5 }
 0x792   :  { %v4611_v59 = vadd.f32 %v1598_v33, %v4427_v1 }
 0x793   :  { %v1617_v42 = vsel %vm175_vm2, %v4608_v58, 0.0  ;;  %v1627_v29 = vmul.f32 %v4608_v58, %v4608_v58 }
 0x794   :  { %1618 = vadd.xlane.f32.xlu1 %v1617_v42  ;;  %v1614_v48 = vsel %vm175_vm2, %v4611_v59, 0.0  ;;  %v1626_v39 = vmul.f32 %v4611_v59, %v4611_v59 }
 0x795   :  { %1615 = vadd.xlane.f32.xlu0 %v1614_v48  ;;  %v1637_v5 = vsel %vm175_vm2, %v1627_v29, 0.0 }
 0x796   :  { %v1634_v1 = vsel %vm175_vm2, %v1626_v39, 0.0 }
 0x798   :  { %1638 = vadd.xlane.f32.xlu1 %v1637_v5 }
 0x799   :  { %1635 = vadd.xlane.f32.xlu0 %v1634_v1 }
 0x7a9   :  { %1711 = vperm.xlu1 %3745, %v3307_v61  }
 0x7ad   :  { %1716 = vperm.xlu1 %3745, %v3308_v30  }
 0x7af   :  { %1706 = vperm.xlu0 %3744, %v3306_v6  }
 0x7b1   :  { %1955 = vperm.xlu1 %3745, %v3312_v32  }
 0x7b3   :  { %1721 = vperm.xlu0 %3744, %v3309_v51  }
 0x7b7   :  { %1960 = vperm.xlu0 %3744, %v3313_v38  }
 0x7f4   :  { %v3566_v60 = vpop.f32.mrb[14].mxu1 }
 0x7f5   :  { %v1802_v53 = vpop.f32.mrb[15].mxu1 }
 0x7f8   :  { %v3569_v50 = vpop.f32.mrb[16].mxu1 }
 0x7f9   :  { %v1812_v52 = vpop.f32.mrb[17].mxu1 }
 0x821   :  { %v1619_v46 = vpop.xlane.xlu1 %1618 }
 0x822   :  { %v4648_v8 = vmul.f32 0.03125, %v1619_v46  ;;  %v1616_v43 = vpop.xlane.xlu0 %1615 }
 0x823   :  { %v1622_v0 = vmul.f32 0.03125, %v1616_v43 }
 0x824   :  { %v1647_v11 = vmul.f32 %v4648_v8, %v4648_v8  ;;  %v1663_v54 = vsub.f32 %v4608_v58, %v4648_v8 }
 0x825   :  { %v1639_v25 = vpop.xlane.xlu1 %1638  ;;  %v1646_v57 = vmul.f32 %v1622_v0, %v1622_v0  ;;  %v1662_v34 = vsub.f32 %v4611_v59, %v1622_v0 }
 0x826   :  { %v1643_v17 = vmul.f32 0.03125, %v1639_v25  ;;  %v1636_v4 = vpop.xlane.xlu0 %1635 }
 0x827   :  { %v1642_v13 = vmul.f32 0.03125, %v1636_v4 }
 0x828   :  { %v1651_v7 = vsub.f32 %v1643_v17, %v1647_v11 }
 0x829   :  { %v1650_v41 = vsub.f32 %v1642_v13, %v1646_v57  ;;  %v4652_v31 = vpop.permute.xlu1 %1711 }
 0x82a   :  { %v1655_v20 = vadd.f32 1e-05, %v1651_v7  ;;  %v4655_v23 = vadd.f32 %v3566_v60, %v4652_v31 }
 0x82b   :  { %v1654_v9 = vadd.f32 1e-05, %v1650_v41 }
 0x82c   :  { %3806 = vrsqrt.f32 %v1655_v20  ;;  %v1826_v56 = vmul.f32 0.70710677, %v4655_v23 }
 0x82d   :  { %3808 = vrsqrt.f32 %v1654_v9  ;;  %v4658_v19 = vpop.permute.xlu1 %1716 }
 0x82e   :  { %v4660_v24 = vclamps-f32 %v1826_v56, 4.0  ;;  %v4663_v15 = vadd.f32 %v1812_v52, %v4658_v19  ;;  %v4665_v10 = vpop.permute.xlu0 %1706 }
 0x82f   :  { %v4668_v63 = vadd.f32 %v1802_v53, %v4665_v10 }
 0x830   :  { %v4672_v16 = vmul.f32 %v4660_v24, %v4660_v24  ;;  %v1827_v12 = vmul.f32 0.70710677, %v4663_v15 }
 0x831   :  { %v1825_v3 = vmul.f32 0.70710677, %v4668_v63 }
 0x832   :  { %v1842_v14 = vmul.f32 -2.7261424e-10, %v4672_v16  ;;  %v1894_v26 = vmul.f32 -1.45660715e-05, %v4672_v16  ;;  %v4678_v37 = vclamps-f32 %v1827_v12, 4.0  ;;  %v4680_v40 = vpop.permute.xlu0 %1721 }
 0x833   :  { %v4682_v22 = vclamps-f32 %v1825_v3, 4.0  ;;  %v4685_v62 = vadd.f32 %v3569_v50, %v4680_v40 }
 0x834   :  { %v1846_v2 = vadd.f32 2.7706815e-08, %v1842_v14  ;;  %v1898_v47 = vadd.f32 -0.00021337405, %v1894_v26  ;;  %v4689_v45 = vmul.f32 %v4678_v37, %v4678_v37 }
 0x835   :  { %v4696_v21 = vmul.f32 %v4682_v22, %v4682_v22  ;;  %v1828_v33 = vmul.f32 0.70710677, %v4685_v62 }
 0x836   :  { %v3807_v42 = vpop.eup %3806  ;;  %v1850_v29 = vmul.f32 %v1846_v2, %v4672_v16  ;;  %v1902_v48 = vmul.f32 %v1898_v47, %v4672_v16  ;;  %v1843_v39 = vmul.f32 -2.7261424e-10, %v4689_v45  ;;  %v1895_v5 = vmul.f32 -1.45660715e-05, %v4689_v45 }
 0x837   :  { %v3809_v1 = vpop.eup %3808  ;;  %v1841_v61 = vmul.f32 -2.7261424e-10, %v4696_v21  ;;  %v1893_v30 = vmul.f32 -1.45660715e-05, %v4696_v21  ;;  %v4705_v6 = vclamps-f32 %v1828_v33, 4.0  ;;  %v1673_v32 = vmul.f32 %v3807_v42, %v4566_v55 }
 0x838   :  { %v1854_v51 = vadd.f32 -2.101024e-06, %v1850_v29  ;;  %v1906_v38 = vadd.f32 -0.001682827, %v1902_v48  ;;  %v1847_v60 = vadd.f32 2.7706815e-08, %v1843_v39  ;;  %v1672_v53 = vmul.f32 %v3809_v1, %v4566_v55 }
 0x839   :  { %v1899_v50 = vadd.f32 -0.00021337405, %v1895_v5  ;;  %v1845_v52 = vadd.f32 2.7706815e-08, %v1841_v61  ;;  %v1897_v46 = vadd.f32 -0.00021337405, %v1893_v30  ;;  %v4711_v8 = vmul.f32 %v4705_v6, %v4705_v6 }
 0x83a   :  { %v1858_v43 = vmul.f32 %v1854_v51, %v4672_v16  ;;  %v1910_v0 = vmul.f32 %v1906_v38, %v4672_v16  ;;  %v1851_v25 = vmul.f32 %v1847_v60, %v4689_v45  ;;  %v1676_v11 = vmul.f32 %v1672_v53, %v1662_v34 }
 0x83b   :  { %v1903_v17 = vmul.f32 %v1899_v50, %v4689_v45  ;;  %v1849_v4 = vmul.f32 %v1845_v52, %v4696_v21  ;;  %v1901_v55 = vmul.f32 %v1897_v46, %v4696_v21  ;;  %v1844_v57 = vmul.f32 -2.7261424e-10, %v4711_v8 }
 0x83c   :  { %v1862_v13 = vadd.f32 -5.6925062e-05, %v1858_v43  ;;  %v1914_v7 = vadd.f32 -0.0073733293, %v1910_v0  ;;  %v1855_v41 = vadd.f32 -2.101024e-06, %v1851_v25  ;;  %v1677_v20 = vmul.f32 %v1673_v32, %v1663_v54 }
 0x83d   :  { %v1907_v9 = vadd.f32 -0.001682827, %v1903_v17  ;;  %v1853_v56 = vadd.f32 -2.101024e-06, %v1849_v4  ;;  %v1905_v12 = vadd.f32 -0.001682827, %v1901_v55  ;;  %v1686_v3 = vadd.f32 %v4574_v18, %v1676_v11 }
 0x83e   :  { %v1866_v14 = vmul.f32 %v1862_v13, %v4672_v16  ;;  %v1918_v26 = vmul.f32 %v1914_v7, %v4672_v16  ;;  %v1859_v2 = vmul.f32 %v1855_v41, %v4689_v45  ;;  %v1848_v47 = vadd.f32 2.7706815e-08, %v1844_v57 }
 0x83f   :  { %v1911_v34 = vmul.f32 %v1907_v9, %v4689_v45  ;;  %v1857_v33 = vmul.f32 %v1853_v56, %v4696_v21  ;;  %v1909_v42 = vmul.f32 %v1905_v12, %v4696_v21  ;;  %v1896_v54 = vmul.f32 -1.45660715e-05, %v4711_v8 }
 0x840   :  { %v1870_v29 = vadd.f32 -0.00073499064, %v1866_v14  ;;  %v1922_v48 = vadd.f32 -0.014264739, %v1918_v26  ;;  %v1863_v39 = vadd.f32 -5.6925062e-05, %v1859_v2  ;;  %v1852_v5 = vmul.f32 %v1848_v47, %v4711_v8 }
 0x841   :  { %v1915_v1 = vadd.f32 -0.0073733293, %v1911_v34  ;;  %v1861_v61 = vadd.f32 -5.6925062e-05, %v1857_v33  ;;  %v1913_v30 = vadd.f32 -0.0073733293, %v1909_v42  ;;  %v1687_v32 = vadd.f32 %v4574_v18, %v1677_v20 }
 0x842   :  { %v1874_v51 = vmul.f32 %v1870_v29, %v4672_v16  ;;  %3810 = vrcp.f32 %v1922_v48  ;;  %v1856_v38 = vadd.f32 -2.101024e-06, %v1852_v5  ;;  %v1900_v52 = vadd.f32 -0.00021337405, %v1896_v54 }
 0x843   :  { %v1919_v60 = vmul.f32 %v1915_v1, %v4689_v45  ;;  %v1865_v53 = vmul.f32 %v1861_v61, %v4696_v21  ;;  %v1917_v50 = vmul.f32 %v1913_v30, %v4696_v21  ;;  %v1867_v46 = vmul.f32 %v1863_v39, %v4689_v45 }
 0x844   :  { %v1860_v43 = vmul.f32 %v1856_v38, %v4711_v8  ;;  %v3705_v0 = vpack.c.bf16 %v1687_v32, %v1686_v3  ;;  %v1904_v18 = vmul.f32 %v1900_v52, %v4711_v8  ;;  %v1878_v55 = vadd.f32 -0.0029546, %v1874_v51 }
 0x845   :  { %v1923_v25 = vadd.f32 -0.014264739, %v1919_v60  ;;  %v1869_v11 = vadd.f32 -0.00073499064, %v1865_v53  ;;  %v1921_v17 = vadd.f32 -0.014264739, %v1917_v50 }
 0x846   :  { %v1864_v4 = vadd.f32 -5.6925062e-05, %v1860_v43  ;;  %3706 = vmatprep.subr.bf16.mxu1 %v3705_v0  ;;  %v1908_v13 = vadd.f32 -0.001682827, %v1904_v18  ;;  %v1871_v7 = vadd.f32 -0.00073499064, %v1867_v46  ;;  %v1882_v9 = vmul.f32 %v1878_v55, %v4672_v16 }
 0x847   :  { %3812 = vrcp.f32 %v1923_v25  ;;  %v1873_v57 = vmul.f32 %v1869_v11, %v4696_v21  ;;  %3708 = vmatpush3.bf16.msra.mxu1 %v3705_v0 }
 0x848   :  { %3814 = vrcp.f32 %v1921_v17  ;;  %v1868_v41 = vmul.f32 %v1864_v4, %v4711_v8  ;;  %v1912_v20 = vmul.f32 %v1908_v13, %v4711_v8  ;;  %v1875_v14 = vmul.f32 %v1871_v7, %v4689_v45 }
 0x849   :  { %v1877_v56 = vadd.f32 -0.0029546, %v1873_v57  ;;  %v1886_v34 = vadd.f32 -0.016096033, %v1882_v9 }
 0x84a   :  { %3586 = vmatmul.mubr.msk.f32.vlgmr.msra.gmra.mrb[18].mxu1 %vm289_vm3, %v4582_v49  ;;  %v1916_v12 = vadd.f32 -0.0073733293, %v1912_v20  ;;  %v1872_v26 = vadd.f32 -0.00073499064, %v1868_v41  ;;  %v1879_v42 = vadd.f32 -0.0029546, %v1875_v14 }
 0x84b   :  { %3588 = vmatprep.mubr.msk.f32.mxu1 %vm289_vm3, %v4587_v27  ;;  %v1881_v49 = vmul.f32 %v1877_v56, %v4696_v21 }
 0x84c   :  { %v3811_v3 = vpop.eup %3810  ;;  %v1920_v47 = vmul.f32 %v1916_v12, %v4711_v8  ;;  %v1876_v54 = vmul.f32 %v1872_v26, %v4711_v8  ;;  %v1883_v30 = vmul.f32 %v1879_v42, %v4689_v45 }
 0x84d   :  { %v1930_v2 = vmul.f32 %v3811_v3, %v1922_v48  ;;  %v1890_v48 = vmul.f32 %v4660_v24, %v1886_v34  ;;  %v1885_v1 = vadd.f32 -0.016096033, %v1881_v49  ;;  %v1822_v24 = vmul.f32 0.5, %v4655_v23 }
 0x84e   :  { %3589 = vmatmul.mubr.msk.f32.gmra.mrb[20].mxu1 %vm289_vm3, %v4596_v28  ;;  %v1924_v16 = vadd.f32 -0.014264739, %v1920_v47  ;;  %v1880_v28 = vadd.f32 -0.0029546, %v1876_v54  ;;  %v1887_v53 = vadd.f32 -0.016096033, %v1883_v30 }
 0x84f   :  { %v1934_v33 = vsub.f32 2.0, %v1930_v2  ;;  %v1889_v21 = vmul.f32 %v4682_v22, %v1885_v1  ;;  %v1823_v23 = vmul.f32 0.5, %v4663_v15 }
 0x850   :  { %3816 = vrcp.f32 %v1924_v16  ;;  %v1884_v50 = vmul.f32 %v1880_v28, %v4711_v8  ;;  %v1891_v45 = vmul.f32 %v4678_v37, %v1887_v53 }
 0x851   :  { %v3813_v29 = vpop.eup %3812  ;;  %v1938_v27 = vmul.f32 %v3811_v3, %v1934_v33  ;;  %v4764_v3 = vld [vmem:[%s5155_s4 + $0x18] sm:$0xff] }
 0x852   :  { %v3815_v39 = vpop.eup %3814  ;;  %v1931_v5 = vmul.f32 %v3813_v29, %v1923_v25  ;;  %v1821_v25 = vmul.f32 0.5, %v4668_v63  ;;  %v1824_v63 = vmul.f32 0.5, %v4685_v62 }
 0x853   :  { %v1929_v61 = vmul.f32 %v3815_v39, %v1921_v17  ;;  %v1942_v32 = vmul.f32 %v1938_v27, %v1890_v48  ;;  %v1888_v17 = vadd.f32 -0.016096033, %v1884_v50 }
 0x854   :  { %v1935_v38 = vsub.f32 2.0, %v1931_v5 }
 0x855   :  { %v1933_v51 = vsub.f32 2.0, %v1929_v61  ;;  %v1946_v52 = vadd.f32 1.0, %v1942_v32  ;;  %v1892_v8 = vmul.f32 %v4705_v6, %v1888_v17 }
 0x856   :  { %v1939_v43 = vmul.f32 %v3813_v29, %v1935_v38 }
 0x857   :  { %v1937_v60 = vmul.f32 %v3815_v39, %v1933_v51  ;;  %v1950_v4 = vmul.f32 %v1946_v52, %v1822_v24 }
 0x858   :  { %v1943_v22 = vmul.f32 %v1939_v43, %v1891_v45 }
 0x859   :  { %v1941_v46 = vmul.f32 %v1937_v60, %v1889_v21 }
 0x85a   :  { %v3817_v0 = vpop.eup %3816  ;;  %v1947_v41 = vadd.f32 1.0, %v1943_v22 }
 0x85b   :  { %v1945_v11 = vadd.f32 1.0, %v1941_v46  ;;  %v1932_v18 = vmul.f32 %v3817_v0, %v1924_v16 }
 0x85c   :  { %v1951_v37 = vmul.f32 %v1947_v41, %v1823_v23 }
 0x85d   :  { %v1949_v55 = vmul.f32 %v1945_v11, %v1821_v25  ;;  %v1936_v57 = vsub.f32 2.0, %v1932_v18 }
 0x85f   :  { %v3697_v13 = vpack.c.bf16 %v1950_v4, %v1949_v55  ;;  %v1940_v7 = vmul.f32 %v3817_v0, %v1936_v57 }
 0x861   :  { %3698 = vmatprep.subr.bf16.mxu0 %v3697_v13  ;;  %v1944_v20 = vmul.f32 %v1940_v7, %v1892_v8 }
 0x862   :  { %3700 = vmatpush3.bf16.msra.mxu0 %v3697_v13 }
 0x863   :  { %v1948_v9 = vadd.f32 1.0, %v1944_v20 }
 0x865   :  { %v1952_v56 = vmul.f32 %v1948_v9, %v1824_v63 }
 0x867   :  { %v3701_v12 = vpack.c.bf16 %v1952_v56, %v1951_v37 }
 0x869   :  { %3702 = vmatprep.subr.bf16.mxu0 %v3701_v12 }
 0x86a   :  { %3704 = vmatpush3.bf16.msra.mxu0 %v3701_v12 }
 0x86d   :  { %3579 = vmatmul.mubr.msk.f32.vlgmr.msra.gmra.mrb[10].mxu0 %vm175_vm2, %v4764_v3 }
 0x86e   :  { %3599 = vmatprep.mubr.msk.f32.mxu0 %vm175_vm2, %v4644_v36 }
 0x91d   :  { %v3587_v15 = vpop.f32.mrb[18].mxu1 }
 0x91e   :  { %v4771_v62 = vadd.f32 %v3587_v15, %v4652_v31  ;;  %v2176_v6 = vpop.f32.mrb[19].mxu1 }
 0x91f   :  { %v4774_v14 = vadd.f32 %v2176_v6, %v4665_v10 }
 0x920   :  { %v2200_v26 = vmul.f32 0.70710677, %v4771_v62 }
 0x921   :  { %v2199_v2 = vmul.f32 0.70710677, %v4774_v14  ;;  %v3590_v47 = vpop.f32.mrb[20].mxu1 }
 0x922   :  { %v4778_v34 = vclamps-f32 %v2200_v26, 4.0  ;;  %v4781_v33 = vadd.f32 %v3590_v47, %v4680_v40  ;;  %v2186_v49 = vpop.f32.mrb[21].mxu1 }
 0x923   :  { %v4783_v36 = vclamps-f32 %v2199_v2, 4.0  ;;  %v4786_v31 = vadd.f32 %v2186_v49, %v4658_v19 }
 0x924   :  { %v4790_v10 = vmul.f32 %v4778_v34, %v4778_v34  ;;  %v2202_v16 = vmul.f32 0.70710677, %v4781_v33 }
 0x925   :  { %v4795_v42 = vmul.f32 %v4783_v36, %v4783_v36  ;;  %v2201_v54 = vmul.f32 0.70710677, %v4786_v31 }
 0x926   :  { %v2216_v40 = vmul.f32 -2.7261424e-10, %v4790_v10  ;;  %v2268_v29 = vmul.f32 -1.45660715e-05, %v4790_v10  ;;  %v4800_v27 = vclamps-f32 %v2202_v16, 4.0 }
 0x927   :  { %v2215_v19 = vmul.f32 -2.7261424e-10, %v4795_v42  ;;  %v2267_v39 = vmul.f32 -1.45660715e-05, %v4795_v42  ;;  %v4804_v5 = vclamps-f32 %v2201_v54, 4.0 }
 0x928   :  { %v2220_v48 = vadd.f32 2.7706815e-08, %v2216_v40  ;;  %v2272_v1 = vadd.f32 -0.00021337405, %v2268_v29  ;;  %v4808_v61 = vmul.f32 %v4800_v27, %v4800_v27 }
 0x929   :  { %v2219_v30 = vadd.f32 2.7706815e-08, %v2215_v19  ;;  %v2271_v28 = vadd.f32 -0.00021337405, %v2267_v39  ;;  %v4812_v32 = vmul.f32 %v4804_v5, %v4804_v5 }
 0x92a   :  { %v2224_v51 = vmul.f32 %v2220_v48, %v4790_v10  ;;  %v2276_v38 = vmul.f32 %v2272_v1, %v4790_v10  ;;  %v2218_v21 = vmul.f32 -2.7261424e-10, %v4808_v61  ;;  %v2270_v60 = vmul.f32 -1.45660715e-05, %v4808_v61 }
 0x92b   :  { %v2223_v53 = vmul.f32 %v2219_v30, %v4795_v42  ;;  %v2275_v50 = vmul.f32 %v2271_v28, %v4795_v42  ;;  %v2217_v52 = vmul.f32 -2.7261424e-10, %v4812_v32  ;;  %v2269_v46 = vmul.f32 -1.45660715e-05, %v4812_v32 }
 0x92c   :  { %v2228_v43 = vadd.f32 -2.101024e-06, %v2224_v51  ;;  %v2280_v0 = vadd.f32 -0.001682827, %v2276_v38  ;;  %v2222_v24 = vadd.f32 2.7706815e-08, %v2218_v21 }
 0x92d   :  { %v2227_v25 = vadd.f32 -2.101024e-06, %v2223_v53  ;;  %v2279_v11 = vadd.f32 -0.001682827, %v2275_v50  ;;  %v2274_v45 = vadd.f32 -0.00021337405, %v2270_v60 }
 0x92e   :  { %v2232_v17 = vmul.f32 %v2228_v43, %v4790_v10  ;;  %v2284_v18 = vmul.f32 %v2280_v0, %v4790_v10  ;;  %v2226_v4 = vmul.f32 %v2222_v24, %v4808_v61  ;;  %v2221_v55 = vadd.f32 2.7706815e-08, %v2217_v52 }
 0x92f   :  { %v2231_v22 = vmul.f32 %v2227_v25, %v4795_v42  ;;  %v2283_v57 = vmul.f32 %v2279_v11, %v4795_v42  ;;  %v2278_v13 = vmul.f32 %v2274_v45, %v4808_v61  ;;  %v2273_v8 = vadd.f32 -0.00021337405, %v2269_v46 }
 0x930   :  { %v2236_v7 = vadd.f32 -5.6925062e-05, %v2232_v17  ;;  %v2288_v41 = vadd.f32 -0.0073733293, %v2284_v18  ;;  %v2230_v20 = vadd.f32 -2.101024e-06, %v2226_v4  ;;  %v2225_v23 = vmul.f32 %v2221_v55, %v4812_v32 }
 0x931   :  { %v2235_v63 = vadd.f32 -5.6925062e-05, %v2231_v22  ;;  %v2287_v9 = vadd.f32 -0.0073733293, %v2283_v57  ;;  %v2282_v37 = vadd.f32 -0.001682827, %v2278_v13  ;;  %v2277_v56 = vmul.f32 %v2273_v8, %v4812_v32 }
 0x932   :  { %v2240_v12 = vmul.f32 %v2236_v7, %v4790_v10  ;;  %v2292_v15 = vmul.f32 %v2288_v41, %v4790_v10  ;;  %v2234_v6 = vmul.f32 %v2230_v20, %v4808_v61  ;;  %v2229_v26 = vadd.f32 -2.101024e-06, %v2225_v23  ;;  %v4848_v7 = vpop.permute.xlu0 %1960 }
 0x933   :  { %v2239_v2 = vmul.f32 %v2235_v63, %v4795_v42  ;;  %v2291_v47 = vmul.f32 %v2287_v9, %v4795_v42  ;;  %v2286_v49 = vmul.f32 %v2282_v37, %v4808_v61  ;;  %v2281_v16 = vadd.f32 -0.001682827, %v2277_v56  ;;  %v4852_v9 = vpop.permute.xlu1 %1955 }
 0x934   :  { %v2244_v54 = vadd.f32 -0.00073499064, %v2240_v12  ;;  %v2296_v40 = vadd.f32 -0.014264739, %v2292_v15  ;;  %v2238_v29 = vadd.f32 -5.6925062e-05, %v2234_v6  ;;  %v2233_v19 = vmul.f32 %v2229_v26, %v4812_v32 }
 0x935   :  { %v2243_v39 = vadd.f32 -0.00073499064, %v2239_v2  ;;  %v2295_v48 = vadd.f32 -0.014264739, %v2291_v47  ;;  %v2290_v1 = vadd.f32 -0.0073733293, %v2286_v49  ;;  %v2285_v30 = vmul.f32 %v2281_v16, %v4812_v32 }
 0x936   :  { %v2248_v28 = vmul.f32 %v2244_v54, %v4790_v10  ;;  %3818 = vrcp.f32 %v2296_v40  ;;  %v2242_v51 = vmul.f32 %v2238_v29, %v4808_v61  ;;  %v2237_v38 = vadd.f32 -5.6925062e-05, %v2233_v19 }
 0x937   :  { %v2247_v21 = vmul.f32 %v2243_v39, %v4795_v42  ;;  %3820 = vrcp.f32 %v2295_v48  ;;  %v2294_v60 = vmul.f32 %v2290_v1, %v4808_v61  ;;  %v2289_v53 = vadd.f32 -0.0073733293, %v2285_v30 }
 0x938   :  { %v2252_v50 = vadd.f32 -0.0029546, %v2248_v28  ;;  %v2246_v52 = vadd.f32 -0.00073499064, %v2242_v51  ;;  %v2241_v46 = vmul.f32 %v2237_v38, %v4812_v32  ;;  %v2196_v6 = vmul.f32 0.5, %v4771_v62 }
 0x939   :  { %v2298_v43 = vadd.f32 -0.014264739, %v2294_v60  ;;  %v2293_v0 = vmul.f32 %v2289_v53, %v4812_v32  ;;  %v2251_v24 = vadd.f32 -0.0029546, %v2247_v21  ;;  %v2195_v62 = vmul.f32 0.5, %v4774_v14 }
 0x93a   :  { %v2250_v25 = vmul.f32 %v2246_v52, %v4808_v61  ;;  %v2245_v11 = vadd.f32 -0.00073499064, %v2241_v46  ;;  %v2256_v17 = vmul.f32 %v2252_v50, %v4790_v10 }
 0x93b   :  { %3822 = vrcp.f32 %v2298_v43  ;;  %v2297_v45 = vadd.f32 -0.014264739, %v2293_v0  ;;  %v2255_v55 = vmul.f32 %v2251_v24, %v4795_v42 }
 0x93c   :  { %v2249_v18 = vmul.f32 %v2245_v11, %v4812_v32  ;;  %v2254_v4 = vadd.f32 -0.0029546, %v2250_v25  ;;  %v2260_v13 = vadd.f32 -0.016096033, %v2256_v17 }
 0x93d   :  { %3824 = vrcp.f32 %v2297_v45  ;;  %v2259_v10 = vadd.f32 -0.016096033, %v2255_v55 }
 0x93e   :  { %v2253_v22 = vadd.f32 -0.0029546, %v2249_v18  ;;  %v2258_v20 = vmul.f32 %v2254_v4, %v4808_v61  ;;  %v2264_v26 = vmul.f32 %v4778_v34, %v2260_v13  ;;  %v2198_v34 = vmul.f32 0.5, %v4781_v33 }
 0x940   :  { %v3819_v57 = vpop.eup %3818  ;;  %v2257_v23 = vmul.f32 %v2253_v22, %v4812_v32  ;;  %v3580_v63 = vpop.f32.mrb[10].mxu0  ;;  %v2262_v49 = vadd.f32 -0.016096033, %v2258_v20 }
 0x941   :  { %v3821_v8 = vpop.eup %3820  ;;  %v2304_v41 = vmul.f32 %v3819_v57, %v2296_v40  ;;  %v4855_v56 = vadd.f32 %v3580_v63, %v4848_v7  ;;  %v2035_v42 = vpop.f32.mrb[11].mxu0  ;;  %v2263_v40 = vmul.f32 %v4783_v36, %v2259_v10  ;;  %v2197_v63 = vmul.f32 0.5, %v4786_v31 }
 0x942   :  { %v2303_v37 = vmul.f32 %v3821_v8, %v2295_v48  ;;  %v4858_v15 = vadd.f32 %v2035_v42, %v4852_v9  ;;  %v2261_v16 = vadd.f32 -0.016096033, %v2257_v23  ;;  %v2266_v60 = vmul.f32 %v4800_v27, %v2262_v49 }
 0x943   :  { %v2308_v12 = vsub.f32 2.0, %v2304_v41  ;;  %v2047_v32 = vmul.f32 0.70710677, %v4855_v56 }
 0x944   :  { %v2307_v61 = vsub.f32 2.0, %v2303_v37  ;;  %v2046_v54 = vmul.f32 0.70710677, %v4858_v15  ;;  %v2265_v53 = vmul.f32 %v4804_v5, %v2261_v16 }
 0x945   :  { %v3823_v2 = vpop.eup %3822  ;;  %v2312_v47 = vmul.f32 %v3819_v57, %v2308_v12  ;;  %v4865_v39 = vclamps-f32 %v2047_v32, 4.0 }
 0x946   :  { %v2311_v29 = vmul.f32 %v3821_v8, %v2307_v61  ;;  %v2306_v19 = vmul.f32 %v3823_v2, %v2298_v43  ;;  %v4869_v30 = vclamps-f32 %v2046_v54, 4.0 }
 0x947   :  { %v3825_v48 = vpop.eup %3824  ;;  %v2316_v1 = vmul.f32 %v2312_v47, %v2264_v26  ;;  %v4873_v21 = vmul.f32 %v4865_v39, %v4865_v39 }
 0x948   :  { %v2315_v28 = vmul.f32 %v2311_v29, %v2263_v40  ;;  %v2310_v51 = vsub.f32 2.0, %v2306_v19  ;;  %v2305_v38 = vmul.f32 %v3825_v48, %v2297_v45  ;;  %v2052_v50 = vmul.f32 %v4869_v30, %v4869_v30 }
 0x949   :  { %v2320_v36 = vadd.f32 1.0, %v2316_v1  ;;  %v2055_v46 = vmul.f32 -2.7261424e-10, %v4873_v21  ;;  %v2081_v0 = vmul.f32 -1.45660715e-05, %v4873_v21 }
 0x94a   :  { %v2319_v14 = vadd.f32 1.0, %v2315_v28  ;;  %v2314_v52 = vmul.f32 %v3823_v2, %v2310_v51  ;;  %v2309_v33 = vsub.f32 2.0, %v2305_v38  ;;  %v2054_v24 = vmul.f32 -2.7261424e-10, %v2052_v50 }
 0x94b   :  { %v2324_v43 = vmul.f32 %v2320_v36, %v2196_v6  ;;  %v2080_v25 = vmul.f32 -1.45660715e-05, %v2052_v50  ;;  %v2057_v18 = vadd.f32 2.7706815e-08, %v2055_v46  ;;  %v2083_v27 = vadd.f32 -0.00021337405, %v2081_v0 }
 0x94c   :  { %v2323_v11 = vmul.f32 %v2319_v14, %v2195_v62  ;;  %v2318_v45 = vmul.f32 %v2314_v52, %v2266_v60  ;;  %v2313_v17 = vmul.f32 %v3825_v48, %v2309_v33  ;;  %v2056_v4 = vadd.f32 2.7706815e-08, %v2054_v24 }
 0x94d   :  { %v2082_v5 = vadd.f32 -0.00021337405, %v2080_v25  ;;  %v2059_v57 = vmul.f32 %v2057_v18, %v4873_v21  ;;  %v2085_v8 = vmul.f32 %v2083_v27, %v4873_v21 }
 0x94e   :  { %v2322_v55 = vadd.f32 1.0, %v2318_v45  ;;  %v2317_v22 = vmul.f32 %v2313_v17, %v2265_v53  ;;  %v3709_v13 = vpack.c.bf16 %v2324_v43, %v2323_v11  ;;  %v2058_v41 = vmul.f32 %v2056_v4, %v2052_v50 }
 0x94f   :  { %v2084_v20 = vmul.f32 %v2082_v5, %v2052_v50  ;;  %v2061_v37 = vadd.f32 -2.101024e-06, %v2059_v57  ;;  %v2087_v42 = vadd.f32 -0.001682827, %v2085_v8 }
 0x950   :  { %v2326_v23 = vmul.f32 %v2322_v55, %v2198_v34  ;;  %v2321_v10 = vadd.f32 1.0, %v2317_v22  ;;  %3710 = vmatprep.subr.bf16.mxu0 %v3709_v13  ;;  %v2060_v12 = vadd.f32 -2.101024e-06, %v2058_v41  ;;  %v2045_v55 = vmul.f32 0.5, %v4855_v56 }
 0x951   :  { %v2086_v6 = vadd.f32 -0.001682827, %v2084_v20  ;;  %3712 = vmatpush3.bf16.msra.mxu0 %v3709_v13  ;;  %v2063_v61 = vmul.f32 %v2061_v37, %v4873_v21  ;;  %v2089_v32 = vmul.f32 %v2087_v42, %v4873_v21  ;;  %v3342_v20 = vld [vmem:[%s5161_s10 + $0x20] sm:$0xff]  ;;  %v3345_v37 = vld [vmem:[%s5161_s10 + $0x38] sm:$0xff] }
 0x952   :  { %v2325_v26 = vmul.f32 %v2321_v10, %v2197_v63  ;;  %v2062_v2 = vmul.f32 %v2060_v12, %v2052_v50  ;;  %v3344_v10 = vld [vmem:[%s5161_s10 + $0x30] sm:$0xff] }
 0x953   :  { %v2088_v47 = vmul.f32 %v2086_v6, %v2052_v50  ;;  %v2065_v49 = vadd.f32 -5.6925062e-05, %v2063_v61  ;;  %v2091_v54 = vadd.f32 -0.0073733293, %v2089_v32  ;;  %v3721_v42 = vpack.c.bf16 %v3345_v37, %v3344_v10 }
 0x954   :  { %v3713_v16 = vpack.c.bf16 %v2326_v23, %v2325_v26  ;;  %v2064_v40 = vadd.f32 -5.6925062e-05, %v2062_v2  ;;  %v3343_v23 = vld [vmem:[%s5161_s10 + $0x28] sm:$0xff] }
 0x955   :  { %v2090_v29 = vadd.f32 -0.0073733293, %v2088_v47  ;;  %v2067_v31 = vmul.f32 %v2065_v49, %v4873_v21  ;;  %v2093_v19 = vmul.f32 %v2091_v54, %v4873_v21  ;;  %v3717_v63 = vpack.c.bf16 %v3343_v23, %v3342_v20 }
 0x956   :  { %3714 = vmatprep.subr.bf16.mxu0 %v3713_v16  ;;  %v2066_v48 = vmul.f32 %v2064_v40, %v2052_v50 }
 0x957   :  { %v2092_v1 = vmul.f32 %v2090_v29, %v2052_v50  ;;  %3716 = vmatpush3.bf16.msra.mxu0 %v3713_v16  ;;  %v2069_v62 = vadd.f32 -0.00073499064, %v2067_v31  ;;  %v2095_v34 = vadd.f32 -0.014264739, %v2093_v19  ;;  %3718 = vmatprep.subr.bf16.mxu1 %v3717_v63 }
 0x958   :  { %v2068_v28 = vadd.f32 -0.00073499064, %v2066_v48  ;;  %3720 = vmatpush3.bf16.msra.mxu1 %v3717_v63  ;;  %v4927_v48 = vld [vmem:[%s5159_s8 + $0x1] ss:$0 sm:$0xff] }
 0x959   :  { %v2094_v51 = vadd.f32 -0.014264739, %v2092_v1  ;;  %v2071_v38 = vmul.f32 %v2069_v62, %v4873_v21  ;;  %3826 = vrcp.f32 %v2095_v34  ;;  %3722 = vmatprep.subr.bf16.mxu1 %v3721_v42 }
 0x95a   :  { %3600 = vmatmul.mubr.msk.f32.vlgmr.msra.gmra.mrb[12].mxu0 %vm175_vm2, %v4764_v3  ;;  %v2070_v36 = vmul.f32 %v2068_v28, %v2052_v50 }
 0x95b   :  { %3828 = vrcp.f32 %v2094_v51  ;;  %v2073_v60 = vadd.f32 -0.0029546, %v2071_v38 }
 0x95c   :  { %v2072_v53 = vadd.f32 -0.0029546, %v2070_v36  ;;  %3724 = vmatpush3.bf16.msra.mxu1 %v3721_v42  ;;  %v4936_v36 = vld [vmem:[%s5160_s9 + $0x1] ss:$0 sm:$0xff] }
 0x95d   :  { %v2075_v14 = vmul.f32 %v2073_v60, %v4873_v21 }
 0x95e   :  { %v2074_v52 = vmul.f32 %v2072_v53, %v2052_v50  ;;  %v2044_v50 = vmul.f32 0.5, %v4858_v15 }
 0x95f   :  { %v2077_v43 = vadd.f32 -0.016096033, %v2075_v14 }
 0x960   :  { %v2076_v24 = vadd.f32 -0.016096033, %v2074_v52 }
 0x961   :  { %v2079_v17 = vmul.f32 %v4865_v39, %v2077_v43 }
 0x962   :  { %v2078_v3 = vmul.f32 %v4869_v30, %v2076_v24 }
 0x963   :  { %v3827_v33 = vpop.eup %3826 }
 0x964   :  { %v2099_v0 = vmul.f32 %v3827_v33, %v2095_v34 }
 0x965   :  { %v3829_v46 = vpop.eup %3828 }
 0x966   :  { %v2098_v25 = vmul.f32 %v3829_v46, %v2094_v51  ;;  %v2101_v11 = vsub.f32 2.0, %v2099_v0 }
 0x968   :  { %v2100_v45 = vsub.f32 2.0, %v2098_v25  ;;  %v2103_v18 = vmul.f32 %v3827_v33, %v2101_v11 }
 0x96a   :  { %v2102_v27 = vmul.f32 %v3829_v46, %v2100_v45  ;;  %v2105_v4 = vmul.f32 %v2103_v18, %v2079_v17 }
 0x96c   :  { %v2104_v5 = vmul.f32 %v2102_v27, %v2078_v3  ;;  %v2107_v21 = vadd.f32 1.0, %v2105_v4 }
 0x96e   :  { %v2106_v22 = vadd.f32 1.0, %v2104_v5  ;;  %v2109_v57 = vmul.f32 %v2107_v21, %v2045_v55 }
 0x970   :  { %v2108_v13 = vmul.f32 %v2106_v22, %v2044_v50  ;;  %v4897_v8 = vadd.f32 %v2109_v57, %v4528_v35 }
 0x972   :  { %v4900_v41 = vadd.f32 %v2108_v13, %v4533_v44  ;;  %v2479_v39 = vsel %vm175_vm2, %v4897_v8, 0.0  ;;  %v2493_v15 = vmul.f32 %v4897_v8, %v4897_v8 }
 0x973   :  { %2480 = vadd.xlane.f32.xlu0 %v2479_v39 }
 0x974   :  { %v2476_v30 = vsel %vm175_vm2, %v4900_v41, 0.0  ;;  %v2492_v56 = vmul.f32 %v4900_v41, %v4900_v41  ;;  %v2499_v44 = vsel %vm175_vm2, %v2493_v15, 0.0 }
 0x975   :  { %2477 = vadd.xlane.f32.xlu1 %v2476_v30 }
 0x976   :  { %v2496_v35 = vsel %vm175_vm2, %v2492_v56, 0.0 }
 0x977   :  { %2497 = vadd.xlane.f32.xlu0 %v2496_v35 }
 0x979   :  { %2500 = vadd.xlane.f32.xlu1 %v2499_v44 }
 0xa00   :  { %v2481_v12 = vpop.xlane.xlu0 %2480 }
 0xa01   :  { %v2489_v26 = vmul.f32 0.03125, %v2481_v12 }
 0xa02   :  { %v2478_v6 = vpop.xlane.xlu1 %2477 }
 0xa03   :  { %v2488_v61 = vmul.f32 0.03125, %v2478_v6  ;;  %v2513_v16 = vmul.f32 %v2489_v26, %v2489_v26  ;;  %v2529_v51 = vsub.f32 %v4897_v8, %v2489_v26 }
 0xa04   :  { %v2498_v2 = vpop.xlane.xlu0 %2497 }
 0xa05   :  { %v2512_v32 = vmul.f32 %v2488_v61, %v2488_v61  ;;  %v2508_v47 = vmul.f32 0.03125, %v2498_v2  ;;  %v2528_v34 = vsub.f32 %v4900_v41, %v2488_v61 }
 0xa06   :  { %v2501_v49 = vpop.xlane.xlu1 %2500 }
 0xa07   :  { %v2509_v54 = vmul.f32 0.03125, %v2501_v49  ;;  %v2516_v40 = vsub.f32 %v2508_v47, %v2512_v32 }
 0xa09   :  { %v2517_v29 = vsub.f32 %v2509_v54, %v2513_v16  ;;  %v2520_v31 = vadd.f32 1e-05, %v2516_v40 }
 0xa0b   :  { %v2521_v19 = vadd.f32 1e-05, %v2517_v29  ;;  %3830 = vrsqrt.f32 %v2520_v31 }
 0xa0d   :  { %3832 = vrsqrt.f32 %v2521_v19 }
 0xa15   :  { %v3831_v1 = vpop.eup %3830 }
 0xa16   :  { %v2538_v28 = vmul.f32 %v3831_v1, %v4927_v48 }
 0xa17   :  { %v3833_v62 = vpop.eup %3832 }
 0xa18   :  { %v2539_v38 = vmul.f32 %v3833_v62, %v4927_v48  ;;  %v2542_v60 = vmul.f32 %v2538_v28, %v2528_v34 }
 0xa1a   :  { %v2543_v53 = vmul.f32 %v2539_v38, %v2529_v51  ;;  %v2552_v14 = vadd.f32 %v4936_v36, %v2542_v60 }
 0xa1c   :  { %v2553_v52 = vadd.f32 %v4936_v36, %v2543_v53  ;;  %3610 = vmatprep.mubr.msk.f32.mxu1 %vm175_vm2, %v2552_v14 }
 0xa1e   :  { %3611 = vmatmul.mubr.msk.f32.vlgmr.msra.gmra.mrb[22].mxu1 %vm175_vm2, %v2553_v52 }
 0xa2d   :  { %v3601_v33 = vpop.f32.mrb[12].mxu0 }
 0xa2e   :  { %v4943_v46 = vadd.f32 %v3601_v33, %v4848_v7  ;;  %v2393_v43 = vpop.f32.mrb[13].mxu0 }
 0xa2f   :  { %v2394_v0 = vadd.f32 %v2393_v43, %v4852_v9 }
 0xa30   :  { %v2405_v24 = vmul.f32 0.70710677, %v4943_v46 }
 0xa31   :  { %v2404_v25 = vmul.f32 0.70710677, %v2394_v0 }
 0xa32   :  { %v3337_v11 = vclamps-f32 %v2405_v24, 4.0 }
 0xa33   :  { %v3336_v45 = vclamps-f32 %v2404_v25, 4.0 }
 0xa34   :  { %v2411_v17 = vmul.f32 %v3337_v11, %v3337_v11 }
 0xa35   :  { %v2410_v18 = vmul.f32 %v3336_v45, %v3336_v45 }
 0xa36   :  { %v2413_v3 = vmul.f32 -2.7261424e-10, %v2411_v17  ;;  %v2439_v27 = vmul.f32 -1.45660715e-05, %v2411_v17 }
 0xa37   :  { %v2412_v4 = vmul.f32 -2.7261424e-10, %v2410_v18  ;;  %v2438_v5 = vmul.f32 -1.45660715e-05, %v2410_v18 }
 0xa38   :  { %v2415_v55 = vadd.f32 2.7706815e-08, %v2413_v3  ;;  %v2441_v21 = vadd.f32 -0.00021337405, %v2439_v27  ;;  %v2403_v3 = vmul.f32 0.5, %v4943_v46 }
 0xa39   :  { %v2414_v50 = vadd.f32 2.7706815e-08, %v2412_v4  ;;  %v2440_v22 = vadd.f32 -0.00021337405, %v2438_v5  ;;  %v2402_v4 = vmul.f32 0.5, %v2394_v0 }
 0xa3a   :  { %v2417_v7 = vmul.f32 %v2415_v55, %v2411_v17  ;;  %v2443_v57 = vmul.f32 %v2441_v21, %v2411_v17 }
 0xa3b   :  { %v2416_v13 = vmul.f32 %v2414_v50, %v2410_v18  ;;  %v2442_v39 = vmul.f32 %v2440_v22, %v2410_v18  ;;  %v3356_v50 = vld [vmem:[%s5163_s12 + $0x20] sm:$0xff]  ;;  %v3357_v22 = vld [vmem:[%s5163_s12 + $0x28] sm:$0xff] }
 0xa3c   :  { %v2419_v9 = vadd.f32 -2.101024e-06, %v2417_v7  ;;  %v2445_v30 = vadd.f32 -0.001682827, %v2443_v57  ;;  %v3725_v7 = vpack.c.bf16 %v3357_v22, %v3356_v50  ;;  %v3358_v57 = vld [vmem:[%s5163_s12 + $0x30] sm:$0xff] }
 0xa3d   :  { %v2418_v56 = vadd.f32 -2.101024e-06, %v2416_v13  ;;  %v2444_v15 = vadd.f32 -0.001682827, %v2442_v39  ;;  %v3359_v13 = vld [vmem:[%s5163_s12 + $0x38] sm:$0xff] }
 0xa3e   :  { %v2421_v35 = vmul.f32 %v2419_v9, %v2411_v17  ;;  %v2447_v44 = vmul.f32 %v2445_v30, %v2411_v17  ;;  %3726 = vmatprep.subr.bf16.mxu0 %v3725_v7  ;;  %v3729_v39 = vpack.c.bf16 %v3359_v13, %v3358_v57 }
 0xa3f   :  { %v2420_v20 = vmul.f32 %v2418_v56, %v2410_v18  ;;  %v2446_v23 = vmul.f32 %v2444_v15, %v2410_v18  ;;  %3728 = vmatpush3.bf16.msra.mxu0 %v3725_v7 }
 0xa40   :  { %v2423_v63 = vadd.f32 -5.6925062e-05, %v2421_v35  ;;  %v2449_v10 = vadd.f32 -0.0073733293, %v2447_v44  ;;  %3730 = vmatprep.subr.bf16.mxu0 %v3729_v39  ;;  %v4979_v35 = vld [vmem:[%s5162_s11 + $0x1] ss:$0 sm:$0xff] }
 0xa41   :  { %v2422_v37 = vadd.f32 -5.6925062e-05, %v2420_v20  ;;  %v2448_v42 = vadd.f32 -0.0073733293, %v2446_v23 }
 0xa42   :  { %v2425_v12 = vmul.f32 %v2423_v63, %v2411_v17  ;;  %v2451_v6 = vmul.f32 %v2449_v10, %v2411_v17 }
 0xa43   :  { %v2424_v26 = vmul.f32 %v2422_v37, %v2410_v18  ;;  %v2450_v61 = vmul.f32 %v2448_v42, %v2410_v18  ;;  %3732 = vmatpush3.bf16.msra.mxu0 %v3729_v39 }
 0xa44   :  { %v2427_v32 = vadd.f32 -0.00073499064, %v2425_v12  ;;  %v2453_v2 = vadd.f32 -0.014264739, %v2451_v6 }
 0xa45   :  { %v2426_v47 = vadd.f32 -0.00073499064, %v2424_v26  ;;  %v2452_v49 = vadd.f32 -0.014264739, %v2450_v61 }
 0xa46   :  { %v2429_v16 = vmul.f32 %v2427_v32, %v2411_v17  ;;  %3834 = vrcp.f32 %v2453_v2 }
 0xa47   :  { %v2428_v54 = vmul.f32 %v2426_v47, %v2410_v18  ;;  %3836 = vrcp.f32 %v2452_v49 }
 0xa48   :  { %v2431_v40 = vadd.f32 -0.0029546, %v2429_v16 }
 0xa49   :  { %v2430_v29 = vadd.f32 -0.0029546, %v2428_v54 }
 0xa4a   :  { %v2433_v31 = vmul.f32 %v2431_v40, %v2411_v17 }
 0xa4b   :  { %v2432_v19 = vmul.f32 %v2430_v29, %v2410_v18 }
 0xa4c   :  { %v2435_v34 = vadd.f32 -0.016096033, %v2433_v31 }
 0xa4d   :  { %v2434_v51 = vadd.f32 -0.016096033, %v2432_v19 }
 0xa4e   :  { %v2437_v14 = vmul.f32 %v3337_v11, %v2435_v34 }
 0xa4f   :  { %v2436_v33 = vmul.f32 %v3336_v45, %v2434_v51 }
 0xa50   :  { %v3835_v1 = vpop.eup %3834 }
 0xa51   :  { %v3837_v62 = vpop.eup %3836  ;;  %v2457_v28 = vmul.f32 %v3835_v1, %v2453_v2 }
 0xa52   :  { %v2456_v38 = vmul.f32 %v3837_v62, %v2452_v49 }
 0xa53   :  { %v2459_v60 = vsub.f32 2.0, %v2457_v28 }
 0xa54   :  { %v2458_v53 = vsub.f32 2.0, %v2456_v38 }
 0xa55   :  { %v2461_v52 = vmul.f32 %v3835_v1, %v2459_v60 }
 0xa56   :  { %v2460_v43 = vmul.f32 %v3837_v62, %v2458_v53 }
 0xa57   :  { %v2463_v24 = vmul.f32 %v2461_v52, %v2437_v14 }
 0xa58   :  { %v2462_v25 = vmul.f32 %v2460_v43, %v2436_v33 }
 0xa59   :  { %v2465_v27 = vadd.f32 1.0, %v2463_v24 }
 0xa5a   :  { %v2464_v17 = vadd.f32 1.0, %v2462_v25 }
 0xa5b   :  { %v2467_v18 = vmul.f32 %v2465_v27, %v2403_v3 }
 0xa5c   :  { %v2466_v5 = vmul.f32 %v2464_v17, %v2402_v4 }
 0xa5d   :  { %v4949_v55 = vadd.f32 %v2467_v18, %v4608_v58 }
 0xa5e   :  { %v4952_v21 = vadd.f32 %v2466_v5, %v4611_v59 }
 0xa5f   :  { %v2485_v11 = vsel %vm175_vm2, %v4949_v55, 0.0  ;;  %v2495_v45 = vmul.f32 %v4949_v55, %v4949_v55 }
 0xa60   :  { %2486 = vadd.xlane.f32.xlu1 %v2485_v11  ;;  %v2482_v46 = vsel %vm175_vm2, %v4952_v21, 0.0  ;;  %v2494_v0 = vmul.f32 %v4952_v21, %v4952_v21 }
 0xa61   :  { %2483 = vadd.xlane.f32.xlu0 %v2482_v46  ;;  %v2505_v58 = vsel %vm175_vm2, %v2495_v45, 0.0 }
 0xa62   :  { %v2502_v59 = vsel %vm175_vm2, %v2494_v0, 0.0 }
 0xa64   :  { %2506 = vadd.xlane.f32.xlu1 %v2505_v58 }
 0xa65   :  { %2503 = vadd.xlane.f32.xlu0 %v2502_v59 }
 0xaed   :  { %v2487_v9 = vpop.xlane.xlu1 %2486 }
 0xaee   :  { %v2491_v30 = vmul.f32 0.03125, %v2487_v9  ;;  %v2484_v56 = vpop.xlane.xlu0 %2483 }
 0xaef   :  { %v2490_v15 = vmul.f32 0.03125, %v2484_v56 }
 0xaf0   :  { %v2515_v20 = vmul.f32 %v2491_v30, %v2491_v30  ;;  %v2531_v17 = vsub.f32 %v4949_v55, %v2491_v30 }
 0xaf1   :  { %v2507_v44 = vpop.xlane.xlu1 %2506  ;;  %v3612_v10 = vpop.f32.mrb[22].mxu1  ;;  %v2514_v37 = vmul.f32 %v2490_v15, %v2490_v15  ;;  %v2530_v45 = vsub.f32 %v4952_v21, %v2490_v15 }
 0xaf2   :  { %v2511_v23 = vmul.f32 0.03125, %v2507_v44  ;;  %v2504_v63 = vpop.xlane.xlu0 %2503  ;;  %v4982_v12 = vadd.f32 %v3612_v10, %v4979_v35  ;;  %v2647_v6 = vpop.f32.mrb[23].mxu1 }
 0xaf3   :  { %v2510_v42 = vmul.f32 0.03125, %v2504_v63  ;;  %v4985_v61 = vadd.f32 %v4979_v35, %v2647_v6 }
 0xaf4   :  { %v2519_v26 = vsub.f32 %v2511_v23, %v2515_v20  ;;  %v2671_v2 = vmul.f32 0.70710677, %v4982_v12 }
 0xaf5   :  { %v2518_v32 = vsub.f32 %v2510_v42, %v2514_v37  ;;  %v2670_v49 = vmul.f32 0.70710677, %v4985_v61 }
 0xaf6   :  { %v2523_v47 = vadd.f32 1e-05, %v2519_v26  ;;  %v4989_v54 = vclamps-f32 %v2671_v2, 4.0 }
 0xaf7   :  { %v2522_v16 = vadd.f32 1e-05, %v2518_v32  ;;  %v4991_v40 = vclamps-f32 %v2670_v49, 4.0 }
 0xaf8   :  { %3838 = vrsqrt.f32 %v2523_v47  ;;  %v2683_v29 = vmul.f32 %v4989_v54, %v4989_v54 }
 0xaf9   :  { %3840 = vrsqrt.f32 %v2522_v16  ;;  %v2682_v31 = vmul.f32 %v4991_v40, %v4991_v40 }
 0xafa   :  { %v2687_v19 = vmul.f32 -2.7261424e-10, %v2683_v29  ;;  %v2739_v1 = vmul.f32 -1.45660715e-05, %v2683_v29 }
 0xafb   :  { %v2686_v62 = vmul.f32 -2.7261424e-10, %v2682_v31  ;;  %v2738_v34 = vmul.f32 -1.45660715e-05, %v2682_v31 }
 0xafc   :  { %v2691_v28 = vadd.f32 2.7706815e-08, %v2687_v19  ;;  %v2743_v51 = vadd.f32 -0.00021337405, %v2739_v1 }
 0xafd   :  { %v2690_v38 = vadd.f32 2.7706815e-08, %v2686_v62  ;;  %v2742_v60 = vadd.f32 -0.00021337405, %v2738_v34 }
 0xafe   :  { %v2695_v53 = vmul.f32 %v2691_v28, %v2683_v29  ;;  %v2747_v14 = vmul.f32 %v2743_v51, %v2683_v29 }
 0xaff   :  { %v2694_v52 = vmul.f32 %v2690_v38, %v2682_v31  ;;  %v2746_v33 = vmul.f32 %v2742_v60, %v2682_v31 }
 0xb00   :  { %v2699_v43 = vadd.f32 -2.101024e-06, %v2695_v53  ;;  %v2751_v24 = vadd.f32 -0.001682827, %v2747_v14 }
 0xb01   :  { %v2698_v3 = vadd.f32 -2.101024e-06, %v2694_v52  ;;  %v2750_v27 = vadd.f32 -0.001682827, %v2746_v33  ;;  %v2667_v52 = vmul.f32 0.5, %v4982_v12 }
 0xb02   :  { %v3839_v25 = vpop.eup %3838  ;;  %v2703_v18 = vmul.f32 %v2699_v43, %v2683_v29  ;;  %v2755_v5 = vmul.f32 %v2751_v24, %v2683_v29 }
 0xb03   :  { %v3841_v4 = vpop.eup %3840  ;;  %v2541_v11 = vmul.f32 %v3839_v25, %v4927_v48  ;;  %v2702_v46 = vmul.f32 %v2698_v3, %v2682_v31  ;;  %v2754_v0 = vmul.f32 %v2750_v27, %v2682_v31 }
 0xb04   :  { %v2540_v58 = vmul.f32 %v3841_v4, %v4927_v48  ;;  %v2707_v59 = vadd.f32 -5.6925062e-05, %v2703_v18  ;;  %v2759_v50 = vadd.f32 -0.0073733293, %v2755_v5 }
 0xb05   :  { %v2545_v22 = vmul.f32 %v2541_v11, %v2531_v17  ;;  %v2706_v7 = vadd.f32 -5.6925062e-05, %v2702_v46  ;;  %v2758_v57 = vadd.f32 -0.0073733293, %v2754_v0 }
 0xb06   :  { %v2544_v13 = vmul.f32 %v2540_v58, %v2530_v45  ;;  %v2711_v39 = vmul.f32 %v2707_v59, %v2683_v29  ;;  %v2763_v9 = vmul.f32 %v2759_v50, %v2683_v29 }
 0xb07   :  { %v2710_v56 = vmul.f32 %v2706_v7, %v2682_v31  ;;  %v2762_v30 = vmul.f32 %v2758_v57, %v2682_v31  ;;  %v2555_v15 = vadd.f32 %v4936_v36, %v2545_v22 }
 0xb08   :  { %v2554_v44 = vadd.f32 %v4936_v36, %v2544_v13  ;;  %v2715_v20 = vadd.f32 -0.00073499064, %v2711_v39  ;;  %v2767_v23 = vadd.f32 -0.014264739, %v2763_v9 }
 0xb09   :  { %v2714_v63 = vadd.f32 -0.00073499064, %v2710_v56  ;;  %v2766_v10 = vadd.f32 -0.014264739, %v2762_v30 }
 0xb0a   :  { %3613 = vmatprep.mubr.msk.f32.mxu1 %vm175_vm2, %v2554_v44  ;;  %v2719_v48 = vmul.f32 %v2715_v20, %v2683_v29  ;;  %3842 = vrcp.f32 %v2767_v23 }
 0xb0b   :  { %3614 = vmatmul.mubr.msk.f32.gmra.mrb[24].mxu1 %vm175_vm2, %v2555_v15  ;;  %v2718_v37 = vmul.f32 %v2714_v63, %v2682_v31  ;;  %3844 = vrcp.f32 %v2766_v10 }
 0xb0c   :  { %v2723_v42 = vadd.f32 -0.0029546, %v2719_v48 }
 0xb0d   :  { %v2722_v6 = vadd.f32 -0.0029546, %v2718_v37 }
 0xb0e   :  { %v2727_v26 = vmul.f32 %v2723_v42, %v2683_v29  ;;  %v2666_v29 = vmul.f32 0.5, %v4985_v61 }
 0xb0f   :  { %v2726_v32 = vmul.f32 %v2722_v6, %v2682_v31 }
 0xb10   :  { %v2731_v49 = vadd.f32 -0.016096033, %v2727_v26 }
 0xb11   :  { %v2730_v19 = vadd.f32 -0.016096033, %v2726_v32 }
 0xb12   :  { %v2735_v34 = vmul.f32 %v4989_v54, %v2731_v49 }
 0xb13   :  { %v2734_v51 = vmul.f32 %v4991_v40, %v2730_v19 }
 0xb14   :  { %v3843_v2 = vpop.eup %3842 }
 0xb15   :  { %v3845_v47 = vpop.eup %3844  ;;  %v2775_v16 = vmul.f32 %v3843_v2, %v2767_v23 }
 0xb16   :  { %v2774_v36 = vmul.f32 %v3845_v47, %v2766_v10 }
 0xb17   :  { %v2779_v1 = vsub.f32 2.0, %v2775_v16 }
 0xb18   :  { %v2778_v62 = vsub.f32 2.0, %v2774_v36 }
 0xb19   :  { %v2783_v28 = vmul.f32 %v3843_v2, %v2779_v1  ;;  %v5030_v2 = vld [vmem:[%s5164_s13 + $0x1] ss:$0 sm:$0xff] }
 0xb1a   :  { %v2782_v38 = vmul.f32 %v3845_v47, %v2778_v62 }
 0xb1b   :  { %v2787_v60 = vmul.f32 %v2783_v28, %v2735_v34 }
 0xb1c   :  { %v2786_v53 = vmul.f32 %v2782_v38, %v2734_v51 }
 0xb1d   :  { %v2791_v14 = vadd.f32 1.0, %v2787_v60 }
 0xb1e   :  { %v2790_v31 = vadd.f32 1.0, %v2786_v53 }
 0xb1f   :  { %v2795_v43 = vmul.f32 %v2791_v14, %v2667_v52 }
 0xb20   :  { %v2794_v33 = vmul.f32 %v2790_v31, %v2666_v29 }
 0xb22   :  { %3624 = vmatprep.mubr.msk.f32.mxu0 %vm175_vm2, %v2794_v33 }
 0xb23   :  { %3625 = vmatmul.mubr.msk.f32.vlgmr.msra.gmra.mrb[14].mxu0 %vm175_vm2, %v2795_v43 }
 0xbde   :  { %v3615_v24 = vpop.f32.mrb[24].mxu1 }
 0xbdf   :  { %v5012_v54 = vadd.f32 %v3615_v24, %v4979_v35  ;;  %v2657_v40 = vpop.f32.mrb[25].mxu1 }
 0xbe0   :  { %v5015_v25 = vadd.f32 %v4979_v35, %v2657_v40 }
 0xbe1   :  { %v2673_v3 = vmul.f32 0.70710677, %v5012_v54 }
 0xbe2   :  { %v2672_v61 = vmul.f32 0.70710677, %v5015_v25 }
 0xbe3   :  { %v5019_v27 = vclamps-f32 %v2673_v3, 4.0 }
 0xbe4   :  { %v5021_v12 = vclamps-f32 %v2672_v61, 4.0 }
 0xbe5   :  { %v2685_v4 = vmul.f32 %v5019_v27, %v5019_v27 }
 0xbe6   :  { %v2684_v17 = vmul.f32 %v5021_v12, %v5021_v12 }
 0xbe7   :  { %v2689_v18 = vmul.f32 -2.7261424e-10, %v2685_v4  ;;  %v2741_v5 = vmul.f32 -1.45660715e-05, %v2685_v4 }
 0xbe8   :  { %v2688_v11 = vmul.f32 -2.7261424e-10, %v2684_v17  ;;  %v2740_v45 = vmul.f32 -1.45660715e-05, %v2684_v17 }
 0xbe9   :  { %v2693_v35 = vadd.f32 2.7706815e-08, %v2689_v18  ;;  %v2745_v46 = vadd.f32 -0.00021337405, %v2741_v5 }
 0xbea   :  { %v2692_v0 = vadd.f32 2.7706815e-08, %v2688_v11  ;;  %v2744_v58 = vadd.f32 -0.00021337405, %v2740_v45 }
 0xbeb   :  { %v2697_v59 = vmul.f32 %v2693_v35, %v2685_v4  ;;  %v2749_v50 = vmul.f32 %v2745_v46, %v2685_v4 }
 0xbec   :  { %v2696_v22 = vmul.f32 %v2692_v0, %v2684_v17  ;;  %v2748_v7 = vmul.f32 %v2744_v58, %v2684_v17 }
 0xbed   :  { %v2701_v57 = vadd.f32 -2.101024e-06, %v2697_v59  ;;  %v2753_v13 = vadd.f32 -0.001682827, %v2749_v50 }
 0xbee   :  { %v2700_v39 = vadd.f32 -2.101024e-06, %v2696_v22  ;;  %v2752_v9 = vadd.f32 -0.001682827, %v2748_v7 }
 0xbef   :  { %v2705_v56 = vmul.f32 %v2701_v57, %v2685_v4  ;;  %v2757_v30 = vmul.f32 %v2753_v13, %v2685_v4 }
 0xbf0   :  { %v2704_v44 = vmul.f32 %v2700_v39, %v2684_v17  ;;  %v2756_v20 = vmul.f32 %v2752_v9, %v2684_v17 }
 0xbf1   :  { %v2709_v23 = vadd.f32 -5.6925062e-05, %v2705_v56  ;;  %v2761_v15 = vadd.f32 -0.0073733293, %v2757_v30 }
 0xbf2   :  { %v2708_v63 = vadd.f32 -5.6925062e-05, %v2704_v44  ;;  %v2760_v10 = vadd.f32 -0.0073733293, %v2756_v20 }
 0xbf3   :  { %v2713_v48 = vmul.f32 %v2709_v23, %v2685_v4  ;;  %v2765_v37 = vmul.f32 %v2761_v15, %v2685_v4 }
 0xbf4   :  { %v2712_v42 = vmul.f32 %v2708_v63, %v2684_v17  ;;  %v2764_v6 = vmul.f32 %v2760_v10, %v2684_v17 }
 0xbf5   :  { %v2717_v26 = vadd.f32 -0.00073499064, %v2713_v48  ;;  %v2769_v32 = vadd.f32 -0.014264739, %v2765_v37 }
 0xbf6   :  { %v2716_v47 = vadd.f32 -0.00073499064, %v2712_v42  ;;  %v2768_v49 = vadd.f32 -0.014264739, %v2764_v6  ;;  %v3626_v19 = vpop.f32.mrb[14].mxu0 }
 0xbf7   :  { %v2721_v16 = vmul.f32 %v2717_v26, %v2685_v4  ;;  %3846 = vrcp.f32 %v2769_v32  ;;  %v5033_v1 = vadd.f32 %v3626_v19, %v5030_v2  ;;  %v2889_v62 = vpop.f32.mrb[15].mxu0 }
 0xbf8   :  { %v2720_v36 = vmul.f32 %v2716_v47, %v2684_v17  ;;  %3848 = vrcp.f32 %v2768_v49  ;;  %v5036_v34 = vadd.f32 %v5030_v2, %v2889_v62 }
 0xbf9   :  { %v2725_v28 = vadd.f32 -0.0029546, %v2721_v16  ;;  %v2913_v51 = vmul.f32 0.70710677, %v5033_v1 }
 0xbfa   :  { %v2724_v38 = vadd.f32 -0.0029546, %v2720_v36  ;;  %v2912_v60 = vmul.f32 0.70710677, %v5036_v34 }
 0xbfb   :  { %v5040_v53 = vclamps-f32 %v2913_v51, 4.0  ;;  %v2729_v29 = vmul.f32 %v2725_v28, %v2685_v4 }
 0xbfc   :  { %v5042_v14 = vclamps-f32 %v2912_v60, 4.0  ;;  %v2728_v52 = vmul.f32 %v2724_v38, %v2684_v17 }
 0xbfd   :  { %v5046_v31 = vmul.f32 %v5040_v53, %v5040_v53  ;;  %v2733_v5 = vadd.f32 -0.016096033, %v2729_v29 }
 0xbfe   :  { %v2924_v33 = vmul.f32 %v5042_v14, %v5042_v14  ;;  %v2732_v35 = vadd.f32 -0.016096033, %v2728_v52 }
 0xbff   :  { %v2929_v43 = vmul.f32 -2.7261424e-10, %v5046_v31  ;;  %v2981_v24 = vmul.f32 -1.45660715e-05, %v5046_v31  ;;  %v2737_v13 = vmul.f32 %v5019_v27, %v2733_v5  ;;  %v2668_v27 = vmul.f32 0.5, %v5015_v25 }
 0xc00   :  { %v2928_v3 = vmul.f32 -2.7261424e-10, %v2924_v33  ;;  %v2980_v61 = vmul.f32 -1.45660715e-05, %v2924_v33  ;;  %v2736_v30 = vmul.f32 %v5021_v12, %v2732_v35  ;;  %v2669_v12 = vmul.f32 0.5, %v5012_v54 }
 0xc01   :  { %v3847_v40 = vpop.eup %3846  ;;  %v2933_v45 = vadd.f32 2.7706815e-08, %v2929_v43  ;;  %v2985_v4 = vadd.f32 -0.00021337405, %v2981_v24 }
 0xc02   :  { %v3849_v18 = vpop.eup %3848  ;;  %v2777_v11 = vmul.f32 %v3847_v40, %v2769_v32  ;;  %v2932_v0 = vadd.f32 2.7706815e-08, %v2928_v3  ;;  %v2984_v58 = vadd.f32 -0.00021337405, %v2980_v61 }
 0xc03   :  { %v2776_v46 = vmul.f32 %v3849_v18, %v2768_v49  ;;  %v2937_v59 = vmul.f32 %v2933_v45, %v5046_v31  ;;  %v2989_v50 = vmul.f32 %v2985_v4, %v5046_v31 }
 0xc04   :  { %v2781_v17 = vsub.f32 2.0, %v2777_v11  ;;  %v2936_v7 = vmul.f32 %v2932_v0, %v2924_v33  ;;  %v2988_v57 = vmul.f32 %v2984_v58, %v2924_v33 }
 0xc05   :  { %v2780_v22 = vsub.f32 2.0, %v2776_v46  ;;  %v2941_v9 = vadd.f32 -2.101024e-06, %v2937_v59  ;;  %v2993_v56 = vadd.f32 -0.001682827, %v2989_v50 }
 0xc06   :  { %v2785_v39 = vmul.f32 %v3847_v40, %v2781_v17  ;;  %v2940_v20 = vadd.f32 -2.101024e-06, %v2936_v7  ;;  %v2992_v23 = vadd.f32 -0.001682827, %v2988_v57  ;;  %v2909_v57 = vmul.f32 0.5, %v5033_v1 }
 0xc07   :  { %v2784_v44 = vmul.f32 %v3849_v18, %v2780_v22  ;;  %v2945_v63 = vmul.f32 %v2941_v9, %v5046_v31  ;;  %v2997_v10 = vmul.f32 %v2993_v56, %v5046_v31 }
 0xc08   :  { %v2789_v15 = vmul.f32 %v2785_v39, %v2737_v13  ;;  %v2944_v37 = vmul.f32 %v2940_v20, %v2924_v33  ;;  %v2996_v42 = vmul.f32 %v2992_v23, %v2924_v33 }
 0xc09   :  { %v2788_v48 = vmul.f32 %v2784_v44, %v2736_v30  ;;  %v2949_v26 = vadd.f32 -5.6925062e-05, %v2945_v63  ;;  %v3001_v32 = vadd.f32 -0.0073733293, %v2997_v10 }
 0xc0a   :  { %v2793_v6 = vadd.f32 1.0, %v2789_v15  ;;  %v2948_v49 = vadd.f32 -5.6925062e-05, %v2944_v37  ;;  %v3000_v16 = vadd.f32 -0.0073733293, %v2996_v42 }
 0xc0b   :  { %v2792_v47 = vadd.f32 1.0, %v2788_v48  ;;  %v2953_v19 = vmul.f32 %v2949_v26, %v5046_v31  ;;  %v3005_v36 = vmul.f32 %v3001_v32, %v5046_v31 }
 0xc0c   :  { %v2952_v28 = vmul.f32 %v2948_v49, %v2924_v33  ;;  %v3004_v51 = vmul.f32 %v3000_v16, %v2924_v33  ;;  %v2797_v38 = vmul.f32 %v2793_v6, %v2669_v12 }
 0xc0d   :  { %v2796_v62 = vmul.f32 %v2792_v47, %v2668_v27  ;;  %v2957_v60 = vadd.f32 -0.00073499064, %v2953_v19  ;;  %v3009_v29 = vadd.f32 -0.014264739, %v3005_v36 }
 0xc0e   :  { %v2956_v52 = vadd.f32 -0.00073499064, %v2952_v28  ;;  %v3008_v43 = vadd.f32 -0.014264739, %v3004_v51 }
 0xc0f   :  { %3627 = vmatprep.mubr.msk.f32.mxu0 %vm175_vm2, %v2796_v62  ;;  %v2961_v25 = vmul.f32 %v2957_v60, %v5046_v31  ;;  %3850 = vrcp.f32 %v3009_v29 }
 0xc10   :  { %3628 = vmatmul.mubr.msk.f32.gmra.mrb[16].mxu0 %vm175_vm2, %v2797_v38  ;;  %v2960_v54 = vmul.f32 %v2956_v52, %v2924_v33  ;;  %3852 = vrcp.f32 %v3008_v43 }
 0xc11   :  { %v2965_v24 = vadd.f32 -0.0029546, %v2961_v25 }
 0xc12   :  { %v2964_v40 = vadd.f32 -0.0029546, %v2960_v54 }
 0xc13   :  { %v2969_v3 = vmul.f32 %v2965_v24, %v5046_v31 }
 0xc14   :  { %v2968_v61 = vmul.f32 %v2964_v40, %v2924_v33  ;;  %v2908_v33 = vmul.f32 0.5, %v5036_v34 }
 0xc15   :  { %v2973_v11 = vadd.f32 -0.016096033, %v2969_v3 }
 0xc16   :  { %v2972_v4 = vadd.f32 -0.016096033, %v2968_v61 }
 0xc17   :  { %v2977_v58 = vmul.f32 %v5040_v53, %v2973_v11 }
 0xc18   :  { %v2976_v59 = vmul.f32 %v5042_v14, %v2972_v4 }
 0xc19   :  { %v3851_v18 = vpop.eup %3850 }
 0xc1a   :  { %v3853_v5 = vpop.eup %3852  ;;  %v3017_v45 = vmul.f32 %v3851_v18, %v3009_v29 }
 0xc1b   :  { %v3016_v35 = vmul.f32 %v3853_v5, %v3008_v43 }
 0xc1c   :  { %v3021_v46 = vsub.f32 2.0, %v3017_v45 }
 0xc1d   :  { %v3020_v0 = vsub.f32 2.0, %v3016_v35 }
 0xc1e   :  { %v3025_v17 = vmul.f32 %v3851_v18, %v3021_v46 }
 0xc1f   :  { %v3024_v50 = vmul.f32 %v3853_v5, %v3020_v0 }
 0xc20   :  { %v3029_v22 = vmul.f32 %v3025_v17, %v2977_v58 }
 0xc21   :  { %v3028_v7 = vmul.f32 %v3024_v50, %v2976_v59 }
 0xc22   :  { %v3033_v31 = vadd.f32 1.0, %v3029_v22 }
 0xc23   :  { %v3032_v13 = vadd.f32 1.0, %v3028_v7 }
 0xc24   :  { %v3037_v39 = vmul.f32 %v3033_v31, %v2909_v57 }
 0xc25   :  { %v3036_v9 = vmul.f32 %v3032_v13, %v2908_v33 }
 0xc26   :  { %v5071_v56 = vadd.f32 %v3037_v39, %v4897_v8 }
 0xc27   :  { %v5074_v30 = vadd.f32 %v3036_v9, %v4900_v41 }
 0xc28   :  { %v3049_v53 = vsel %vm175_vm2, %v5071_v56, 0.0  ;;  %v3063_v14 = vmul.f32 %v5071_v56, %v5071_v56 }
 0xc29   :  { %3050 = vadd.xlane.f32.xlu1 %v3049_v53  ;;  %v3046_v1 = vsel %vm175_vm2, %v5074_v30, 0.0  ;;  %v3062_v34 = vmul.f32 %v5074_v30, %v5074_v30 }
 0xc2a   :  { %3047 = vadd.xlane.f32.xlu0 %v3046_v1  ;;  %v3069_v8 = vsel %vm175_vm2, %v3063_v14, 0.0 }
 0xc2b   :  { %v3066_v41 = vsel %vm175_vm2, %v3062_v34, 0.0 }
 0xc2d   :  { %3070 = vadd.xlane.f32.xlu1 %v3069_v8 }
 0xc2e   :  { %3067 = vadd.xlane.f32.xlu0 %v3066_v41 }
 0xce3   :  { %v3629_v44 = vpop.f32.mrb[16].mxu0 }
 0xce4   :  { %v5087_v20 = vadd.f32 %v3629_v44, %v5030_v2  ;;  %v2899_v23 = vpop.f32.mrb[17].mxu0 }
 0xce5   :  { %v2900_v15 = vadd.f32 %v5030_v2, %v2899_v23 }
 0xce6   :  { %v2915_v63 = vmul.f32 0.70710677, %v5087_v20 }
 0xce7   :  { %v2914_v10 = vmul.f32 0.70710677, %v2900_v15 }
 0xce8   :  { %v3369_v48 = vclamps-f32 %v2915_v63, 4.0  ;;  %v2911_v63 = vmul.f32 0.5, %v5087_v20 }
 0xce9   :  { %v3368_v37 = vclamps-f32 %v2914_v10, 4.0 }
 0xcea   :  { %v2927_v42 = vmul.f32 %v3369_v48, %v3369_v48 }
 0xceb   :  { %v2926_v6 = vmul.f32 %v3368_v37, %v3368_v37 }
 0xcec   :  { %v2931_v26 = vmul.f32 -2.7261424e-10, %v2927_v42  ;;  %v2983_v32 = vmul.f32 -1.45660715e-05, %v2927_v42 }
 0xced   :  { %v2930_v27 = vmul.f32 -2.7261424e-10, %v2926_v6  ;;  %v2982_v47 = vmul.f32 -1.45660715e-05, %v2926_v6 }
 0xcee   :  { %v2935_v49 = vadd.f32 2.7706815e-08, %v2931_v26  ;;  %v2987_v16 = vadd.f32 -0.00021337405, %v2983_v32  ;;  %v2910_v26 = vmul.f32 0.5, %v2900_v15 }
 0xcef   :  { %v2934_v12 = vadd.f32 2.7706815e-08, %v2930_v27  ;;  %v2986_v19 = vadd.f32 -0.00021337405, %v2982_v47 }
 0xcf0   :  { %v2939_v36 = vmul.f32 %v2935_v49, %v2927_v42  ;;  %v2991_v62 = vmul.f32 %v2987_v16, %v2927_v42  ;;  %v3148_v49 = vld [vmem:[%s5167_s16] sm:$0xff]  ;;  %v3149_v16 = vld [vmem:[%s5167_s16 + $0x8] sm:$0xff] }
 0xcf1   :  { %v2938_v28 = vmul.f32 %v2934_v12, %v2926_v6  ;;  %v2990_v51 = vmul.f32 %v2986_v19, %v2926_v6  ;;  %v3150_v12 = vld [vmem:[%s5167_s16 + $0x10] sm:$0xff]  ;;  %v3891_v19 = vmov 0.0|0.0  }
 0xcf2   :  { %v2943_v2 = vadd.f32 -2.101024e-06, %v2939_v36  ;;  %v2995_v38 = vadd.f32 -0.001682827, %v2991_v62  ;;  %3733 = vmatprep.subr.bf16.mxu1 %v3891_v19  ;;  %v3734_v36 = vpack.c.bf16 %v3149_v16, %v3148_v49  ;;  %v3151_v62 = vld [vmem:[%s5167_s16 + $0x18] sm:$0xff] }
 0xcf3   :  { %v2942_v60 = vadd.f32 -2.101024e-06, %v2938_v28  ;;  %v2994_v29 = vadd.f32 -0.001682827, %v2990_v51  ;;  %v3893_v28 = vmov 0.0   ;;  %v3737_v51 = vpack.c.bf16 %v3151_v62, %v3150_v12 }
 0xcf4   :  { %v2947_v52 = vmul.f32 %v2943_v2, %v2927_v42  ;;  %v2999_v43 = vmul.f32 %v2995_v38, %v2927_v42  ;;  %3638 = vmatprep.mubr.msk.f32.mxu1 %vm3892_vm4, %v3893_v28  ;;  %3735 = vmatpush3.bf16.msra.mxu1 %v3734_v36  ;;  %v3051_v2 = vpop.xlane.xlu1 %3050  ;;  %v3048_v38 = vpop.xlane.xlu0 %3047 }
 0xcf5   :  { %v2946_v25 = vmul.f32 %v2942_v60, %v2926_v6  ;;  %v2998_v54 = vmul.f32 %v2994_v29, %v2926_v6  ;;  %3736 = vmatprep.subr.bf16.mxu1 %v3891_v19  ;;  %v3059_v29 = vmul.f32 0.03125, %v3051_v2 }
 0xcf6   :  { %v2951_v24 = vadd.f32 -5.6925062e-05, %v2947_v52  ;;  %v3003_v40 = vadd.f32 -0.0073733293, %v2999_v43  ;;  %v3058_v43 = vmul.f32 0.03125, %v3048_v38 }
 0xcf7   :  { %v2950_v3 = vadd.f32 -5.6925062e-05, %v2946_v25  ;;  %v3002_v61 = vadd.f32 -0.0073733293, %v2998_v54 }
 0xcf8   :  { %v2955_v18 = vmul.f32 %v2951_v24, %v2927_v42  ;;  %v3007_v5 = vmul.f32 %v3003_v40, %v2927_v42  ;;  %3738 = vmatpush3.bf16.msra.mxu1 %v3737_v51  ;;  %v3071_v60 = vpop.xlane.xlu1 %3070  ;;  %v3068_v52 = vpop.xlane.xlu0 %3067  ;;  %v3083_v24 = vmul.f32 %v3059_v29, %v3059_v29  ;;  %v3082_v40 = vmul.f32 %v3058_v43, %v3058_v43 }
 0xcf9   :  { %v2954_v11 = vmul.f32 %v2950_v3, %v2926_v6  ;;  %v3006_v45 = vmul.f32 %v3002_v61, %v2926_v6  ;;  %v3079_v25 = vmul.f32 0.03125, %v3071_v60  ;;  %v3078_v54 = vmul.f32 0.03125, %v3068_v52 }
 0xcfa   :  { %v2959_v4 = vadd.f32 -0.00073499064, %v2955_v18  ;;  %v3011_v35 = vadd.f32 -0.014264739, %v3007_v5 }
 0xcfb   :  { %v2958_v46 = vadd.f32 -0.00073499064, %v2954_v11  ;;  %v3010_v0 = vadd.f32 -0.014264739, %v3006_v45  ;;  %v3087_v3 = vsub.f32 %v3079_v25, %v3083_v24  ;;  %v3086_v61 = vsub.f32 %v3078_v54, %v3082_v40  ;;  %v3372_v54 = vld [vmem:[%s5168_s17] ss:$0 sm:$0xff] }
 0xcfc   :  { %v2963_v58 = vmul.f32 %v2959_v4, %v2927_v42  ;;  %3854 = vrcp.f32 %v3011_v35  ;;  %v3370_v4 = vld [vmem:[%s5165_s14] ss:$0 sm:$0xff] }
 0xcfd   :  { %v2962_v17 = vmul.f32 %v2958_v46, %v2926_v6  ;;  %3856 = vrcp.f32 %v3010_v0  ;;  %v3091_v18 = vadd.f32 1e-05, %v3087_v3  ;;  %v3090_v5 = vadd.f32 1e-05, %v3086_v61 }
 0xcfe   :  { %v2967_v59 = vadd.f32 -0.0029546, %v2963_v58 }
 0xcff   :  { %v2966_v50 = vadd.f32 -0.0029546, %v2962_v17  ;;  %3858 = vrsqrt.f32 %v3091_v18 }
 0xd00   :  { %v2971_v22 = vmul.f32 %v2967_v59, %v2927_v42  ;;  %3860 = vrsqrt.f32 %v3090_v5 }
 0xd01   :  { %v2970_v7 = vmul.f32 %v2966_v50, %v2926_v6  ;;  %v3099_v50 = vsub.f32 %v5071_v56, %v3059_v29 }
 0xd02   :  { %v2975_v33 = vadd.f32 -0.016096033, %v2971_v22  ;;  %v3098_v22 = vsub.f32 %v5074_v30, %v3058_v43 }
 0xd03   :  { %v2974_v39 = vadd.f32 -0.016096033, %v2970_v7 }
 0xd04   :  { %v2979_v1 = vmul.f32 %v3369_v48, %v2975_v33 }
 0xd05   :  { %v2978_v8 = vmul.f32 %v3368_v37, %v2974_v39 }
 0xd06   :  { %v3855_v57 = vpop.eup %3854 }
 0xd07   :  { %v3857_v31 = vpop.eup %3856  ;;  %v3019_v13 = vmul.f32 %v3855_v57, %v3011_v35 }
 0xd08   :  { %v3018_v9 = vmul.f32 %v3857_v31, %v3010_v0 }
 0xd09   :  { %v3023_v53 = vsub.f32 2.0, %v3019_v13  ;;  %v3859_v11 = vpop.eup %3858 }
 0xd0a   :  { %v3022_v14 = vsub.f32 2.0, %v3018_v9  ;;  %v3861_v45 = vpop.eup %3860  ;;  %v3109_v46 = vmul.f32 %v3859_v11, %v3370_v4  ;;  %v3371_v9 = vld [vmem:[%s5166_s15] ss:$0 sm:$0xff] }
 0xd0b   :  { %v3027_v34 = vmul.f32 %v3855_v57, %v3023_v53  ;;  %v3108_v0 = vmul.f32 %v3861_v45, %v3370_v4 }
 0xd0c   :  { %v3026_v41 = vmul.f32 %v3857_v31, %v3022_v14  ;;  %v3113_v57 = vmul.f32 %v3109_v46, %v3099_v50 }
 0xd0d   :  { %v3031_v44 = vmul.f32 %v3027_v34, %v2979_v1  ;;  %v3112_v31 = vmul.f32 %v3108_v0, %v3098_v22 }
 0xd0e   :  { %v3030_v23 = vmul.f32 %v3026_v41, %v2978_v8  ;;  %v3123_v8 = vadd.f32 %v3371_v9, %v3113_v57 }
 0xd0f   :  { %v3035_v10 = vadd.f32 1.0, %v3031_v44  ;;  %v3122_v41 = vadd.f32 %v3371_v9, %v3112_v31 }
 0xd10   :  { %v3034_v42 = vadd.f32 1.0, %v3030_v23  ;;  %v3127_v23 = vsel %vm175_vm2, %v3123_v8, 0.0 }
 0xd11   :  { %v3039_v6 = vmul.f32 %v3035_v10, %v2911_v63  ;;  %v3126_v30 = vsel %vm175_vm2, %v3122_v41, 0.0 }
 0xd12   :  { %v3038_v32 = vmul.f32 %v3034_v42, %v2910_v26  ;;  %v3128_v63 = vadd.f32 %v3127_v23, %v3126_v30 }
 0xd13   :  { %v5093_v27 = vadd.f32 %v3039_v6, %v4949_v55 }
 0xd14   :  { %v5096_v47 = vadd.f32 %v3038_v32, %v4952_v21  ;;  %v3129_v10 = vrot.slane %v3128_v63, 4 }
 0xd15   :  { %v3055_v48 = vsel %vm175_vm2, %v5093_v27, 0.0  ;;  %v3065_v37 = vmul.f32 %v5093_v27, %v5093_v27 }
 0xd16   :  { %3056 = vadd.xlane.f32.xlu1 %v3055_v48  ;;  %v3052_v20 = vsel %vm175_vm2, %v5096_v47, 0.0  ;;  %v3064_v15 = vmul.f32 %v5096_v47, %v5096_v47 }
 0xd17   :  { %3053 = vadd.xlane.f32.xlu0 %v3052_v20  ;;  %v3075_v55 = vsel %vm175_vm2, %v3065_v37, 0.0 }
 0xd18   :  { %v3072_v21 = vsel %vm175_vm2, %v3064_v15, 0.0  ;;  %v3130_v15 = vadd.f32 %v3129_v10, %v3128_v63 }
 0xd1a   :  { %3076 = vadd.xlane.f32.xlu1 %v3075_v55  ;;  %v3131_v12 = vrot.slane %v3130_v15, 2 }
 0xd1b   :  { %3073 = vadd.xlane.f32.xlu0 %v3072_v21 }
 0xd1c   :  { %v3132_v62 = vadd.f32 %v3131_v12, %v3130_v15 }
 0xd1e   :  { %v3133_v2 = vrot.slane %v3132_v62, 1 }
 0xd20   :  { %v3134_v60 = vadd.f32 %v3133_v2, %v3132_v62 }
 0xd22   :  { %v3136_v52 = vmul.f32 0.0625, %v3134_v60 }
 0xda3   :  { %v3057_v35 = vpop.xlane.xlu1 %3056 }
 0xda4   :  { %v3061_v58 = vmul.f32 0.03125, %v3057_v35  ;;  %v3054_v17 = vpop.xlane.xlu0 %3053 }
 0xda5   :  { %v3060_v59 = vmul.f32 0.03125, %v3054_v17 }
 0xda6   :  { %v3085_v33 = vmul.f32 %v3061_v58, %v3061_v58  ;;  %v3101_v6 = vsub.f32 %v5093_v27, %v3061_v58 }
 0xda7   :  { %v3077_v7 = vpop.xlane.xlu1 %3076  ;;  %v3084_v53 = vmul.f32 %v3060_v59, %v3060_v59  ;;  %v3100_v48 = vsub.f32 %v5096_v47, %v3060_v59 }
 0xda8   :  { %v3081_v13 = vmul.f32 0.03125, %v3077_v7  ;;  %v3074_v39 = vpop.xlane.xlu0 %3073 }
 0xda9   :  { %v3080_v14 = vmul.f32 0.03125, %v3074_v39 }
 0xdaa   :  { %v3089_v1 = vsub.f32 %v3081_v13, %v3085_v33 }
 0xdab   :  { %v3088_v34 = vsub.f32 %v3080_v14, %v3084_v53 }
 0xdac   :  { %v3093_v44 = vadd.f32 1e-05, %v3089_v1 }
 0xdad   :  { %v3092_v56 = vadd.f32 1e-05, %v3088_v34 }
 0xdae   :  { %3862 = vrsqrt.f32 %v3093_v44 }
 0xdaf   :  { %3864 = vrsqrt.f32 %v3092_v56 }
 0xdb8   :  { %v3863_v26 = vpop.eup %3862 }
 0xdb9   :  { %v3865_v42 = vpop.eup %3864  ;;  %v3111_v32 = vmul.f32 %v3863_v26, %v3370_v4 }
 0xdba   :  { %v3110_v37 = vmul.f32 %v3865_v42, %v3370_v4 }
 0xdbb   :  { %v3115_v20 = vmul.f32 %v3111_v32, %v3101_v6 }
 0xdbc   :  { %v3114_v55 = vmul.f32 %v3110_v37, %v3100_v48 }
 0xdbd   :  { %v3125_v21 = vadd.f32 %v3371_v9, %v3115_v20 }
 0xdbe   :  { %v3124_v49 = vadd.f32 %v3371_v9, %v3114_v55 }
 0xdbf   :  { %v3138_v16 = vsel %vm175_vm2, %v3125_v21, 0.0 }
 0xdc0   :  { %v3137_v19 = vsel %vm175_vm2, %v3124_v49, 0.0 }
 0xdc1   :  { %v3139_v36 = vadd.f32 %v3138_v16, %v3137_v19 }
 0xdc3   :  { %v3140_v28 = vrot.slane %v3139_v36, 4 }
 0xdc5   :  { %v3141_v51 = vadd.f32 %v3140_v28, %v3139_v36 }
 0xdc7   :  { %v3142_v27 = vrot.slane %v3141_v51, 2 }
 0xdc9   :  { %v3143_v38 = vadd.f32 %v3142_v27, %v3141_v51 }
 0xdcb   :  { %v3144_v47 = vrot.slane %v3143_v38, 1 }
 0xdcd   :  { %v3145_v29 = vadd.f32 %v3144_v47, %v3143_v38 }
 0xdcf   :  { %v3146_v43 = vmul.f32 0.0625, %v3145_v29 }
 0xdd1   :  { %v3147_v25 = vsel %vm84_vm1, %v3136_v52, %v3146_v43 }
 0xdd2   :  { %3639 = vmatmul.mubr.msk.f32.vlgmr.msra.gmra.mrb[26].mxu1 %vm175_vm2, %v3147_v25 }
 0xea5   :  { %v3228_v24 = vpop.f32.mrb[26].mxu1 }
 0xea6   :  { %v3229_v40 = vadd.f32 %v3372_v54, %v3228_v24  ;;  %v3640_v3 = vpop.f32.mrb[27].mxu1 }
 0xea8   :  { %3232 = vst [vmem:[#allocation2] sm:$0x3] %v3229_v40 }
 0xea9   :  { %3877 = shalt.err (!%p3874_p4)
}
 0xeaa   :  { %s3878_s21 = scalar_lea.hbm %s5169_s18, 32 }
 0xeab   :  { %p3879_p5 = scmp.ne.s32.totalorder %s5169_s18, %s3878_s21  ;;  %p3882_p6 = scmp.lt.u32.totalorder %s3878_s21, %s5169_s18 }
 0xead   :  { %p3884_p7 = pnand %p3882_p6, %p3879_p5 }
 0xeaf   :  { %3887 = shalt.err (!%p3884_p7)
}
 0xeb0   :  { %3242 = dma.vmem_to_hbm [thread:$0]  %s3240_s1, 32, %s5169_s18, [#allocation3]  }
 0xeb1   :  { %3888 = dma.done.wait [#allocation3], 32  }
 0xeb2   :  { %3889 = vsyncadd [#allocation3], 4294967264 }
 0xeb3   :  { %3246 = vsyncpa [#allocation3], 1 }

</bundles_post_ra>
